<compile_context>
chip_gen: v5e
topology: v5e:2x2
jax: 0.10.0
libtpu: 0.0.40
codegen_flags: <defaults>
</compile_context>

<pallas_src>
import functools

import jax
import jax.numpy as jnp
from jax.experimental import pallas as pl
from jax.experimental.pallas import tpu as pltpu


# ----------------------------- Pallas kernel --------------------------------

def awb_head_kernel(feats_ref, w1_ref, b1_ref, wd_ref, bd_ref, out_ref):
    # feats_ref: (TB, C, P) bf16       w1_ref: (1, C, 1) f32  (resident)
    # b1_ref:    (1, 1) f32 in SMEM    wd_ref: (P, KK) bf16   (resident)
    # bd_ref:    (1, KK) f32           out_ref: (TB, KK) f32
    #
    # 1x1 conv over channels == per-pixel weighted channel sum.  Done on the VPU
    # (f32 multiply + reduction over the channel/sublane axis) so the streamed feature
    # tile stays off the MXU stationary-weight path; hides under the feature DMA.
    x = feats_ref[...].astype(jnp.float32)                     # (TB, C, P) f32
    h = jnp.sum(x * w1_ref[...], axis=1) + b1_ref[0, 0]        # (TB, P) f32
    # exact (erf) GELU — matches torch.nn.GELU() default
    h = 0.5 * h * (1.0 + jax.lax.erf(h * 0.7071067811865476))
    # Linear(1024 -> k*k): one batched MXU dot for the whole block (bf16 in, f32 acc)
    o = jnp.dot(h.astype(jnp.bfloat16), wd_ref[...],
                preferred_element_type=jnp.float32)            # (TB, KK)
    out_ref[...] = o + bd_ref[...]


def _pick_block(B, tb_max):
    """Pick (TB, B_pad).  Prefer a TB that divides B exactly (no jnp.pad of the dominant
    operand) and keeps the 2-D output block sublane-legal (TB % 8 == 0 or TB == B);
    among those, prefer grid >= 2 so the 'parallel' batch axis feeds both v7x TCs."""
    cands = [d for d in range(1, min(B, tb_max) + 1)
             if B % d == 0 and (d % 8 == 0 or d == B)]
    if cands:
        multi = [d for d in cands if B // d >= 2]
        return (max(multi) if multi else max(cands)), B
    # Ragged batch with no usable divisor: minimal pad to a multiple of 8 (rare path).
    tb = 8
    return tb, pl.cdiv(B, tb) * tb


def awb_head(feats_bcp, w1, b1, wd_t, bd, *, tb_max=16):
    """feats_bcp: (B, 256, P) features; returns (B, k*k) float32."""
    B, C, P = feats_bcp.shape
    KK = wd_t.shape[1]

    # Stream the bandwidth-dominant operand as bf16, accumulate in f32 in-kernel.
    # The backbone already emits bf16 and the forward is jitted, so this cast is a
    # no-op / fuses into the producer rather than costing a separate HBM pass.
    feats_bcp = feats_bcp.astype(jnp.bfloat16)
    w1_cp1 = w1.reshape(1, C, 1).astype(jnp.float32)   # conv weight, channels on sublanes
    wd_bf = wd_t.astype(jnp.bfloat16)                  # D.weight^T on the MXU fast path
    bd = bd.reshape(1, KK).astype(jnp.float32)
    b1 = b1.reshape(1, 1).astype(jnp.float32)

    TB, B_pad = _pick_block(B, tb_max)
    if B_pad != B:
        # TODO(synk): rare ragged-batch fallback only; padded rows are discarded below.
        feats_bcp = jnp.pad(feats_bcp, ((0, B_pad - B), (0, 0), (0, 0)))

    grid_spec = pltpu.PrefetchScalarGridSpec(
        num_scalar_prefetch=0,
        grid=(B_pad // TB,),
        in_specs=[
            pl.BlockSpec((TB, C, P), lambda i: (i, 0, 0)),         # TB-image feature slab (bf16)
            pl.BlockSpec((1, C, 1), lambda i: (0, 0, 0)),          # conv weight (resident)
            pl.BlockSpec(memory_space=pltpu.MemorySpace.SMEM),     # conv bias scalar in SMEM
            pl.BlockSpec((P, KK), lambda i: (0, 0)),               # D.weight^T (resident, bf16)
            pl.BlockSpec((1, KK), lambda i: (0, 0)),               # D.bias (resident)
        ],
        out_specs=pl.BlockSpec((TB, KK), lambda i: (i, 0)),
    )
    out = pl.pallas_call(
        awb_head_kernel,
        out_shape=jax.ShapeDtypeStruct((B_pad, KK), jnp.float32),
        grid_spec=grid_spec,
        compiler_params=pltpu.CompilerParams(
            dimension_semantics=("parallel",),
            vmem_limit_bytes=40 * 1024 * 1024,
        ),
    )(feats_bcp, w1_cp1, b1, wd_bf, bd)
    return out[:B] if B_pad != B else out


# ------------------------------ glue (plain JAX) ----------------------------

def bilinear_resize(x_nchw, sz):
    # torchvision resize(bilinear); upscaling so antialias is moot.
    B, C, _, _ = x_nchw.shape
    return jax.image.resize(x_nchw, (B, C, sz, sz), method="bilinear")


def standin_backbone_encoder(x_nchw, proj):
    # TODO(synk): the real IFRNetv2/VGG16-pretrained encoder is an external pretrained
    # module; replaced by a deterministic pool + channel projection that yields the
    # required (B, 256, 32, 32) feature map.  Emits bf16 directly so the head streams
    # half the bytes with no separate cast pass.
    # TODO(synk): if the real backbone's final layer is linear, the 1x1-conv weight could
    # be folded into it (256x fewer streamed bytes); not assumed here to stay faithful.
    B, C, H, W = x_nchw.shape
    f = H // 32
    pooled = x_nchw.reshape(B, C, 32, f, 32, f).mean(axis=(3, 5))          # (B, C, 32, 32)
    feats = jnp.einsum("bchw,co->bohw", pooled, proj)                      # (B, 256, 32, 32)
    return feats.astype(jnp.bfloat16)


@functools.partial(jax.jit, static_argnames=("sz",))
def awb_encoder_forward(x, params, *, sz):
    out = bilinear_resize(x, sz)
    out = standin_backbone_encoder(out, params["backbone_proj"])
    B = out.shape[0]
    # NCHW flatten; the 1x1 conv is per-pixel so applying it after the flatten is exact.
    feats_bcp = out.reshape(B, 256, 32 * 32)
    return awb_head(feats_bcp, params["w1"], params["b1"], params["wd_t"], params["bd"])


# ----------------------------------- main ------------------------------------

if __name__ == "__main__":
    sz = 64          # resize target (stand-in encoder downsamples 64 -> 32)
    k = 4            # D maps 1024 -> k*k = 16
    KK = k * k
    B, C_in, H, W = 2, 3, 16, 16

    key = jax.random.PRNGKey(0)
    k1, k2, k3, k4, k5, k6 = jax.random.split(key, 6)
    params = {
        "w1":   jax.random.normal(k1, (1, 256), jnp.float32) * 0.05,   # Conv2d(256,1,1).weight
        "b1":   jax.random.normal(k2, (1, 1),   jnp.float32) * 0.05,   # Conv2d bias
        "wd_t": jax.random.normal(k3, (1024, KK), jnp.float32) * 0.02, # D.weight^T
        "bd":   jax.random.normal(k4, (1, KK),  jnp.float32) * 0.02,   # D.bias
        "backbone_proj": jax.random.normal(k5, (C_in, 256), jnp.float32) * 0.1,
    }
    x = jax.random.normal(k6, (B, C_in, H, W), jnp.float32)

    out = jax.block_until_ready(awb_encoder_forward(x, params, sz=sz))
    assert out.shape == (B, KK)

    # pure-JAX f32 reference for the kernel-implemented head
    feats = standin_backbone_encoder(bilinear_resize(x, sz), params["backbone_proj"])
    feats_f32 = feats.astype(jnp.float32).reshape(B, 256, 1024)
    h_ref = jnp.einsum("oc,bcp->bp", params["w1"], feats_f32) + params["b1"][0, 0]
    h_ref = jax.nn.gelu(h_ref, approximate=False)
    out_ref = h_ref @ params["wd_t"] + params["bd"]

    err = float(jnp.max(jnp.abs(out - out_ref)))
    assert err < 2e-2, f"mismatch vs reference: max abs err {err}"
    print("KERNEL_OK")
</pallas_src>

<mosaic_0001>
module attributes {stable_mosaic.version = 11 : i64} {
  func.func @awb_head_kernel(%arg0: i32, %arg1: memref<2x256x1024xbf16, #tpu.memory_space<vmem>>, %arg2: memref<1x256x1xf32, #tpu.memory_space<vmem>>, %arg3: memref<1x1xf32, #tpu.memory_space<smem>>, %arg4: memref<1024x16xbf16, #tpu.memory_space<vmem>>, %arg5: memref<1x16xf32, #tpu.memory_space<vmem>>, %arg6: memref<2x16xf32, #tpu.memory_space<vmem>>) attributes {dimension_semantics = [#tpu.dimension_semantics<parallel>], iteration_bounds = array<i64: 1>, scalar_prefetch = 0 : i64, scratch_operands = 0 : i64, tpu.core_type = #tpu.core_type<tc>, window_params = [{transform_indices = @transform_0, window_bounds = array<i64: 2, 256, 1024>}, {pipeline_mode = #tpu.pipeline_mode<synchronous>, transform_indices = @transform_1, window_bounds = array<i64: 1, 256, 1>}, {transform_indices = @transform_2, window_bounds = array<i64: 1, 1>}, {pipeline_mode = #tpu.pipeline_mode<synchronous>, transform_indices = @transform_3, window_bounds = array<i64: 1024, 16>}, {pipeline_mode = #tpu.pipeline_mode<synchronous>, transform_indices = @transform_4, window_bounds = array<i64: 1, 16>}, {transform_indices = @transform_5, window_bounds = array<i64: 2, 16>}]} {
    %c0 = arith.constant 0 : index
    %c0_0 = arith.constant 0 : index
    %c0_1 = arith.constant 0 : index
    %0 = vector.load %arg1[%c0, %c0_0, %c0_1] : memref<2x256x1024xbf16, #tpu.memory_space<vmem>>, vector<2x256x1024xbf16>
    %1 = arith.extf %0 : vector<2x256x1024xbf16> to vector<2x256x1024xf32>
    %c0_2 = arith.constant 0 : index
    %c0_3 = arith.constant 0 : index
    %c0_4 = arith.constant 0 : index
    %2 = vector.load %arg2[%c0_2, %c0_3, %c0_4] : memref<1x256x1xf32, #tpu.memory_space<vmem>>, vector<1x256x1xf32>
    %3 = vector.broadcast %2 : vector<1x256x1xf32> to vector<2x256x1024xf32>
    %4 = arith.mulf %1, %3 : vector<2x256x1024xf32>
    %cst = arith.constant dense<0.000000e+00> : vector<2x1024xf32>
    %5 = vector.multi_reduction <add>, %4, %cst [1] : vector<2x256x1024xf32> to vector<2x1024xf32>
    %c0_5 = arith.constant 0 : index
    %c0_6 = arith.constant 0 : index
    %6 = memref.load %arg3[%c0_5, %c0_6] : memref<1x1xf32, #tpu.memory_space<smem>>
    %7 = vector.broadcast %6 : f32 to vector<2x1024xf32>
    %8 = arith.addf %5, %7 : vector<2x1024xf32>
    %cst_7 = arith.constant 5.000000e-01 : f32
    %9 = vector.broadcast %cst_7 : f32 to vector<2x1024xf32>
    %10 = arith.mulf %9, %8 : vector<2x1024xf32>
    %cst_8 = arith.constant 0.707106769 : f32
    %11 = vector.broadcast %cst_8 : f32 to vector<2x1024xf32>
    %12 = arith.mulf %8, %11 : vector<2x1024xf32>
    %13 = math.erf %12 : vector<2x1024xf32>
    %cst_9 = arith.constant 1.000000e+00 : f32
    %14 = vector.broadcast %cst_9 : f32 to vector<2x1024xf32>
    %15 = arith.addf %14, %13 : vector<2x1024xf32>
    %16 = arith.mulf %10, %15 : vector<2x1024xf32>
    %17 = arith.truncf %16 : vector<2x1024xf32> to vector<2x1024xbf16>
    %c0_10 = arith.constant 0 : index
    %c0_11 = arith.constant 0 : index
    %18 = vector.load %arg4[%c0_10, %c0_11] : memref<1024x16xbf16, #tpu.memory_space<vmem>>, vector<1024x16xbf16>
    %cst_12 = arith.constant dense<0.000000e+00> : vector<2x16xf32>
    %19 = tpu.matmul %17, %18, %cst_12 {dimension_numbers = #tpu.dot_dimension_numbers<[1], [0], [0], [1], [0, 0, 1, 1], [], []>} : vector<2x1024xbf16>, vector<1024x16xbf16>, vector<2x16xf32> -> vector<2x16xf32>
    %c0_13 = arith.constant 0 : index
    %c0_14 = arith.constant 0 : index
    %20 = vector.load %arg5[%c0_13, %c0_14] : memref<1x16xf32, #tpu.memory_space<vmem>>, vector<1x16xf32>
    %21 = vector.broadcast %20 : vector<1x16xf32> to vector<2x16xf32>
    %22 = arith.addf %19, %21 : vector<2x16xf32>
    %c0_15 = arith.constant 0 : index
    %c0_16 = arith.constant 0 : index
    %23 = vector.load %arg6[%c0_15, %c0_16] : memref<2x16xf32, #tpu.memory_space<vmem>>, vector<2x16xf32>
    tpu.vector_store %arg6[%c0_15, %c0_16], %22 {strides = array<i32>} : memref<2x16xf32, #tpu.memory_space<vmem>>, vector<2x16xf32>,
    return
  }
  func.func @transform_0(%arg0: i32) -> (i32, i32, i32) {
    %c0_i32 = arith.constant 0 : i32
    %c0_i32_0 = arith.constant 0 : i32
    %c0_i32_1 = arith.constant 0 : i32
    return %arg0, %c0_i32, %c0_i32_0 : i32, i32, i32
  }
  func.func @transform_1(%arg0: i32) -> (i32, i32, i32) {
    %c0_i32 = arith.constant 0 : i32
    %c0_i32_0 = arith.constant 0 : i32
    %c0_i32_1 = arith.constant 0 : i32
    %c0_i32_2 = arith.constant 0 : i32
    return %c0_i32, %c0_i32_0, %c0_i32_1 : i32, i32, i32
  }
  func.func @transform_2(%arg0: i32) -> (i32, i32) {
    %c0_i32 = arith.constant 0 : i32
    %c0_i32_0 = arith.constant 0 : i32
    %c0_i32_1 = arith.constant 0 : i32
    return %c0_i32, %c0_i32_0 : i32, i32
  }
  func.func @transform_3(%arg0: i32) -> (i32, i32) {
    %c0_i32 = arith.constant 0 : i32
    %c0_i32_0 = arith.constant 0 : i32
    %c0_i32_1 = arith.constant 0 : i32
    return %c0_i32, %c0_i32_0 : i32, i32
  }
  func.func @transform_4(%arg0: i32) -> (i32, i32) {
    %c0_i32 = arith.constant 0 : i32
    %c0_i32_0 = arith.constant 0 : i32
    %c0_i32_1 = arith.constant 0 : i32
    return %c0_i32, %c0_i32_0 : i32, i32
  }
  func.func @transform_5(%arg0: i32) -> (i32, i32) {
    %c0_i32 = arith.constant 0 : i32
    %c0_i32_0 = arith.constant 0 : i32
    return %arg0, %c0_i32 : i32, i32
  }
}

</mosaic_0001>

<bundles_post_ra>
// kernel: awb_encoder_forward.1
= control target key start
LH: loop header
LB: loop body
LE: loop exit
PB: predicated region body
PF: predicated region fallthrough
CT: control target
= control target key end

     0   :  { %v3922_v3 = vmov 0   ;;  %s8236_s0 = inlined_call_operand.vmem [shape: bf16[2,256,1024], index: 0, kind: input, shape index: {}]   ;;  %s8237_s1 = inlined_call_operand.vmem [shape: f32[1,256,1], index: 1, kind: input, shape index: {}]   ;;  %s8238_s2 = inlined_call_operand.<no memory space> [shape: f32[1,1], index: 2, kind: input, shape index: {}]   ;;  %s8239_s3 = inlined_call_operand.vmem [shape: bf16[1024,16], index: 3, kind: input, shape index: {}]   ;;  %s8240_s4 = inlined_call_operand.vmem [shape: f32[1,16], index: 4, kind: input, shape index: {}]   ;;  %s8241_s5 = inlined_call_operand.hbm [shape: f32[2,16], index: 5, kind: output, shape index: {}]  }
   0x1   :  { %v794_v0 = vld [vmem:[%s8237_s1 + $0x20] sm:$0xff]  ;;  %v792_v1 = vld [vmem:[%s8237_s1 + $0x10] sm:$0xff]  ;;  %3859 = vset.pattern.permute.xlu2 %v3922_v3  ;;  %3858 = vset.pattern.permute.xlu1 %v3922_v3 }
   0x2   :  { %v790_v2 = vld [vmem:[%s8237_s1] sm:$0xff]  ;;  %3857 = vset.pattern.permute.xlu0 %v3922_v3  ;;  %844 = vperm.xlu2 %3859, %v794_v0  }
   0x3   :  { %834 = vperm.xlu1 %3858, %v792_v1   ;;  %824 = vperm.xlu0 %3857, %v790_v2  }
   0x4   :  { %11 = vsyncpa [#allocation4], 0  ;;  %v795_v4 = vld [vmem:[%s8237_s1 + $0x28] sm:$0xff]  ;;  %v793_v5 = vld [vmem:[%s8237_s1 + $0x18] sm:$0xff]  ;;  %vm2988_vm8 = vcmask 1041409  }
   0x5   :  { %v791_v6 = vld [vmem:[%s8237_s1 + $0x8] sm:$0xff]  ;;  %v798_v7 = vld [vmem:[%s8237_s1 + $0x40] sm:$0xff]  ;;  %v797_v8 = vld [vmem:[%s8237_s1 + $0x38] sm:$0xff] }
   0x6   :  { %v796_v9 = vld [vmem:[%s8237_s1 + $0x30] sm:$0xff]  ;;  %v801_v10 = vld [vmem:[%s8237_s1 + $0x58] sm:$0xff]  ;;  %v799_v12 = vld [vmem:[%s8237_s1 + $0x48] sm:$0xff] }
   0x7   :  { %v800_v11 = vld [vmem:[%s8237_s1 + $0x50] sm:$0xff]  ;;  %v803_v14 = vld [vmem:[%s8237_s1 + $0x68] sm:$0xff]  ;;  %v802_v15 = vld [vmem:[%s8237_s1 + $0x60] sm:$0xff] }
   0x8   :  { %v804_v13 = vld [vmem:[%s8237_s1 + $0x70] sm:$0xff]  ;;  %v807_v16 = vld [vmem:[%s8237_s1 + $0x88] sm:$0xff]  ;;  %v806_v17 = vld [vmem:[%s8237_s1 + $0x80] sm:$0xff] }
   0x9   :  { %v805_v18 = vld [vmem:[%s8237_s1 + $0x78] sm:$0xff]  ;;  %v810_v19 = vld [vmem:[%s8237_s1 + $0xa0] sm:$0xff]  ;;  %v808_v21 = vld [vmem:[%s8237_s1 + $0x90] sm:$0xff] }
   0xa   :  { %849 = vperm.xlu2 %3859, %v795_v4   ;;  %v809_v20 = vld [vmem:[%s8237_s1 + $0x98] sm:$0xff]  ;;  %v812_v23 = vld [vmem:[%s8237_s1 + $0xb0] sm:$0xff]  ;;  %v811_v24 = vld [vmem:[%s8237_s1 + $0xa8] sm:$0xff] }
   0xb   :  { %839 = vperm.xlu1 %3858, %v793_v5   ;;  %829 = vperm.xlu0 %3857, %v791_v6   ;;  %v813_v22 = vld [vmem:[%s8237_s1 + $0xb8] sm:$0xff]  ;;  %v816_v25 = vld [vmem:[%s8237_s1 + $0xd0] sm:$0xff]  ;;  %v815_v26 = vld [vmem:[%s8237_s1 + $0xc8] sm:$0xff] }
   0xc   :  { %v814_v27 = vld [vmem:[%s8237_s1 + $0xc0] sm:$0xff]  ;;  %v819_v28 = vld [vmem:[%s8237_s1 + $0xe8] sm:$0xff]  ;;  %v817_v30 = vld [vmem:[%s8237_s1 + $0xd8] sm:$0xff] }
   0xd   :  { %v818_v29 = vld [vmem:[%s8237_s1 + $0xe0] sm:$0xff]  ;;  %v821_v31 = vld [vmem:[%s8237_s1 + $0xf8] sm:$0xff]  ;;  %v820_v32 = vld [vmem:[%s8237_s1 + $0xf0] sm:$0xff] }
   0xe   :  { %v4053_v33 = vld [vmem:[%s8236_s0 + $0x88] sm:$0xff]  ;;  %v4067_v38 = vld [vmem:[%s8236_s0 + $0x80] sm:$0xff]  ;;  %v4075_v40 = vld [vmem:[%s8236_s0 + $0x90] sm:$0xff] }
   0xf   :  { %v4058_v34 = vld [vmem:[%s8236_s0 + $0x488] sm:$0xff]  ;;  %v313_v35 = vunpack.c.h.bf16 %v4053_v33  ;;  %v4080_v41 = vld [vmem:[%s8236_s0 + $0x98] sm:$0xff]  ;;  %v4090_v43 = vld [vmem:[%s8236_s0 + $0x480] sm:$0xff]  ;;  %v310_v47 = vunpack.c.l.bf16 %v4067_v38  ;;  %v311_v48 = vunpack.c.h.bf16 %v4067_v38  ;;  %v312_v49 = vunpack.c.l.bf16 %v4053_v33 }
  0x10   :  { %v569_v36 = vunpack.c.h.bf16 %v4058_v34  ;;  %v4085_v42 = vld [vmem:[%s8236_s0 + $0xa8] sm:$0xff]  ;;  %v4098_v45 = vld [vmem:[%s8236_s0 + $0x490] sm:$0xff]  ;;  %v4103_v46 = vld [vmem:[%s8236_s0 + $0x498] sm:$0xff]  ;;  %v314_v51 = vunpack.c.l.bf16 %v4075_v40  ;;  %v315_v52 = vunpack.c.h.bf16 %v4075_v40  ;;  %v316_v53 = vunpack.c.l.bf16 %v4080_v41 }
  0x11   :  { %v4111_v50 = vld [vmem:[%s8236_s0 + $0x4a8] sm:$0xff]  ;;  %v4119_v54 = vld [vmem:[%s8236_s0 + $0xa0] sm:$0xff]  ;;  %v321_v55 = vunpack.c.h.bf16 %v4085_v42  ;;  %v317_v56 = vunpack.c.h.bf16 %v4080_v41  ;;  %v566_v57 = vunpack.c.l.bf16 %v4090_v43  ;;  %v567_v58 = vunpack.c.h.bf16 %v4090_v43  ;;  %v4129_v60 = vld [vmem:[%s8236_s0 + $0xb0] sm:$0xff] }
  0x12   :  { %864 = vperm.xlu2 %3859, %v798_v7   ;;  %v568_v59 = vunpack.c.l.bf16 %v4058_v34  ;;  %v4134_v61 = vld [vmem:[%s8236_s0 + $0xb8] sm:$0xff]  ;;  %v570_v62 = vunpack.c.l.bf16 %v4098_v45  ;;  %v571_v63 = vunpack.c.h.bf16 %v4098_v45  ;;  %v572_v0 = vunpack.c.l.bf16 %v4103_v46  ;;  %v4142_v1 = vld [vmem:[%s8236_s0 + $0x4a0] sm:$0xff]  ;;  %v4151_v5 = vld [vmem:[%s8236_s0 + $0x4b0] sm:$0xff] }
  0x13   :  { %859 = vperm.xlu1 %3858, %v797_v8   ;;  %854 = vperm.xlu0 %3857, %v796_v9   ;;  %v577_v2 = vunpack.c.h.bf16 %v4111_v50  ;;  %v573_v3 = vunpack.c.h.bf16 %v4103_v46  ;;  %v4156_v6 = vld [vmem:[%s8236_s0 + $0x4b8] sm:$0xff]  ;;  %v4340_v40 = vld [vmem:[%s8236_s0 + $0x70] sm:$0xff]  ;;  %v4370_v43 = vld [vmem:[%s8236_s0 + $0x460] sm:$0xff]  ;;  %v8665_v8 = vunpack.c.l.bf16 %v4119_v54 }
  0x14   :  { %8658 = vst [vmem:[#allocation22_spill] sm:$0xff] %v4370_v43 }
  0x1a   :  { %879 = vperm.xlu2 %3859, %v801_v10  }
  0x1b   :  { %874 = vperm.xlu1 %3858, %v800_v11   ;;  %869 = vperm.xlu0 %3857, %v799_v12  }
  0x22   :  { %894 = vperm.xlu2 %3859, %v804_v13  }
  0x23   :  { %889 = vperm.xlu1 %3858, %v803_v14   ;;  %884 = vperm.xlu0 %3857, %v802_v15   ;;  %v4170_v14 = vld [vmem:[%s8236_s0] sm:$0xff]  ;;  %v4175_v15 = vld [vmem:[%s8236_s0 + $0x8] sm:$0xff] }
  0x2a   :  { %909 = vperm.xlu2 %3859, %v807_v16  }
  0x2b   :  { %904 = vperm.xlu1 %3858, %v806_v17   ;;  %899 = vperm.xlu0 %3857, %v805_v18   ;;  %v4275_v17 = vld [vmem:[%s8236_s0 + $0x418] sm:$0xff] }
  0x32   :  { %924 = vperm.xlu2 %3859, %v810_v19   ;;  %v4242_v19 = vld [vmem:[%s8236_s0 + $0x10] sm:$0xff] }
  0x33   :  { %919 = vperm.xlu1 %3858, %v809_v20   ;;  %914 = vperm.xlu0 %3857, %v808_v21   ;;  %v4184_v20 = vld [vmem:[%s8236_s0 + $0x40] sm:$0xff]  ;;  %v4189_v21 = vld [vmem:[%s8236_s0 + $0x48] sm:$0xff] }
  0x3a   :  { %939 = vperm.xlu2 %3859, %v813_v22   ;;  %v4256_v22 = vld [vmem:[%s8236_s0 + $0x400] sm:$0xff] }
  0x3b   :  { %934 = vperm.xlu1 %3858, %v812_v23   ;;  %929 = vperm.xlu0 %3857, %v811_v24   ;;  %v4270_v23 = vld [vmem:[%s8236_s0 + $0x410] sm:$0xff] }
  0x42   :  { %954 = vperm.xlu2 %3859, %v816_v25  }
  0x43   :  { %949 = vperm.xlu1 %3858, %v815_v26   ;;  %944 = vperm.xlu0 %3857, %v814_v27   ;;  %v4200_v26 = vld [vmem:[%s8236_s0 + $0x50] sm:$0xff]  ;;  %v4205_v27 = vld [vmem:[%s8236_s0 + $0x58] sm:$0xff] }
  0x4a   :  { %969 = vperm.xlu2 %3859, %v819_v28   ;;  %v4247_v28 = vld [vmem:[%s8236_s0 + $0x18] sm:$0xff] }
  0x4b   :  { %964 = vperm.xlu1 %3858, %v818_v29   ;;  %959 = vperm.xlu0 %3857, %v817_v30   ;;  %v4211_v29 = vld [vmem:[%s8236_s0 + $0x440] sm:$0xff]  ;;  %v4216_v30 = vld [vmem:[%s8236_s0 + $0x448] sm:$0xff] }
  0x4c   :  { %v8672_v9 = vunpack.c.h.bf16 %v4216_v30 }
  0x53   :  { %979 = vperm.xlu1 %3858, %v821_v31   ;;  %974 = vperm.xlu0 %3857, %v820_v32   ;;  %v4261_v32 = vld [vmem:[%s8236_s0 + $0x408] sm:$0xff] }
  0x5c   :  { %v4062_v37 = vpop.permute.xlu2 %844 }
  0x5d   :  { %v4070_v39 = vmul.f32 %v4062_v37, %v313_v35  ;;  %v4093_v44 = vmul.f32 %v4062_v37, %v569_v36  ;;  %v4224_v36 = vld [vmem:[%s8236_s0 + $0x450] sm:$0xff]  ;;  %v297_v35 = vunpack.c.h.bf16 %v4189_v21  ;;  %v4294_v31 = vmul.f32 %v4062_v37, %v310_v47 }
  0x5e   :  { %v4299_v10 = vmul.f32 %v4062_v37, %v311_v48  ;;  %v4304_v18 = vmul.f32 %v4062_v37, %v312_v49  ;;  %v4315_v47 = vmul.f32 %v4062_v37, %v314_v51  ;;  %v4320_v38 = vmul.f32 %v4062_v37, %v315_v52  ;;  %v4335_v49 = vld [vmem:[%s8236_s0 + $0x68] sm:$0xff] }
  0x5f   :  { %8642 = vst [vmem:[#allocation6_spill] sm:$0xff] %v4070_v39  ;;  %v4325_v33 = vmul.f32 %v4062_v37, %v316_v53  ;;  %v4330_v48 = vmul.f32 %v4062_v37, %v317_v56  ;;  %v4345_v51 = vmul.f32 %v4062_v37, %v566_v57  ;;  %v4350_v41 = vmul.f32 %v4062_v37, %v567_v58  ;;  %v4365_v56 = vld [vmem:[%s8236_s0 + $0x78] sm:$0xff] }
  0x60   :  { %8643 = vst [vmem:[#allocation7_spill] sm:$0xff] %v4093_v44  ;;  %v4355_v52 = vmul.f32 %v4062_v37, %v568_v59  ;;  %v4360_v53 = vmul.f32 %v4062_v37, %v570_v62  ;;  %v4375_v34 = vmul.f32 %v4062_v37, %v571_v63  ;;  %v4380_v57 = vmul.f32 %v4062_v37, %v572_v0  ;;  %v4390_v59 = vld [vmem:[%s8236_s0 + $0x468] sm:$0xff]  ;;  %v4396_v62 = vld [vmem:[%s8236_s0 + $0x470] sm:$0xff]  ;;  %v4401_v63 = vld [vmem:[%s8236_s0 + $0x478] sm:$0xff] }
  0x61   :  { %8647 = vst [vmem:[#allocation11_spill] sm:$0xff] %v4294_v31  ;;  %v4385_v58 = vmul.f32 %v4062_v37, %v573_v3  ;;  %v305_v0 = vunpack.c.h.bf16 %v4335_v49  ;;  %v561_v7 = vunpack.c.h.bf16 %v4390_v59  ;;  %v8669_v3 = vunpack.c.l.bf16 %v4085_v42 }
  0x62   :  { %8648 = vst [vmem:[#allocation12_spill] sm:$0xff] %v4299_v10  ;;  %v8675_v42 = vunpack.c.h.bf16 %v4129_v60 }
  0x63   :  { %8649 = vst [vmem:[#allocation13_spill] sm:$0xff] %v4304_v18 }
  0x64   :  { %v4146_v4 = vpop.permute.xlu2 %849  ;;  %8650 = vst [vmem:[#allocation14_spill] sm:$0xff] %v4315_v47  ;;  %v157_v47 = vld [vmem:[%s8236_s0 + $0x438] sm:$0xff] }
  0x65   :  { %v4165_v13 = vmul.f32 %v4146_v4, %v321_v55  ;;  %v4195_v25 = vmul.f32 %v4146_v4, %v577_v2  ;;  %v4229_v55 = vld [vmem:[%s8236_s0 + $0x458] sm:$0xff]  ;;  %v4310_v2 = vld [vmem:[%s8236_s0 + $0x60] sm:$0xff]  ;;  %8651 = vst [vmem:[#allocation15_spill] sm:$0xff] %v4320_v38  ;;  %v8681_v38 = vunpack.c.l.bf16 %v4142_v1  ;;  %v549_v10 = vunpack.c.h.bf16 %v157_v47 }
  0x66   :  { %8652 = vst [vmem:[#allocation16_spill] sm:$0xff] %v4325_v33 }
  0x67   :  { %8644 = vst [vmem:[#allocation8_spill] sm:$0xff] %v4165_v13 }
  0x68   :  { %8645 = vst [vmem:[#allocation9_spill] sm:$0xff] %v4195_v25 }
  0x69   :  { %8653 = vst [vmem:[#allocation17_spill] sm:$0xff] %v4330_v48  ;;  %v4430_v48 = vmul.f32 %v4146_v4, %v8665_v8  ;;  %v27_v8 = vld [vmem:[%s8236_s0 + $0x28] sm:$0xff] }
  0x6a   :  { %8654 = vst [vmem:[#allocation18_spill] sm:$0xff] %v4345_v51 }
  0x6b   :  { %8655 = vst [vmem:[#allocation19_spill] sm:$0xff] %v4350_v41  ;;  %v8698_v41 = vunpack.c.h.bf16 %v4200_v26 }
  0x6c   :  { %v4281_v11 = vpop.permute.xlu2 %864  ;;  %8656 = vst [vmem:[#allocation20_spill] sm:$0xff] %v4355_v52 }
  0x6d   :  { %8646 = vst [vmem:[#allocation10_spill] sm:$0xff] %v4281_v11 }
  0x6e   :  { %8657 = vst [vmem:[#allocation21_spill] sm:$0xff] %v4360_v53  ;;  %v156_v53 = vld [vmem:[%s8236_s0 + $0x430] sm:$0xff] }
  0x6f   :  { %8659 = vst [vmem:[#allocation23_spill] sm:$0xff] %v4375_v34  ;;  %v546_v52 = vunpack.c.l.bf16 %v156_v53  ;;  %v547_v18 = vunpack.c.h.bf16 %v156_v53  ;;  %v8700_v53 = vunpack.c.h.bf16 %v4205_v27 }
  0x70   :  { %8660 = vst [vmem:[#allocation24_spill] sm:$0xff] %v4380_v57  ;;  %v8677_v57 = vunpack.c.l.bf16 %v4134_v61 }
  0x71   :  { %8661 = vst [vmem:[#allocation25_spill] sm:$0xff] %v4385_v58  ;;  %v4440_v58 = vmul.f32 %v4146_v4, %v8669_v3  ;;  %v4460_v3 = vmul.f32 %v4146_v4, %v8675_v42  ;;  %v8683_v42 = vunpack.c.h.bf16 %v4142_v1  ;;  %v155_v1 = vld [vmem:[%s8236_s0 + $0x428] sm:$0xff] }
  0x72   :  { %8662 = vst [vmem:[#allocation26_spill] sm:$0xff] %v4390_v59  ;;  %v4465_v33 = vmul.f32 %v4146_v4, %v8677_v57  ;;  %v8685_v57 = vunpack.c.l.bf16 %v4111_v50  ;;  %v8690_v50 = vunpack.c.h.bf16 %v4151_v5  ;;  %v544_v39 = vunpack.c.l.bf16 %v155_v1 }
  0x73   :  { %8663 = vst [vmem:[#allocation27_spill] sm:$0xff] %v4396_v62 }
  0x74   :  { %8664 = vst [vmem:[#allocation28_spill] sm:$0xff] %v4401_v63  ;;  %v4442_v12 = vpop.permute.xlu2 %879 }
  0x75   :  { %v4407_v16 = vpop.permute.xlu1 %834  ;;  %v4409_v45 = vpop.permute.xlu0 %824  ;;  %8666 = vst [vmem:[#allocation29_spill] sm:$0xff] %v4430_v48 }
  0x76   :  { %v4418_v46 = vmul.f32 %v4407_v16, %v297_v35  ;;  %v8667_v35 = vunpack.c.h.bf16 %v4119_v54  ;;  %8670 = vst [vmem:[#allocation31_spill] sm:$0xff] %v4440_v58  ;;  %v4447_v24 = vmul.f32 %v4407_v16, %v8672_v9  ;;  %v8673_v54 = vunpack.c.l.bf16 %v4129_v60 }
  0x77   :  { %8671 = vst [vmem:[#allocation32_spill] sm:$0xff] %v4442_v12  ;;  %v8679_v9 = vunpack.c.h.bf16 %v4134_v61  ;;  %v4478_v60 = vmul.f32 %v4146_v4, %v8681_v38  ;;  %v4488_v61 = vmul.f32 %v4146_v4, %v8685_v57  ;;  %v8688_v38 = vunpack.c.l.bf16 %v4151_v5 }
  0x78   :  { %v4435_v37 = vmul.f32 %v4146_v4, %v8667_v35  ;;  %v4455_v35 = vmul.f32 %v4146_v4, %v8673_v54  ;;  %8676 = vst [vmem:[#allocation34_spill] sm:$0xff] %v4460_v3  ;;  %v28_v54 = vld [vmem:[%s8236_s0 + $0x30] sm:$0xff]  ;;  %v4483_v3 = vmul.f32 %v4146_v4, %v8683_v42  ;;  %v4507_v57 = vmul.f32 %v4146_v4, %v8690_v50 }
  0x79   :  { %8678 = vst [vmem:[#allocation35_spill] sm:$0xff] %v4465_v33  ;;  %v4470_v34 = vmul.f32 %v4146_v4, %v8679_v9  ;;  %v8687_v9 = vunpack.c.h.bf16 %v4175_v15  ;;  %v29_v33 = vld [vmem:[%s8236_s0 + $0x38] sm:$0xff]  ;;  %v4502_v42 = vmul.f32 %v4146_v4, %v8688_v38  ;;  %v288_v38 = vunpack.c.l.bf16 %v27_v8 }
  0x7a   :  { %8668 = vst [vmem:[#allocation30_spill] sm:$0xff] %v4435_v37  ;;  %v289_v50 = vunpack.c.h.bf16 %v27_v8  ;;  %v291_v25 = vunpack.c.h.bf16 %v28_v54  ;;  %v293_v44 = vunpack.c.h.bf16 %v29_v33 }
  0x7b   :  { %8674 = vst [vmem:[#allocation33_spill] sm:$0xff] %v4455_v35 }
  0x7c   :  { %8680 = vst [vmem:[#allocation36_spill] sm:$0xff] %v4470_v34  ;;  %v985_v34 = vmul.f32 %v4409_v45, %v8687_v9  ;;  %v8692_v9 = vunpack.c.l.bf16 %v4156_v6  ;;  %v4571_v48 = vpop.permute.xlu2 %894 }
  0x7d   :  { %8682 = vst [vmem:[#allocation37_spill] sm:$0xff] %v4478_v60  ;;  %v4525_v13 = vpop.permute.xlu1 %839 }
  0x7e   :  { %8684 = vst [vmem:[#allocation38_spill] sm:$0xff] %v4483_v3  ;;  %v4512_v35 = vmul.f32 %v4146_v4, %v8692_v9  ;;  %v4527_v9 = vpop.permute.xlu0 %829  ;;  %v4530_v58 = vmul.f32 %v4525_v13, %v305_v0  ;;  %v548_v3 = vunpack.c.l.bf16 %v157_v47  ;;  %v4551_v60 = vmul.f32 %v4525_v13, %v561_v7 }
  0x7f   :  { %8686 = vst [vmem:[#allocation39_spill] sm:$0xff] %v4488_v61  ;;  %v545_v61 = vunpack.c.h.bf16 %v155_v1  ;;  %v8699_v1 = vunpack.c.l.bf16 %v4205_v27  ;;  %v8704_v47 = vunpack.c.h.bf16 %v4224_v36 }
  0x80   :  { %8689 = vst [vmem:[#allocation40_spill] sm:$0xff] %v4502_v42  ;;  %v8694_v42 = vunpack.c.h.bf16 %v4261_v32 }
  0x81   :  { %8691 = vst [vmem:[#allocation41_spill] sm:$0xff] %v4507_v57  ;;  %v290_v57 = vunpack.c.l.bf16 %v28_v54  ;;  %v8697_v54 = vunpack.c.l.bf16 %v4200_v26  ;;  %v1004_v0 = vmul.f32 %v4407_v16, %v8699_v1  ;;  %v8703_v26 = vunpack.c.l.bf16 %v4224_v36 }
  0x82   :  { %8693 = vst [vmem:[#allocation42_spill] sm:$0xff] %v4512_v35  ;;  %v4523_v5 = vmul.f32 %v4409_v45, %v8694_v42  ;;  %v292_v35 = vunpack.c.l.bf16 %v29_v33  ;;  %v8696_v42 = vunpack.c.l.bf16 %v4189_v21  ;;  %v1003_v33 = vmul.f32 %v4407_v16, %v8698_v41 }
  0x83   :  { %8695 = vst [vmem:[#allocation43_spill] sm:$0xff] %v4530_v58  ;;  %v1002_v37 = vmul.f32 %v4407_v16, %v8697_v54  ;;  %v1005_v58 = vmul.f32 %v4407_v16, %v8700_v53  ;;  %v8701_v21 = vunpack.c.l.bf16 %v4216_v30  ;;  %v1258_v41 = vmul.f32 %v4407_v16, %v8703_v26 }
  0x84   :  { %v1000_v8 = vmul.f32 %v4407_v16, %v8696_v42  ;;  %8702 = vst [vmem:[#allocation44_spill] sm:$0xff] %v4551_v60  ;;  %v1259_v54 = vmul.f32 %v4407_v16, %v8704_v47  ;;  %v8705_v1 = vunpack.c.l.bf16 %v4175_v15  ;;  %v8706_v53 = vunpack.c.l.bf16 %v4242_v19 }
  0x85   :  { %v1256_v42 = vmul.f32 %v4407_v16, %v8701_v21  ;;  %v8707_v21 = vunpack.c.h.bf16 %v4242_v19  ;;  %v8708_v60 = vunpack.c.l.bf16 %v4247_v28  ;;  %8709 = vst [vmem:[#allocation45_spill] sm:$0xff] %v4571_v48  ;;  %v992_v36 = vmul.f32 %v4527_v9, %v288_v38  ;;  %v4595_v31 = vpop.permute.xlu1 %859 }
  0x86   :  { %v984_v27 = vmul.f32 %v4409_v45, %v8705_v1  ;;  %v986_v30 = vmul.f32 %v4409_v45, %v8706_v53  ;;  %v993_v15 = vmul.f32 %v4527_v9, %v289_v50  ;;  %v994_v47 = vmul.f32 %v4527_v9, %v290_v57  ;;  %8714 = vst [vmem:[#allocation46_spill] sm:$0xff] %v4595_v31 }
  0x87   :  { %v987_v7 = vmul.f32 %v4409_v45, %v8707_v21  ;;  %v988_v26 = vmul.f32 %v4409_v45, %v8708_v60  ;;  %v995_v1 = vmul.f32 %v4527_v9, %v291_v25  ;;  %v996_v53 = vmul.f32 %v4527_v9, %v292_v35 }
  0x88   :  { %v997_v19 = vmul.f32 %v4527_v9, %v293_v44  ;;  %v8710_v21 = vunpack.c.h.bf16 %v4247_v28  ;;  %v8711_v60 = vunpack.c.l.bf16 %v4261_v32  ;;  %v8712_v38 = vunpack.c.l.bf16 %v4270_v23  ;;  %v4597_v32 = vpop.permute.xlu0 %854 }
  0x89   :  { %v1249_v57 = vmul.f32 %v4527_v9, %v545_v61  ;;  %v8713_v25 = vunpack.c.h.bf16 %v4270_v23  ;;  %v1248_v44 = vmul.f32 %v4527_v9, %v544_v39  ;;  %v1250_v28 = vmul.f32 %v4527_v9, %v546_v52  ;;  %8715 = vst [vmem:[#allocation47_spill] sm:$0xff] %v4597_v32 }
  0x8a   :  { %v989_v51 = vmul.f32 %v4409_v45, %v8710_v21  ;;  %v1240_v48 = vmul.f32 %v4409_v45, %v8711_v60  ;;  %v1242_v50 = vmul.f32 %v4409_v45, %v8712_v38  ;;  %v1251_v21 = vmul.f32 %v4527_v9, %v547_v18 }
  0x8b   :  { %v1243_v35 = vmul.f32 %v4409_v45, %v8713_v25  ;;  %v1252_v60 = vmul.f32 %v4527_v9, %v548_v3  ;;  %v1253_v38 = vmul.f32 %v4527_v9, %v549_v10  ;;  %v1568_v63 = vadd.f32 %v992_v36, %v984_v27  ;;  %v4615_v10 = vld [vmem:[%s8236_s0 + $0x20] sm:$0xff] }
  0x8c   :  { %v1605_v61 = vadd.f32 %v993_v15, %v985_v34  ;;  %v1642_v62 = vadd.f32 %v994_v47, %v986_v30  ;;  %v1679_v23 = vadd.f32 %v995_v1, %v987_v7  ;;  %v1716_v59 = vadd.f32 %v996_v53, %v988_v26  ;;  %v4659_v47 = vld [vmem:[%s8236_s0 + $0xd0] sm:$0xff]  ;;  %v4664_v1 = vld [vmem:[%s8236_s0 + $0x1c0] sm:$0xff] }
  0x8d   :  { %v1753_v25 = vadd.f32 %v997_v19, %v989_v51  ;;  %v8716_v39 = vunpack.c.l.bf16 %v4275_v17  ;;  %v8717_v18 = vunpack.c.h.bf16 %v4275_v17  ;;  %v4607_v43 = vadd.f32 %v1568_v63, %v1000_v8  ;;  %v4620_v51 = vld [vmem:[%s8236_s0 + $0x420] sm:$0xff] }
  0x8e   :  { %v4610_v3 = vadd.f32 %v1605_v61, %v4418_v46  ;;  %v4622_v34 = vadd.f32 %v1642_v62, %v1002_v37  ;;  %v4624_v17 = vadd.f32 %v1679_v23, %v1003_v33  ;;  %v4626_v27 = vadd.f32 %v1716_v59, %v1004_v0  ;;  %v4645_v59 = vld [vmem:[%s8236_s0 + $0x160] sm:$0xff] }
  0x8f   :  { %v1244_v52 = vmul.f32 %v4409_v45, %v8716_v39  ;;  %v1245_v31 = vmul.f32 %v4409_v45, %v8717_v18  ;;  %8718 = vst [vmem:[#allocation48_spill] sm:$0xff] %v4607_v43  ;;  %v4628_v63 = vadd.f32 %v1753_v25, %v1005_v58  ;;  %v8724_v46 = vunpack.c.l.bf16 %v4229_v55  ;;  %v4640_v58 = vld [vmem:[%s8236_s0 + $0x100] sm:$0xff] }
  0x90   :  { %8719 = vst [vmem:[#allocation49_spill] sm:$0xff] %v4610_v3  ;;  %v8725_v30 = vunpack.c.h.bf16 %v4229_v55  ;;  %v1864_v26 = vadd.f32 %v1248_v44, %v1240_v48  ;;  %v1901_v36 = vadd.f32 %v1249_v57, %v4523_v5  ;;  %v1938_v15 = vadd.f32 %v1250_v28, %v1242_v50  ;;  %v4682_v57 = vld [vmem:[%s8236_s0 + $0xd8] sm:$0xff]  ;;  %v4686_v44 = vpop.permute.xlu0 %869  ;;  %v4715_v23 = vld [vmem:[%s8236_s0 + $0xe0] sm:$0xff] }
  0x91   :  { %8720 = vst [vmem:[#allocation50_spill] sm:$0xff] %v4622_v34  ;;  %v1260_v8 = vmul.f32 %v4407_v16, %v8724_v46  ;;  %v1975_v62 = vadd.f32 %v1251_v21, %v1243_v35  ;;  %v2012_v37 = vadd.f32 %v1252_v60, %v1244_v52  ;;  %v2049_v33 = vadd.f32 %v1253_v38, %v1245_v31  ;;  %v4654_v31 = vpop.permute.xlu2 %909  ;;  %v4684_v35 = vpop.permute.xlu1 %874  ;;  %v4698_v60 = vld [vmem:[%s8236_s0 + $0x4d0] sm:$0xff]  ;;  %v4703_v38 = vld [vmem:[%s8236_s0 + $0x4d8] sm:$0xff]  ;;  %v4758_v52 = vld [vmem:[%s8236_s0 + $0x5c0] sm:$0xff] }
  0x92   :  { %8721 = vst [vmem:[#allocation51_spill] sm:$0xff] %v4624_v17  ;;  %v1261_v7 = vmul.f32 %v4407_v16, %v8725_v30  ;;  %v286_v55 = vunpack.c.l.bf16 %v4615_v10  ;;  %v542_v48 = vunpack.c.l.bf16 %v4620_v51  ;;  %v4649_v0 = vadd.f32 %v1864_v26, %v1256_v42  ;;  %v4669_v42 = vld [vmem:[%s8236_s0 + $0x500] sm:$0xff] }
  0x93   :  { %8722 = vst [vmem:[#allocation52_spill] sm:$0xff] %v4626_v27  ;;  %v4652_v5 = vadd.f32 %v1901_v36, %v4447_v24  ;;  %v4671_v53 = vadd.f32 %v1938_v15, %v1258_v41  ;;  %v4673_v24 = vadd.f32 %v1975_v62, %v1259_v54  ;;  %v4675_v19 = vadd.f32 %v2012_v37, %v1260_v8  ;;  %v4727_v8 = vld [vmem:[%s8236_s0 + $0x220] sm:$0xff] }
  0x94   :  { %8723 = vst [vmem:[#allocation53_spill] sm:$0xff] %v4628_v63  ;;  %v4677_v50 = vadd.f32 %v2049_v33, %v1261_v7  ;;  %v8736_v28 = vunpack.c.h.bf16 %v4156_v6  ;;  %v287_v54 = vunpack.c.h.bf16 %v4615_v10  ;;  %v543_v21 = vunpack.c.h.bf16 %v4620_v51  ;;  %v4732_v30 = vld [vmem:[%s8236_s0 + $0x4c0] sm:$0xff] }
  0x95   :  { %8726 = vst [vmem:[#allocation54_spill] sm:$0xff] %v4649_v0  ;;  %v342_v61 = vunpack.c.l.bf16 %v4640_v58  ;;  %v366_v25 = vunpack.c.l.bf16 %v4645_v59  ;;  %v990_v18 = vmul.f32 %v4527_v9, %v286_v55  ;;  %v1246_v10 = vmul.f32 %v4527_v9, %v542_v48  ;;  %v4737_v7 = vld [vmem:[%s8236_s0 + $0x4e0] sm:$0xff] }
  0x96   :  { %8727 = vst [vmem:[#allocation55_spill] sm:$0xff] %v4652_v5  ;;  %v4691_v41 = vmul.f32 %v4146_v4, %v8736_v28  ;;  %v4710_v4 = vld [vmem:[%s8236_s0 + $0xc0] sm:$0xff]  ;;  %v8741_v33 = vunpack.c.l.bf16 %v4170_v14  ;;  %v8742_v48 = vunpack.c.l.bf16 %v4256_v22  ;;  %v991_v26 = vmul.f32 %v4527_v9, %v287_v54 }
  0x97   :  { %8728 = vst [vmem:[#allocation56_spill] sm:$0xff] %v4654_v31  ;;  %v4746_v37 = vld [vmem:[%s8236_s0 + $0x560] sm:$0xff]  ;;  %v8747_v39 = vunpack.c.l.bf16 %v4184_v20  ;;  %v8753_v6 = vunpack.c.h.bf16 %v4256_v22  ;;  %v8755_v15 = vunpack.c.h.bf16 %v4310_v2  ;;  %v8759_v22 = vunpack.c.l.bf16 %v4340_v40 }
  0x98   :  { %8729 = vst [vmem:[#allocation57_spill] sm:$0xff] %v4669_v42  ;;  %v982_v55 = vmul.f32 %v4409_v45, %v8741_v33  ;;  %v1238_v28 = vmul.f32 %v4409_v45, %v8742_v48  ;;  %v4763_v62 = vld [vmem:[%s8236_s0 + $0x620] sm:$0xff]  ;;  %v4775_v63 = vpop.permute.xlu0 %884  ;;  %v4780_v48 = vmul.f32 %v4281_v11, %v342_v61  ;;  %v8751_v61 = vunpack.c.h.bf16 %v4184_v20 }
  0x99   :  { %8730 = vst [vmem:[#allocation58_spill] sm:$0xff] %v4671_v53  ;;  %v998_v54 = vmul.f32 %v4407_v16, %v8747_v39  ;;  %v8752_v33 = vunpack.c.h.bf16 %v4211_v29  ;;  %v8810_v17 = vld [vmem:[#allocation18_spill] sm:$0xff] }
  0x9a   :  { %8731 = vst [vmem:[#allocation59_spill] sm:$0xff] %v4673_v24  ;;  %v1494_v46 = vadd.f32 %v990_v18, %v982_v55  ;;  %v1790_v51 = vadd.f32 %v1246_v10, %v1238_v28  ;;  %v8748_v18 = vunpack.c.l.bf16 %v4211_v29  ;;  %v4791_v55 = vpop.permute.xlu2 %924  ;;  %v4794_v28 = vmul.f32 %v4442_v12, %v366_v25  ;;  %v4978_v24 = vld [vmem:[%s8236_s0 + $0x520] sm:$0xff] }
  0x9b   :  { %8732 = vst [vmem:[#allocation60_spill] sm:$0xff] %v4675_v19  ;;  %v999_v36 = vmul.f32 %v4407_v16, %v8751_v61  ;;  %v1255_v39 = vmul.f32 %v4407_v16, %v8752_v33  ;;  %v4811_v25 = vmul.f32 %v4525_v13, %v8755_v15  ;;  %v8757_v29 = vunpack.c.l.bf16 %v4335_v49  ;;  %v8767_v33 = vld [vmem:[#allocation22_spill] sm:$0xff] }
  0x9c   :  { %8733 = vst [vmem:[#allocation61_spill] sm:$0xff] %v4677_v50  ;;  %v4773_v50 = vpop.permute.xlu1 %889  ;;  %v1254_v10 = vmul.f32 %v4407_v16, %v8748_v18  ;;  %v1239_v18 = vmul.f32 %v4409_v45, %v8753_v6  ;;  %v1495_v20 = vadd.f32 %v1494_v46, %v998_v54  ;;  %v8761_v6 = vunpack.c.h.bf16 %v4340_v40  ;;  %v5008_v53 = vld [vmem:[%s8236_s0 + $0x5a0] sm:$0xff] }
  0x9d   :  { %8734 = vst [vmem:[#allocation62_spill] sm:$0xff] %v4684_v35  ;;  %v4816_v16 = vmul.f32 %v4525_v13, %v8757_v29  ;;  %v8763_v46 = vunpack.c.l.bf16 %v4365_v56  ;;  %v8765_v49 = vunpack.c.h.bf16 %v4365_v56  ;;  %v8768_v54 = vunpack.c.l.bf16 %v8767_v33  ;;  %v8774_v29 = vld [vmem:[#allocation27_spill] sm:$0xff]  ;;  %v8825_v3 = vld [vmem:[#allocation46_spill] sm:$0xff] }
  0x9e   :  { %8735 = vst [vmem:[#allocation63_spill] sm:$0xff] %v4686_v44  ;;  %v1791_v61 = vadd.f32 %v1790_v51, %v1254_v10  ;;  %v8769_v40 = vunpack.c.h.bf16 %v8767_v33  ;;  %v606_v34 = vunpack.c.l.bf16 %v4978_v24  ;;  %v5049_v43 = vld [vmem:[%s8236_s0 + $0x660] sm:$0xff] }
  0x9f   :  { %8737 = vst [vmem:[#allocation64_spill] sm:$0xff] %v4691_v41  ;;  %v1247_v41 = vmul.f32 %v4527_v9, %v543_v21  ;;  %v8749_v9 = vunpack.c.h.bf16 %v4170_v14  ;;  %v8754_v14 = vunpack.c.l.bf16 %v4310_v2  ;;  %v4826_v2 = vmul.f32 %v4525_v13, %v8761_v6 }
  0xa0   :  { %8738 = vst [vmem:[#allocation65_spill] sm:$0xff] %v4703_v38  ;;  %v4831_v51 = vmul.f32 %v4525_v13, %v8763_v46  ;;  %v1262_v10 = vmul.f32 %v4525_v13, %v8768_v54  ;;  %v8777_v6 = vunpack.c.h.bf16 %v8774_v29  ;;  %v4905_v27 = vpop.permute.xlu0 %899 }
  0xa1   :  { %8739 = vst [vmem:[#allocation66_spill] sm:$0xff] %v4732_v30  ;;  %v983_v21 = vmul.f32 %v4409_v45, %v8749_v9  ;;  %v1006_v9 = vmul.f32 %v4525_v13, %v8754_v14  ;;  %v4821_v45 = vmul.f32 %v4525_v13, %v8759_v22  ;;  %v1827_v15 = vadd.f32 %v1247_v41, %v1239_v18  ;;  %v8771_v41 = vld [vmem:[#allocation26_spill] sm:$0xff] }
  0xa2   :  { %8740 = vst [vmem:[#allocation67_spill] sm:$0xff] %v4737_v7  ;;  %v8772_v18 = vunpack.c.l.bf16 %v8771_v41  ;;  %v8775_v22 = vunpack.c.l.bf16 %v8774_v29  ;;  %v4859_v46 = vmul.f32 %v4525_v13, %v8777_v6  ;;  %v4881_v29 = vld [vmem:[%s8236_s0 + $0x140] sm:$0xff] }
  0xa3   :  { %8743 = vst [vmem:[#allocation68_spill] sm:$0xff] %v4758_v52  ;;  %v1531_v19 = vadd.f32 %v991_v26, %v983_v21  ;;  %v4836_v26 = vmul.f32 %v4525_v13, %v8765_v49  ;;  %v4844_v21 = vmul.f32 %v4525_v13, %v8769_v40  ;;  %v8779_v49 = vld [vmem:[#allocation28_spill] sm:$0xff]  ;;  %v4886_v6 = vld [vmem:[%s8236_s0 + $0x180] sm:$0xff] }
  0xa4   :  { %8744 = vst [vmem:[#allocation69_spill] sm:$0xff] %v4763_v62  ;;  %v4849_v14 = vmul.f32 %v4525_v13, %v8772_v18  ;;  %v4854_v56 = vmul.f32 %v4525_v13, %v8775_v22  ;;  %v8780_v33 = vunpack.c.l.bf16 %v8779_v49  ;;  %v8782_v40 = vunpack.c.h.bf16 %v8779_v49  ;;  %v4876_v22 = vld [vmem:[%s8236_s0 + $0x120] sm:$0xff] }
  0xa5   :  { %8745 = vst [vmem:[#allocation70_spill] sm:$0xff] %v4773_v50  ;;  %v4871_v18 = vadd.f32 %v1531_v19, %v999_v36  ;;  %v1496_v49 = vadd.f32 %v1495_v20, %v1006_v9  ;;  %v8786_v19 = vunpack.c.l.bf16 %v4659_v47  ;;  %v4915_v9 = vld [vmem:[%s8236_s0 + $0x1e0] sm:$0xff]  ;;  %v8794_v20 = vunpack.c.h.bf16 %v4682_v57 }
  0xa6   :  { %8746 = vst [vmem:[#allocation71_spill] sm:$0xff] %v4775_v63  ;;  %v4864_v54 = vmul.f32 %v4525_v13, %v8780_v33  ;;  %v4869_v41 = vmul.f32 %v4525_v13, %v8782_v40  ;;  %v1792_v13 = vadd.f32 %v1791_v61, %v1262_v10  ;;  %v4888_v33 = vadd.f32 %v1827_v15, %v1255_v39  ;;  %v4910_v39 = vld [vmem:[%s8236_s0 + $0x1a0] sm:$0xff] }
  0xa7   :  { %8750 = vst [vmem:[#allocation72_spill] sm:$0xff] %v4791_v55  ;;  %v4893_v36 = vmul.f32 %v4597_v32, %v8786_v19  ;;  %v8788_v40 = vunpack.c.h.bf16 %v4659_v47  ;;  %v4920_v47 = vld [vmem:[%s8236_s0 + $0x200] sm:$0xff]  ;;  %v4925_v61 = vmul.f32 %v4597_v32, %v8794_v20  ;;  %v8796_v15 = vunpack.c.l.bf16 %v4698_v60 }
  0xa8   :  { %8756 = vst [vmem:[#allocation73_spill] sm:$0xff] %v4811_v25  ;;  %v8798_v10 = vunpack.c.h.bf16 %v4698_v60  ;;  %v4950_v20 = vld [vmem:[%s8236_s0 + $0x260] sm:$0xff]  ;;  %v3814_v25 = vld [vmem:[%s8239_s3 + $0xb8] sm:$0xff] }
  0xa9   :  { %8758 = vst [vmem:[#allocation74_spill] sm:$0xff] %v4816_v16  ;;  %v4957_v60 = vld [vmem:[%s8236_s0 + $0x280] sm:$0xff]  ;;  %3423 = vmatpush.bf16.msra.mxu2 %v3814_v25 }
  0xaa   :  { %8760 = vst [vmem:[#allocation75_spill] sm:$0xff] %v4821_v45  ;;  %v4935_v19 = vmul.f32 %v4597_v32, %v8798_v10  ;;  %v4962_v10 = vld [vmem:[%s8236_s0 + $0x2e0] sm:$0xff]  ;;  %v8817_v45 = vunpack.c.l.bf16 %v4732_v30 }
  0xab   :  { %8762 = vst [vmem:[#allocation76_spill] sm:$0xff] %v4826_v2  ;;  %v4992_v2 = vld [vmem:[%s8236_s0 + $0x540] sm:$0xff] }
  0xac   :  { %8764 = vst [vmem:[#allocation77_spill] sm:$0xff] %v4831_v51  ;;  %v5054_v16 = vld [vmem:[%s8236_s0 + $0x740] sm:$0xff] }
  0xad   :  { %8766 = vst [vmem:[#allocation78_spill] sm:$0xff] %v4836_v26  ;;  %v8790_v26 = vunpack.c.l.bf16 %v4682_v57  ;;  %v4945_v57 = vld [vmem:[%s8236_s0 + $0x240] sm:$0xff]  ;;  %v742_v25 = vunpack.c.l.bf16 %v5054_v16 }
  0xae   :  { %8770 = vst [vmem:[#allocation22_spill] sm:$0xff] %v4844_v21  ;;  %v3798_v21 = vld [vmem:[%s8239_s3 + $0x38] sm:$0xff] }
  0xaf   :  { %8773 = vst [vmem:[#allocation26_spill] sm:$0xff] %v4849_v14  ;;  %3397 = vmatpush.bf16.msra.mxu0 %v3798_v21  ;;  %v3813_v21 = vld [vmem:[%s8239_s3 + $0xb0] sm:$0xff] }
  0xb0   :  { %8776 = vst [vmem:[#allocation27_spill] sm:$0xff] %v4854_v56  ;;  %v8824_v56 = vunpack.c.l.bf16 %v4715_v23  ;;  %3424 = vmatpush.bf16.msra.mxu2 %v3813_v21 }
  0xb1   :  { %8778 = vst [vmem:[#allocation79_spill] sm:$0xff] %v4859_v46  ;;  %v4997_v46 = vld [vmem:[%s8236_s0 + $0x580] sm:$0xff] }
  0xb2   :  { %8781 = vst [vmem:[#allocation28_spill] sm:$0xff] %v4864_v54  ;;  %v4903_v54 = vmul.f32 %v4597_v32, %v8790_v26  ;;  %v4930_v26 = vmul.f32 %v4597_v32, %v8796_v15  ;;  %v4952_v15 = vpop.permute.xlu1 %904  ;;  %v1038_v0 = vmul.f32 %v8825_v3, %v8824_v56  ;;  %v614_v56 = vunpack.c.l.bf16 %v4992_v2 }
  0xb3   :  { %8783 = vst [vmem:[#allocation80_spill] sm:$0xff] %v4869_v41  ;;  %v4898_v41 = vmul.f32 %v4597_v32, %v8788_v40  ;;  %v8800_v40 = vunpack.c.l.bf16 %v4703_v38  ;;  %v8818_v38 = vld [vmem:[#allocation37_spill] sm:$0xff] }
  0xb4   :  { %8784 = vst [vmem:[#allocation81_spill] sm:$0xff] %v4871_v18  ;;  %v3806_v18 = vld [vmem:[%s8239_s3 + $0x78] sm:$0xff] }
  0xb5   :  { %8785 = vst [vmem:[#allocation82_spill] sm:$0xff] %v4888_v33  ;;  %3410 = vmatpush.bf16.msra.mxu1 %v3806_v18  ;;  %v3821_v18 = vld [vmem:[%s8239_s3 + $0xf0] sm:$0xff] }
  0xb6   :  { %8787 = vst [vmem:[#allocation83_spill] sm:$0xff] %v4893_v36 }
  0xb7   :  { %8789 = vst [vmem:[#allocation84_spill] sm:$0xff] %v4898_v41  ;;  %v4973_v41 = vld [vmem:[%s8236_s0 + $0x340] sm:$0xff] }
  0xb8   :  { %8791 = vst [vmem:[#allocation85_spill] sm:$0xff] %v4903_v54  ;;  %v4940_v54 = vmul.f32 %v4597_v32, %v8800_v40  ;;  %v350_v40 = vunpack.c.l.bf16 %v4876_v22 }
  0xb9   :  { %8792 = vst [vmem:[#allocation86_spill] sm:$0xff] %v4905_v27 }
  0xba   :  { %8793 = vst [vmem:[#allocation87_spill] sm:$0xff] %v4920_v47  ;;  %v1054_v33 = vmul.f32 %v4686_v44, %v350_v40  ;;  %v1310_v40 = vmul.f32 %v4686_v44, %v606_v34 }
  0xbb   :  { %8795 = vst [vmem:[#allocation88_spill] sm:$0xff] %v4925_v61  ;;  %v1286_v61 = vmul.f32 %v4597_v32, %v8817_v45  ;;  %v5034_v45 = vld [vmem:[%s8236_s0 + $0x680] sm:$0xff] }
  0xbc   :  { %8797 = vst [vmem:[#allocation89_spill] sm:$0xff] %v4930_v26  ;;  %v8815_v26 = vld [vmem:[#allocation29_spill] sm:$0xff]  ;;  %v694_v34 = vunpack.c.l.bf16 %v5034_v45 }
  0xbd   :  { %8799 = vst [vmem:[#allocation90_spill] sm:$0xff] %v4935_v19  ;;  %v4968_v19 = vpop.permute.xlu2 %939 }
  0xbe   :  { %8801 = vst [vmem:[#allocation91_spill] sm:$0xff] %v4940_v54  ;;  %v8806_v54 = vld [vmem:[#allocation11_spill] sm:$0xff] }
  0xbf   :  { %8802 = vst [vmem:[#allocation92_spill] sm:$0xff] %v4950_v20  ;;  %v1497_v51 = vadd.f32 %v1496_v49, %v8806_v54  ;;  %v1793_v54 = vadd.f32 %v1792_v13, %v8810_v17  ;;  %v4987_v49 = vld [vmem:[%s8236_s0 + $0x3a0] sm:$0xff]  ;;  %v8814_v17 = vunpack.c.l.bf16 %v4710_v4 }
  0xc0   :  { %8803 = vst [vmem:[#allocation93_spill] sm:$0xff] %v4952_v15  ;;  %v5086_v20 = vld [vmem:[%s8236_s0 + $0x2a0] sm:$0xff] }
  0xc1   :  { %8804 = vst [vmem:[#allocation94_spill] sm:$0xff] %v4957_v60  ;;  %v1030_v13 = vmul.f32 %v4597_v32, %v8814_v17  ;;  %v1498_v36 = vadd.f32 %v1497_v51, %v8815_v26  ;;  %v1794_v5 = vadd.f32 %v1793_v54, %v8818_v38  ;;  %v5019_v17 = vld [vmem:[%s8236_s0 + $0x5e0] sm:$0xff]  ;;  %v638_v32 = vunpack.c.l.bf16 %v5008_v53 }
  0xc2   :  { %8805 = vst [vmem:[#allocation95_spill] sm:$0xff] %v4962_v10  ;;  %v5024_v51 = vld [vmem:[%s8236_s0 + $0x600] sm:$0xff] }
  0xc3   :  { %8807 = vst [vmem:[#allocation11_spill] sm:$0xff] %v4968_v19  ;;  %v5029_v26 = vld [vmem:[%s8236_s0 + $0x640] sm:$0xff]  ;;  %v1499_v14 = vadd.f32 %v1498_v36, %v1030_v13  ;;  %v630_v36 = vunpack.c.l.bf16 %v4997_v46  ;;  %v1795_v13 = vadd.f32 %v1794_v5, %v1286_v61 }
  0xc4   :  { %8808 = vst [vmem:[#allocation96_spill] sm:$0xff] %v4973_v41  ;;  %v5039_v38 = vld [vmem:[%s8236_s0 + $0x6e0] sm:$0xff] }
  0xc5   :  { %8809 = vst [vmem:[#allocation97_spill] sm:$0xff] %v4978_v24  ;;  %v5059_v54 = vld [vmem:[%s8236_s0 + $0x7a0] sm:$0xff]  ;;  %v1500_v61 = vadd.f32 %v1499_v14, %v1038_v0  ;;  %v3822_v24 = vld [vmem:[%s8239_s3 + $0xf8] sm:$0xff]  ;;  %v3797_v14 = vld [vmem:[%s8239_s3 + $0x30] sm:$0xff] }
  0xc6   :  { %8811 = vst [vmem:[#allocation18_spill] sm:$0xff] %v4987_v49  ;;  %3436 = vmatpush.bf16.msra.mxu3 %v3822_v24  ;;  %3398 = vmatpush.bf16.msra.mxu0 %v3797_v14 }
  0xc7   :  { %8812 = vst [vmem:[#allocation98_spill] sm:$0xff] %v4992_v2  ;;  %v8829_v2 = vunpack.c.l.bf16 %v4737_v7  ;;  %v1501_v7 = vadd.f32 %v1500_v61, %v4780_v48  ;;  %v718_v48 = vunpack.c.l.bf16 %v5039_v38 }
  0xc8   :  { %8813 = vst [vmem:[#allocation99_spill] sm:$0xff] %v4997_v46  ;;  %v5078_v46 = vpop.permute.xlu0 %914 }
  0xc9   :  { %8816 = vst [vmem:[#allocation29_spill] sm:$0xff] %v5008_v53  ;;  %v1294_v5 = vmul.f32 %v8825_v3, %v8829_v2  ;;  %v8832_v2 = vunpack.c.l.bf16 %v4669_v42  ;;  %v3805_v3 = vld [vmem:[%s8239_s3 + $0x70] sm:$0xff]  ;;  %v8834_v53 = vunpack.c.l.bf16 %v4881_v29  ;;  %v8837_v42 = vunpack.c.l.bf16 %v4910_v39 }
  0xca   :  { %8819 = vst [vmem:[#allocation37_spill] sm:$0xff] %v5019_v17  ;;  %3411 = vmatpush.bf16.msra.mxu1 %v3805_v3  ;;  %3437 = vmatpush.bf16.msra.mxu3 %v3821_v18  ;;  %v3812_v3 = vld [vmem:[%s8239_s3 + $0xa8] sm:$0xff]  ;;  %v1334_v18 = vmul.f32 %v4775_v63, %v630_v36  ;;  %v8847_v36 = vunpack.c.l.bf16 %v4763_v62 }
  0xcb   :  { %8820 = vst [vmem:[#allocation100_spill] sm:$0xff] %v5024_v51  ;;  %v1302_v0 = vmul.f32 %v4281_v11, %v8832_v2  ;;  %v5112_v2 = vld [vmem:[%s8236_s0 + $0x2c0] sm:$0xff]  ;;  %v1062_v44 = vmul.f32 %v4684_v35, %v8834_v53  ;;  %v1502_v11 = vadd.f32 %v1501_v7, %v1054_v33  ;;  %v3796_v7 = vld [vmem:[%s8239_s3 + $0x28] sm:$0xff]  ;;  %v1318_v33 = vmul.f32 %v4684_v35, %v614_v56 }
  0xcc   :  { %8821 = vst [vmem:[#allocation101_spill] sm:$0xff] %v5029_v26  ;;  %v1796_v26 = vadd.f32 %v1795_v13, %v1294_v5  ;;  %v5118_v13 = vpop.permute.xlu1 %919  ;;  %v5123_v5 = vld [vmem:[%s8236_s0 + $0x6a0] sm:$0xff]  ;;  %3399 = vmatpush.bf16.msra.mxu0 %v3796_v7  ;;  %3425 = vmatpush.bf16.msra.mxu2 %v3812_v3 }
  0xcd   :  { %8822 = vst [vmem:[#allocation102_spill] sm:$0xff] %v5034_v45 }
  0xce   :  { %8823 = vst [vmem:[#allocation103_spill] sm:$0xff] %v5039_v38  ;;  %v1797_v45 = vadd.f32 %v1796_v26, %v1302_v0  ;;  %v5129_v38 = vpop.permute.xlu2 %954  ;;  %v1503_v26 = vadd.f32 %v1502_v11, %v1062_v44  ;;  %v5162_v0 = vld [vmem:[%s8236_s0 + $0x6c0] sm:$0xff]  ;;  %v8841_v11 = vunpack.c.l.bf16 %v4957_v60 }
  0xcf   :  { %8826 = vst [vmem:[#allocation104_spill] sm:$0xff] %v5049_v43  ;;  %v1086_v43 = vmul.f32 %v4773_v50, %v8837_v42  ;;  %v1342_v42 = vmul.f32 %v4773_v50, %v638_v32  ;;  %v5197_v32 = vmul.f32 %v4654_v31, %v8847_v36  ;;  %v5239_v3 = vmul.f32 %v5129_v38, %v742_v25 }
  0xd0   :  { %8827 = vst [vmem:[#allocation105_spill] sm:$0xff] %v5054_v16  ;;  %v8836_v16 = vunpack.c.l.bf16 %v4886_v6  ;;  %v5168_v44 = vmul.f32 %v4791_v55, %v8841_v11  ;;  %v1504_v14 = vadd.f32 %v1503_v26, %v4794_v28  ;;  %v5184_v11 = vld [vmem:[%s8236_s0 + $0x300] sm:$0xff]  ;;  %v5200_v28 = vmul.f32 %v4791_v55, %v694_v34 }
  0xd1   :  { %8828 = vst [vmem:[#allocation106_spill] sm:$0xff] %v5059_v54  ;;  %v8838_v54 = vunpack.c.l.bf16 %v4664_v1  ;;  %v3795_v26 = vld [vmem:[%s8239_s3 + $0x20] sm:$0xff] }
  0xd2   :  { %8830 = vst [vmem:[#allocation107_spill] sm:$0xff] %v5078_v46  ;;  %v1078_v24 = vmul.f32 %v4775_v63, %v8836_v16  ;;  %v3804_v16 = vld [vmem:[%s8239_s3 + $0x68] sm:$0xff]  ;;  %v3811_v55 = vld [vmem:[%s8239_s3 + $0xa0] sm:$0xff]  ;;  %3400 = vmatpush.bf16.msra.mxu0 %v3795_v26  ;;  %v3810_v26 = vld [vmem:[%s8239_s3 + $0x98] sm:$0xff] }
  0xd3   :  { %8831 = vst [vmem:[#allocation108_spill] sm:$0xff] %v5086_v20  ;;  %v8840_v20 = vunpack.c.l.bf16 %v4727_v8  ;;  %3412 = vmatpush.bf16.msra.mxu1 %v3804_v16  ;;  %v5233_v34 = vld [vmem:[%s8236_s0 + $0x720] sm:$0xff]  ;;  %3426 = vmatpush.bf16.msra.mxu2 %v3811_v55  ;;  %v8865_v55 = vld [vmem:[#allocation92_spill] sm:$0xff] }
  0xd4   :  { %8833 = vst [vmem:[#allocation109_spill] sm:$0xff] %v5118_v13  ;;  %v8839_v13 = vld [vmem:[#allocation45_spill] sm:$0xff]  ;;  %v1505_v16 = vadd.f32 %v1504_v14, %v1078_v24  ;;  %v8855_v24 = vunpack.c.l.bf16 %v4915_v9 }
  0xd5   :  { %8835 = vst [vmem:[#allocation110_spill] sm:$0xff] %v5129_v38  ;;  %v1094_v61 = vmul.f32 %v8839_v13, %v8838_v54  ;;  %v5143_v53 = vmul.f32 %v4654_v31, %v8840_v20  ;;  %v1798_v54 = vadd.f32 %v1797_v45, %v1310_v40  ;;  %v3820_v20 = vld [vmem:[%s8239_s3 + $0xe8] sm:$0xff]  ;;  %v8842_v45 = vunpack.c.l.bf16 %v4962_v10 }
  0xd6   :  { %v8844_v40 = vunpack.c.l.bf16 %v4746_v37  ;;  %8848 = vst [vmem:[#allocation113_spill] sm:$0xff] %v5200_v28  ;;  %3438 = vmatpush.bf16.msra.mxu3 %v3820_v20  ;;  %v8859_v20 = vunpack.c.l.bf16 %v5024_v51  ;;  %v8901_v51 = vld [vmem:[#allocation62_spill] sm:$0xff] }
  0xd7   :  { %v5173_v56 = vmul.f32 %v4968_v19, %v8842_v45  ;;  %v1799_v35 = vadd.f32 %v1798_v54, %v1318_v33  ;;  %v5189_v45 = vld [vmem:[%s8236_s0 + $0x320] sm:$0xff]  ;;  %v5203_v33 = vmul.f32 %v4968_v19, %v718_v48  ;;  %v8851_v48 = vunpack.c.l.bf16 %v4973_v41  ;;  %v5222_v19 = vpop.permute.xlu0 %929  ;;  %8854 = vst [vmem:[#allocation118_spill] sm:$0xff] %v5233_v34  ;;  %3427 = vmatpush.bf16.msra.mxu2 %v3810_v26 }
  0xd8   :  { %v1326_v21 = vmul.f32 %v4442_v12, %v8844_v40  ;;  %8845 = vst [vmem:[#allocation112_spill] sm:$0xff] %v5189_v45  ;;  %v3803_v54 = vld [vmem:[%s8239_s3 + $0x60] sm:$0xff]  ;;  %v1366_v14 = vmul.f32 %v4952_v15, %v8859_v20 }
  0xd9   :  { %8843 = vst [vmem:[#allocation111_spill] sm:$0xff] %v5173_v56  ;;  %v8846_v56 = vunpack.c.l.bf16 %v4758_v52  ;;  %v5220_v7 = vmul.f32 %v5129_v38, %v8851_v48  ;;  %v5255_v38 = vpop.permute.xlu1 %934  ;;  %3413 = vmatpush.bf16.msra.mxu1 %v3803_v54  ;;  %v3818_v54 = vld [vmem:[%s8239_s3 + $0xd8] sm:$0xff]  ;;  %v8906_v52 = vld [vmem:[#allocation70_spill] sm:$0xff] }
  0xda   :  { %8849 = vst [vmem:[#allocation114_spill] sm:$0xff] %v5203_v33  ;;  %v1800_v36 = vadd.f32 %v1799_v35, %v1326_v21  ;;  %v3819_v33 = vld [vmem:[%s8239_s3 + $0xe0] sm:$0xff]  ;;  %v1102_v35 = vmul.f32 %v4905_v27, %v8855_v24  ;;  %v8857_v21 = vunpack.c.l.bf16 %v4920_v47  ;;  %v5265_v24 = vpop.permute.xlu2 %969 }
  0xdb   :  { %v1350_v40 = vmul.f32 %v8839_v13, %v8846_v56  ;;  %v5214_v56 = vld [vmem:[%s8236_s0 + $0x700] sm:$0xff]  ;;  %8852 = vst [vmem:[#allocation116_spill] sm:$0xff] %v5220_v7  ;;  %v8858_v7 = vunpack.c.l.bf16 %v5019_v17  ;;  %v1506_v13 = vadd.f32 %v1505_v16, %v1086_v43  ;;  %v3802_v43 = vld [vmem:[%s8239_s3 + $0x58] sm:$0xff]  ;;  %3439 = vmatpush.bf16.msra.mxu3 %v3819_v33  ;;  %v8862_v33 = vunpack.c.l.bf16 %v4987_v49 }
  0xdc   :  { %8850 = vst [vmem:[#allocation115_spill] sm:$0xff] %v5214_v56  ;;  %v1110_v48 = vmul.f32 %v4952_v15, %v8857_v21  ;;  %v1801_v28 = vadd.f32 %v1800_v36, %v1334_v18  ;;  %v8871_v18 = vld [vmem:[#allocation101_spill] sm:$0xff] }
  0xdd   :  { %8853 = vst [vmem:[#allocation117_spill] sm:$0xff] %v5222_v19  ;;  %v1358_v31 = vmul.f32 %v4905_v27, %v8858_v7  ;;  %v3794_v7 = vld [vmem:[%s8239_s3 + $0x18] sm:$0xff]  ;;  %v1507_v16 = vadd.f32 %v1506_v13, %v1094_v61  ;;  %3414 = vmatpush.bf16.msra.mxu1 %v3802_v43  ;;  %v5293_v25 = vmul.f32 %v5265_v24, %v8862_v33  ;;  %v3817_v43 = vld [vmem:[%s8239_s3 + $0xd0] sm:$0xff]  ;;  %v8868_v61 = vld [vmem:[#allocation106_spill] sm:$0xff]  ;;  %v8884_v13 = vunpack.c.h.bf16 %v4710_v4 }
  0xde   :  { %8856 = vst [vmem:[#allocation119_spill] sm:$0xff] %v5239_v3  ;;  %v1802_v36 = vadd.f32 %v1801_v28, %v1342_v42  ;;  %3401 = vmatpush.bf16.msra.mxu0 %v3794_v7  ;;  %v3809_v7 = vld [vmem:[%s8239_s3 + $0x90] sm:$0xff]  ;;  %v8864_v28 = vunpack.c.l.bf16 %v4945_v57  ;;  %v8869_v20 = vunpack.c.l.bf16 %v8868_v61  ;;  %v8877_v47 = vld [vmem:[#allocation97_spill] sm:$0xff] }
  0xdf   :  { %8860 = vst [vmem:[#allocation120_spill] sm:$0xff] %v5255_v38  ;;  %v1508_v42 = vadd.f32 %v1507_v16, %v1102_v35  ;;  %v3793_v35 = vld [vmem:[%s8239_s3 + $0x10] sm:$0xff]  ;;  %3440 = vmatpush.bf16.msra.mxu3 %v3818_v54  ;;  %v5321_v60 = vpop.permute.xlu0 %944  ;;  %3428 = vmatpush.bf16.msra.mxu2 %v3809_v7 }
  0xe0   :  { %8861 = vst [vmem:[#allocation121_spill] sm:$0xff] %v5265_v24  ;;  %v3801_v16 = vld [vmem:[%s8239_s3 + $0x50] sm:$0xff]  ;;  %v1803_v50 = vadd.f32 %v1802_v36, %v1350_v40  ;;  %v1126_v33 = vmul.f32 %v5078_v46, %v8864_v28  ;;  %v8866_v40 = vunpack.c.l.bf16 %v8865_v55  ;;  %v8867_v36 = vld [vmem:[#allocation109_spill] sm:$0xff]  ;;  %v5312_v26 = vmul.f32 %v5265_v24, %v8869_v20  ;;  %v8878_v20 = vld [vmem:[#allocation98_spill] sm:$0xff] }
  0xe1   :  { %8863 = vst [vmem:[#allocation122_spill] sm:$0xff] %v5293_v25  ;;  %v8870_v54 = vld [vmem:[#allocation67_spill] sm:$0xff]  ;;  %v8872_v25 = vunpack.c.l.bf16 %v8871_v18  ;;  %v8873_v3 = vld [vmem:[#allocation104_spill] sm:$0xff]  ;;  %v1509_v28 = vadd.f32 %v1508_v42, %v1110_v48  ;;  %3415 = vmatpush.bf16.msra.mxu1 %v3801_v16  ;;  %v8910_v55 = vld [vmem:[#allocation45_spill] sm:$0xff] }
  0xe2   :  { %v1134_v21 = vmul.f32 %v8867_v36, %v8866_v40  ;;  %v8874_v34 = vunpack.c.l.bf16 %v8873_v3  ;;  %v1804_v10 = vadd.f32 %v1803_v50, %v1358_v31  ;;  %8875 = vst [vmem:[#allocation67_spill] sm:$0xff] %v5321_v60  ;;  %v8876_v40 = vld [vmem:[#allocation57_spill] sm:$0xff]  ;;  %3402 = vmatpush.bf16.msra.mxu0 %v3793_v35  ;;  %v3800_v31 = vld [vmem:[%s8239_s3 + $0x48] sm:$0xff] }
  0xe3   :  { %v1382_v41 = vmul.f32 %v5078_v46, %v8872_v25  ;;  %v3792_v25 = vld [vmem:[%s8239_s3 + $0x8] sm:$0xff]  ;;  %v1510_v50 = vadd.f32 %v1509_v28, %v5143_v53  ;;  %3441 = vmatpush.bf16.msra.mxu3 %v3817_v43  ;;  %v8886_v53 = vunpack.c.h.bf16 %v4715_v23  ;;  %v3846_v28 = vld [vmem:[%s8239_s3 + $0x1b8] sm:$0xff] }
  0xe4   :  { %v1390_v30 = vmul.f32 %v8867_v36, %v8874_v34  ;;  %v1805_v34 = vadd.f32 %v1804_v10, %v1366_v14  ;;  %v3808_v35 = vld [vmem:[%s8239_s3 + $0x88] sm:$0xff]  ;;  %v5346_v14 = vpop.permute.xlu1 %949 }
  0xe5   :  { %v3816_v16 = vld [vmem:[%s8239_s3 + $0xc8] sm:$0xff]  ;;  %8881 = vst [vmem:[#allocation57_spill] sm:$0xff] %v5346_v14  ;;  %v1511_v7 = vadd.f32 %v1510_v50, %v1126_v33  ;;  %3416 = vmatpush.bf16.msra.mxu1 %v3800_v31  ;;  %v3799_v33 = vld [vmem:[%s8239_s3 + $0x40] sm:$0xff]  ;;  %v8888_v50 = vld [vmem:[#allocation108_spill] sm:$0xff]  ;;  %3429 = vmatpush.bf16.msra.mxu2 %v3808_v35  ;;  %v8894_v35 = vunpack.c.h.bf16 %v4876_v22 }
  0xe6   :  { %v1806_v43 = vadd.f32 %v1805_v34, %v5197_v32  ;;  %v8885_v24 = vld [vmem:[#allocation47_spill] sm:$0xff]  ;;  %v8887_v10 = vld [vmem:[#allocation46_spill] sm:$0xff]  ;;  %3403 = vmatpush.bf16.msra.mxu0 %v3792_v25  ;;  %v8889_v4 = vunpack.c.l.bf16 %v8888_v50 }
  0xe7   :  { %v5356_v17 = vmul.f32 %v8885_v24, %v8884_v13  ;;  %v5361_v62 = vmul.f32 %v8887_v10, %v8886_v53  ;;  %v3791_v32 = vld [vmem:[%s8239_s3] sm:$0xff]  ;;  %v1512_v34 = vadd.f32 %v1511_v7, %v1134_v21  ;;  %3442 = vmatpush.bf16.msra.mxu3 %v3816_v16  ;;  %v8890_v53 = vunpack.c.l.bf16 %v5112_v2  ;;  %v8895_v16 = vld [vmem:[#allocation63_spill] sm:$0xff] }
  0xe8   :  { %v1150_v13 = vmul.f32 %v5222_v19, %v8889_v4  ;;  %v1807_v45 = vadd.f32 %v1806_v43, %v1382_v41  ;;  %v3807_v25 = vld [vmem:[%s8239_s3 + $0x80] sm:$0xff]  ;;  %v8892_v41 = vunpack.c.h.bf16 %v4640_v58  ;;  %v5391_v43 = vmul.f32 %v8895_v16, %v8894_v35  ;;  %v5396_v23 = vld [vmem:[%s8236_s0 + $0x108] sm:$0xff]  ;;  %v3838_v58 = vld [vmem:[%s8239_s3 + $0x178] sm:$0xff] }
  0xe9   :  { %v3815_v31 = vld [vmem:[%s8239_s3 + $0xc0] sm:$0xff]  ;;  %v1158_v15 = vmul.f32 %v5255_v38, %v8890_v53  ;;  %8896 = vst [vmem:[#allocation97_spill] sm:$0xff] %v5396_v23  ;;  %v3830_v53 = vld [vmem:[%s8239_s3 + $0x138] sm:$0xff]  ;;  %v8898_v35 = vunpack.c.l.bf16 %v5162_v0  ;;  %v1513_v36 = vadd.f32 %v1512_v34, %v5168_v44  ;;  %v5414_v42 = vld [vmem:[%s8236_s0 + $0x168] sm:$0xff]  ;;  %3417 = vmatpush.bf16.msra.mxu1 %v3799_v33  ;;  %3430 = vmatpush.bf16.msra.mxu2 %v3807_v25  ;;  %v8914_v33 = vunpack.c.h.bf16 %v4727_v8 }
  0xea   :  { %v8893_v21 = vld [vmem:[#allocation10_spill] sm:$0xff]  ;;  %v1808_v48 = vadd.f32 %v1807_v45, %v1390_v30  ;;  %8899 = vst [vmem:[#allocation98_spill] sm:$0xff] %v5414_v42  ;;  %v8902_v30 = vunpack.c.h.bf16 %v4645_v59  ;;  %v8903_v45 = vunpack.c.h.bf16 %v4886_v6  ;;  %3404 = vmatpush.bf16.msra.mxu0 %v3791_v32  ;;  %v8909_v6 = vunpack.c.h.bf16 %v4664_v1  ;;  %v8918_v1 = vld [vmem:[#allocation81_spill] sm:$0xff]  ;;  %v3829_v25 = vld [vmem:[%s8239_s3 + $0x130] sm:$0xff] }
  0xeb   :  { %v5386_v7 = vmul.f32 %v8893_v21, %v8892_v41  ;;  %v8897_v41 = vunpack.c.l.bf16 %v5123_v5  ;;  %v1414_v4 = vmul.f32 %v5255_v38, %v8898_v35  ;;  %v8905_v38 = vunpack.c.h.bf16 %v4910_v39  ;;  %3443 = vmatpush.bf16.msra.mxu3 %v3815_v31  ;;  %v3837_v31 = vld [vmem:[%s8239_s3 + $0x170] sm:$0xff]  ;;  %v8919_v39 = vld [vmem:[#allocation22_spill] sm:$0xff] }
  0xec   :  { %v5430_v44 = vmul.f32 %v4442_v12, %v8902_v30  ;;  %v5435_v34 = vmul.f32 %v4775_v63, %v8903_v45  ;;  %v1514_v59 = vadd.f32 %v1513_v36, %v1150_v13  ;;  %v5451_v45 = vmul.f32 %v8910_v55, %v8909_v6  ;;  %v8915_v36 = vld [vmem:[#allocation56_spill] sm:$0xff]  ;;  %v8920_v23 = vld [vmem:[#allocation82_spill] sm:$0xff]  ;;  %v8927_v6 = vld [vmem:[#allocation111_spill] sm:$0xff] }
  0xed   :  { %v1406_v22 = vmul.f32 %v5222_v19, %v8897_v41  ;;  %v3854_v41 = vld [vmem:[%s8239_s3 + $0x1f8] sm:$0xff]  ;;  %v8900_v19 = vunpack.c.h.bf16 %v4881_v29  ;;  %v5440_v49 = vmul.f32 %v8906_v52, %v8905_v38  ;;  %v5445_v29 = vld [vmem:[%s8236_s0 + $0x360] sm:$0xff]  ;;  %v8913_v38 = vunpack.c.l.bf16 %v5184_v11  ;;  %3462 = vmatpush.bf16.msrb.mxu1 %v3838_v58  ;;  %3475 = vmatpush.bf16.msrb.mxu2 %v3846_v28  ;;  %v3853_v58 = vld [vmem:[%s8239_s3 + $0x1f0] sm:$0xff] }
  0xee   :  { %8904 = vst [vmem:[#allocation123_spill] sm:$0xff] %v5435_v34  ;;  %v5454_v34 = vpop.permute.xlu0 %959  ;;  %v5462_v13 = vmul.f32 %v8915_v36, %v8914_v33  ;;  %3449 = vmatpush.bf16.msrb.mxu0 %v3830_v53  ;;  %v3845_v53 = vld [vmem:[%s8239_s3 + $0x1b0] sm:$0xff]  ;;  %v5564_v50 = vld [vmem:[%s8236_s0 + $0x7c0] sm:$0xff] }
  0xef   :  { %v5425_v35 = vmul.f32 %v8901_v51, %v8900_v19  ;;  %8907 = vst [vmem:[#allocation124_spill] sm:$0xff] %v5445_v29  ;;  %v8908_v19 = vld [vmem:[#allocation113_spill] sm:$0xff]  ;;  %v1174_v32 = vmul.f32 %v5321_v60, %v8913_v38  ;;  %v1515_v38 = vadd.f32 %v1514_v59, %v1158_v15  ;;  %3488 = vmatpush.bf16.msrb.mxu3 %v3854_v41  ;;  %v8928_v28 = vld [vmem:[#allocation12_spill] sm:$0xff] }
  0xf0   :  { %v1809_v30 = vadd.f32 %v1808_v48, %v8908_v19  ;;  %8911 = vst [vmem:[#allocation113_spill] sm:$0xff] %v5451_v45  ;;  %v8917_v48 = vld [vmem:[#allocation73_spill] sm:$0xff] }
  0xf1   :  { %8912 = vst [vmem:[#allocation125_spill] sm:$0xff] %v5454_v34  ;;  %v1533_v19 = vadd.f32 %v8918_v1, %v8917_v48  ;;  %v5485_v15 = vld [vmem:[%s8236_s0 + $0x760] sm:$0xff]  ;;  %v8926_v48 = vunpack.c.l.bf16 %v5214_v56  ;;  %v1516_v59 = vadd.f32 %v1515_v38, %v8927_v6  ;;  %3463 = vmatpush.bf16.msrb.mxu1 %v3837_v31  ;;  %3476 = vmatpush.bf16.msrb.mxu2 %v3845_v53 }
  0xf2   :  { %8916 = vst [vmem:[#allocation126_spill] sm:$0xff] %v5462_v13  ;;  %v1810_v8 = vadd.f32 %v1809_v30, %v1406_v22  ;;  %v1829_v13 = vadd.f32 %v8920_v23, %v8919_v39  ;;  %v494_v22 = vunpack.c.l.bf16 %v5445_v29  ;;  %v8922_v23 = vunpack.c.h.bf16 %v4915_v9  ;;  %v5495_v30 = vpop.permute.xlu1 %964  ;;  %v5500_v39 = vld [vmem:[%s8236_s0 + $0x380] sm:$0xff]  ;;  %v3828_v9 = vld [vmem:[%s8239_s3 + $0x128] sm:$0xff]  ;;  %3450 = vmatpush.bf16.msrb.mxu0 %v3829_v25 }
  0xf3   :  { %8921 = vst [vmem:[#allocation73_spill] sm:$0xff] %v5485_v15  ;;  %v1430_v1 = vmul.f32 %v5321_v60, %v8926_v48  ;;  %v1534_v42 = vadd.f32 %v1533_v19, %v8928_v28  ;;  %v8931_v29 = vld [vmem:[#allocation87_spill] sm:$0xff]  ;;  %v8933_v56 = vld [vmem:[#allocation93_spill] sm:$0xff]  ;;  %v1517_v38 = vadd.f32 %v1516_v59, %v1174_v32  ;;  %v8938_v31 = vld [vmem:[#allocation30_spill] sm:$0xff]  ;;  %3489 = vmatpush.bf16.msrb.mxu3 %v3853_v58  ;;  %v502_v32 = vunpack.c.l.bf16 %v5500_v39 }
  0xf4   :  { %v5493_v41 = vmul.f32 %v4905_v27, %v8922_v23  ;;  %8924 = vst [vmem:[#allocation22_spill] sm:$0xff] %v5495_v30  ;;  %v1811_v33 = vadd.f32 %v1810_v8, %v1414_v4  ;;  %v8929_v23 = vld [vmem:[#allocation112_spill] sm:$0xff]  ;;  %v8935_v48 = vld [vmem:[#allocation19_spill] sm:$0xff]  ;;  %v5526_v19 = vld [vmem:[%s8236_s0 + $0x3c0] sm:$0xff] }
  0xf5   :  { %8925 = vst [vmem:[#allocation82_spill] sm:$0xff] %v5500_v39  ;;  %v8930_v61 = vunpack.c.l.bf16 %v8929_v23  ;;  %v1830_v6 = vadd.f32 %v1829_v13, %v8935_v48  ;;  %v3836_v4 = vld [vmem:[%s8239_s3 + $0x168] sm:$0xff]  ;;  %v1535_v8 = vadd.f32 %v1534_v42, %v8938_v31  ;;  %v5545_v48 = vld [vmem:[%s8236_s0 + $0x3e0] sm:$0xff]  ;;  %v8941_v42 = vld [vmem:[#allocation72_spill] sm:$0xff]  ;;  %v1198_v39 = vmul.f32 %v5454_v34, %v494_v22 }
  0xf6   :  { %8923 = vst [vmem:[#allocation81_spill] sm:$0xff] %v5493_v41  ;;  %v8932_v41 = vunpack.c.h.bf16 %v8931_v29  ;;  %v750_v29 = vunpack.c.l.bf16 %v5485_v15  ;;  %v8937_v13 = vld [vmem:[#allocation114_spill] sm:$0xff]  ;;  %v8943_v58 = vld [vmem:[#allocation95_spill] sm:$0xff]  ;;  %3451 = vmatpush.bf16.msrb.mxu0 %v3828_v9  ;;  %3464 = vmatpush.bf16.msrb.mxu1 %v3836_v4  ;;  %v774_v4 = vunpack.c.l.bf16 %v5564_v50 }
  0xf7   :  { %v1182_v3 = vmul.f32 %v5346_v14, %v8930_v61  ;;  %8936 = vst [vmem:[#allocation12_spill] sm:$0xff] %v5526_v19  ;;  %v5531_v61 = vld [vmem:[%s8236_s0 + $0x780] sm:$0xff]  ;;  %v1812_v25 = vadd.f32 %v1811_v33, %v8937_v13  ;;  %v3844_v28 = vld [vmem:[%s8239_s3 + $0x1a8] sm:$0xff]  ;;  %v8944_v13 = vunpack.c.h.bf16 %v8943_v58 }
  0xf8   :  { %v5517_v45 = vmul.f32 %v8933_v56, %v8932_v41  ;;  %v3852_v41 = vld [vmem:[%s8239_s3 + $0x1e8] sm:$0xff]  ;;  %8949 = vst [vmem:[#allocation19_spill] sm:$0xff] %v5564_v50  ;;  %v3827_v22 = vld [vmem:[%s8239_s3 + $0x120] sm:$0xff]  ;;  %3477 = vmatpush.bf16.msrb.mxu2 %v3844_v28 }
  0xf9   :  { %v8939_v33 = vld [vmem:[#allocation94_spill] sm:$0xff]  ;;  %v8945_v31 = vld [vmem:[#allocation11_spill] sm:$0xff]  ;;  %v1813_v58 = vadd.f32 %v1812_v25, %v1430_v1  ;;  %v1454_v1 = vmul.f32 %v5454_v34, %v750_v29  ;;  %3490 = vmatpush.bf16.msrb.mxu3 %v3852_v41  ;;  %v1206_v41 = vmul.f32 %v5495_v30, %v502_v32  ;;  %v8957_v34 = vunpack.c.h.bf16 %v8876_v40 }
  0xfa   :  { %8934 = vst [vmem:[#allocation111_spill] sm:$0xff] %v5517_v45  ;;  %v8940_v59 = vunpack.c.h.bf16 %v8939_v33  ;;  %v5556_v18 = vmul.f32 %v8945_v31, %v8944_v13  ;;  %v8947_v60 = vld [vmem:[#allocation66_spill] sm:$0xff]  ;;  %v518_v13 = vunpack.c.l.bf16 %v5526_v19  ;;  %3452 = vmatpush.bf16.msrb.mxu0 %v3827_v22 }
  0xfb   :  { %v8948_v15 = vunpack.c.h.bf16 %v8947_v60  ;;  %v8950_v33 = vld [vmem:[#allocation118_spill] sm:$0xff]  ;;  %v1536_v60 = vadd.f32 %v1535_v8, %v5356_v17  ;;  %v5583_v17 = vpop.permute.xlu0 %974  ;;  %v8955_v8 = vunpack.c.h.bf16 %v8870_v54  ;;  %v1303_v50 = vmul.f32 %v8893_v21, %v8957_v34 }
  0xfc   :  { %v5551_v53 = vmul.f32 %v8941_v42, %v8940_v59  ;;  %8946 = vst [vmem:[#allocation87_spill] sm:$0xff] %v5556_v18  ;;  %v8951_v36 = vunpack.c.l.bf16 %v8950_v33  ;;  %v758_v18 = vunpack.c.l.bf16 %v5531_v61  ;;  %v3843_v9 = vld [vmem:[%s8239_s3 + $0x1a0] sm:$0xff]  ;;  %v5609_v54 = vld [vmem:[%s8236_s0 + $0x1c8] sm:$0xff]  ;;  %v1222_v40 = vmul.f32 %v5583_v17, %v518_v13 }
  0xfd   :  { %v1287_v45 = vmul.f32 %v8885_v24, %v8948_v15  ;;  %v8952_v15 = vld [vmem:[#allocation38_spill] sm:$0xff]  ;;  %8954 = vst [vmem:[#allocation114_spill] sm:$0xff] %v5583_v17  ;;  %v1295_v29 = vmul.f32 %v8887_v10, %v8955_v8  ;;  %3478 = vmatpush.bf16.msrb.mxu2 %v3843_v9  ;;  %v8961_v8 = vld [vmem:[#allocation96_spill] sm:$0xff] }
  0xfe   :  { %8942 = vst [vmem:[#allocation112_spill] sm:$0xff] %v5551_v53  ;;  %v1438_v59 = vmul.f32 %v5346_v14, %v8951_v36  ;;  %v1518_v53 = vadd.f32 %v1517_v38, %v1182_v3  ;;  %v1831_v24 = vadd.f32 %v1830_v6, %v8952_v15  ;;  %v3835_v36 = vld [vmem:[%s8239_s3 + $0x160] sm:$0xff]  ;;  %v526_v3 = vunpack.c.l.bf16 %v5545_v48  ;;  %v8953_v38 = vld [vmem:[#allocation116_spill] sm:$0xff]  ;;  %v8956_v15 = vld [vmem:[#allocation119_spill] sm:$0xff] }
  0xff   :  { %v3851_v6 = vld [vmem:[%s8239_s3 + $0x1e0] sm:$0xff]  ;;  %8958 = vst [vmem:[#allocation30_spill] sm:$0xff] %v5609_v54  ;;  %3465 = vmatpush.bf16.msrb.mxu1 %v3835_v36  ;;  %v9015_v54 = vld [vmem:[#allocation104_spill] sm:$0xff] }
 0x100   :  { %v1519_v25 = vadd.f32 %v1518_v53, %v8953_v38  ;;  %v1814_v19 = vadd.f32 %v1813_v58, %v1438_v59  ;;  %v1537_v53 = vadd.f32 %v1536_v60, %v5361_v62  ;;  %v1832_v59 = vadd.f32 %v1831_v24, %v1287_v45  ;;  %v5599_v28 = vld [vmem:[%s8236_s0 + $0x7e0] sm:$0xff]  ;;  %v5616_v60 = vpop.permute.xlu1 %979  ;;  %3491 = vmatpush.bf16.msrb.mxu3 %v3851_v6 }
 0x101   :  { %v1462_v62 = vmul.f32 %v5495_v30, %v758_v18  ;;  %v8959_v24 = vunpack.c.h.bf16 %v8877_v47  ;;  %8960 = vst [vmem:[#allocation94_spill] sm:$0xff] %v5616_v60  ;;  %v782_v18 = vunpack.c.l.bf16 %v5599_v28  ;;  %v1478_v47 = vmul.f32 %v5583_v17, %v774_v4  ;;  %v8964_v36 = vld [vmem:[#allocation122_spill] sm:$0xff] }
 0x102   :  { %v1520_v58 = vadd.f32 %v1519_v25, %v1198_v39  ;;  %v1815_v38 = vadd.f32 %v1814_v19, %v8956_v15  ;;  %v1538_v32 = vadd.f32 %v1537_v53, %v5386_v7  ;;  %v1833_v39 = vadd.f32 %v1832_v59, %v1295_v29  ;;  %v8963_v7 = vld [vmem:[#allocation110_spill] sm:$0xff] }
 0x103   :  { %v1311_v45 = vmul.f32 %v8895_v16, %v8959_v24  ;;  %v8962_v15 = vunpack.c.h.bf16 %v8961_v8  ;;  %v1230_v9 = vmul.f32 %v5616_v60, %v526_v3  ;;  %v8965_v4 = vunpack.c.h.bf16 %v8878_v20  ;;  %v8968_v20 = vld [vmem:[#allocation99_spill] sm:$0xff] }
 0x104   :  { %v1521_v34 = vadd.f32 %v1520_v58, %v1206_v41  ;;  %v1816_v19 = vadd.f32 %v1815_v38, %v1454_v1  ;;  %v1539_v1 = vadd.f32 %v1538_v32, %v5391_v43  ;;  %v1834_v59 = vadd.f32 %v1833_v39, %v1303_v50 }
 0x105   :  { %v5625_v29 = vmul.f32 %v8963_v7, %v8962_v15  ;;  %v1319_v58 = vmul.f32 %v8901_v51, %v8965_v4  ;;  %v8966_v50 = vunpack.c.h.bf16 %v4945_v57  ;;  %v8967_v3 = vunpack.c.h.bf16 %v4746_v37  ;;  %v5654_v57 = vld [vmem:[%s8236_s0 + $0xc8] sm:$0xff] }
 0x106   :  { %v1522_v53 = vadd.f32 %v1521_v34, %v8964_v36  ;;  %v1817_v13 = vadd.f32 %v1816_v19, %v1462_v62  ;;  %v1540_v8 = vadd.f32 %v1539_v1, %v5425_v35  ;;  %v1835_v34 = vadd.f32 %v1834_v59, %v1311_v45  ;;  %8970 = vst [vmem:[#allocation95_spill] sm:$0xff] %v5654_v57  ;;  %v5659_v37 = vld [vmem:[%s8236_s0 + $0xe8] sm:$0xff]  ;;  %v8972_v36 = vld [vmem:[#allocation92_spill] sm:$0xff]  ;;  %v8977_v59 = vld [vmem:[#allocation121_spill] sm:$0xff] }
 0x107   :  { %v1486_v62 = vmul.f32 %v5616_v60, %v782_v18  ;;  %v5642_v43 = vmul.f32 %v5078_v46, %v8966_v50  ;;  %v1327_v32 = vmul.f32 %v4442_v12, %v8967_v3  ;;  %v8969_v39 = vunpack.c.h.bf16 %v8968_v20  ;;  %8971 = vst [vmem:[#allocation66_spill] sm:$0xff] %v5659_v37  ;;  %v8980_v50 = vld [vmem:[#allocation29_spill] sm:$0xff] }
 0x108   :  { %v1523_v38 = vadd.f32 %v1522_v53, %v1222_v40  ;;  %v1818_v24 = vadd.f32 %v1817_v13, %v5312_v26  ;;  %v1541_v35 = vadd.f32 %v1540_v8, %v5430_v44  ;;  %v1836_v45 = vadd.f32 %v1835_v34, %v1319_v58  ;;  %v8975_v44 = vld [vmem:[#allocation18_spill] sm:$0xff] }
 0x109   :  { %v1335_v40 = vmul.f32 %v4775_v63, %v8969_v39  ;;  %v8973_v53 = vunpack.c.h.bf16 %v8972_v36  ;;  %v8976_v1 = vunpack.c.h.bf16 %v8975_v44  ;;  %v5677_v34 = vld [vmem:[%s8236_s0 + $0x128] sm:$0xff]  ;;  %v8981_v3 = vunpack.c.h.bf16 %v8980_v50  ;;  %v8982_v39 = vld [vmem:[#allocation68_spill] sm:$0xff] }
 0x10a   :  { %v1524_v19 = vadd.f32 %v1523_v38, %v1230_v9  ;;  %v1819_v26 = vadd.f32 %v1818_v24, %v1478_v47  ;;  %v8974_v47 = vld [vmem:[#allocation109_spill] sm:$0xff]  ;;  %v8978_v38 = vld [vmem:[#allocation123_spill] sm:$0xff]  ;;  %v1837_v8 = vadd.f32 %v1836_v45, %v1327_v32  ;;  %8979 = vst [vmem:[#allocation118_spill] sm:$0xff] %v5677_v34  ;;  %v8983_v36 = vunpack.c.h.bf16 %v8982_v39  ;;  %v8986_v50 = vld [vmem:[#allocation100_spill] sm:$0xff] }
 0x10b   :  { %v5666_v13 = vmul.f32 %v8974_v47, %v8973_v53  ;;  %v5671_v9 = vmul.f32 %v8977_v59, %v8976_v1  ;;  %v1542_v24 = vadd.f32 %v1541_v35, %v8978_v38  ;;  %v1343_v20 = vmul.f32 %v8906_v52, %v8981_v3  ;;  %v8984_v1 = vld [vmem:[#allocation37_spill] sm:$0xff]  ;;  %v9017_v63 = vld [vmem:[#allocation106_spill] sm:$0xff] }
 0x10c   :  { %v1525_v4 = vrot.slane %v1524_v19, 4  ;;  %v1820_v58 = vadd.f32 %v1819_v26, %v1486_v62  ;;  %v1351_v53 = vmul.f32 %v8910_v55, %v8983_v36  ;;  %v1838_v45 = vadd.f32 %v1837_v8, %v1335_v40  ;;  %v8988_v39 = vld [vmem:[#allocation69_spill] sm:$0xff]  ;;  %v8990_v36 = vld [vmem:[#allocation56_spill] sm:$0xff]  ;;  %v8992_v40 = vld [vmem:[#allocation115_spill] sm:$0xff] }
 0x10d   :  { %v1543_v32 = vadd.f32 %v1542_v24, %v5440_v49  ;;  %v8985_v38 = vunpack.c.h.bf16 %v8984_v1  ;;  %v8987_v41 = vunpack.c.h.bf16 %v8986_v50  ;;  %v8989_v6 = vunpack.c.h.bf16 %v8988_v39  ;;  %v8993_v1 = vld [vmem:[#allocation108_spill] sm:$0xff]  ;;  %v8995_v50 = vld [vmem:[#allocation117_spill] sm:$0xff]  ;;  %v9007_v24 = vld [vmem:[#allocation111_spill] sm:$0xff] }
 0x10e   :  { %v1526_v26 = vadd.f32 %v1525_v4, %v1524_v19  ;;  %v1821_v35 = vrot.slane %v1820_v58, 4  ;;  %v8991_v4 = vld [vmem:[#allocation113_spill] sm:$0xff]  ;;  %v1839_v49 = vadd.f32 %v1838_v45, %v1343_v20  ;;  %v5715_v20 = vld [vmem:[%s8236_s0 + $0x148] sm:$0xff]  ;;  %v9016_v52 = vunpack.c.h.bf16 %v9015_v54 }
 0x10f   :  { %v1359_v22 = vmul.f32 %v4905_v27, %v8985_v38  ;;  %v1367_v3 = vmul.f32 %v8933_v56, %v8987_v41  ;;  %v1375_v15 = vmul.f32 %v8990_v36, %v8989_v6  ;;  %v1544_v18 = vadd.f32 %v1543_v32, %v8991_v4  ;;  %v8996_v41 = vld [vmem:[#allocation102_spill] sm:$0xff]  ;;  %8999 = vst [vmem:[#allocation38_spill] sm:$0xff] %v5715_v20  ;;  %v9001_v4 = vld [vmem:[#allocation124_spill] sm:$0xff] }
 0x110   :  { %v1527_v62 = vrot.slane %v1526_v26, 2  ;;  %v1822_v19 = vadd.f32 %v1821_v35, %v1820_v58  ;;  %v8994_v38 = vunpack.c.h.bf16 %v8993_v1  ;;  %v8997_v39 = vunpack.c.h.bf16 %v8996_v41  ;;  %v8998_v58 = vld [vmem:[#allocation81_spill] sm:$0xff]  ;;  %v5720_v45 = vld [vmem:[%s8236_s0 + $0x188] sm:$0xff] }
 0x111   :  { %v1545_v35 = vadd.f32 %v1544_v18, %v8998_v58  ;;  %v1840_v32 = vadd.f32 %v1839_v49, %v1351_v53  ;;  %9000 = vst [vmem:[#allocation116_spill] sm:$0xff] %v5720_v45  ;;  %v9005_v18 = vld [vmem:[#allocation103_spill] sm:$0xff]  ;;  %v9021_v54 = vunpack.c.h.bf16 %v5184_v11  ;;  %v9028_v11 = vld [vmem:[#allocation112_spill] sm:$0xff] }
 0x112   :  { %v5704_v25 = vmul.f32 %v8995_v50, %v8994_v38  ;;  %v5709_v6 = vmul.f32 %v8941_v42, %v8997_v39  ;;  %v1528_v44 = vadd.f32 %v1527_v62, %v1526_v26  ;;  %v1823_v36 = vrot.slane %v1822_v19, 2  ;;  %v9002_v38 = vld [vmem:[#allocation82_spill] sm:$0xff]  ;;  %v9004_v26 = vld [vmem:[#allocation120_spill] sm:$0xff] }
 0x113   :  { %v9003_v62 = vunpack.c.h.bf16 %v5112_v2  ;;  %v9006_v53 = vunpack.c.h.bf16 %v9005_v18  ;;  %v1546_v42 = vadd.f32 %v1545_v35, %v9007_v24  ;;  %v1841_v56 = vadd.f32 %v1840_v32, %v1359_v22  ;;  %v5738_v1 = vld [vmem:[%s8236_s0 + $0x1a8] sm:$0xff] }
 0x114   :  { %v1529_v58 = vrot.slane %v1528_v44, 1  ;;  %v1824_v8 = vadd.f32 %v1823_v36, %v1822_v19  ;;  %9008 = vst [vmem:[#allocation119_spill] sm:$0xff] %v5738_v1  ;;  %v5743_v2 = vstv %s8238_s2  ;;  %v9012_v35 = vld [vmem:[#allocation126_spill] sm:$0xff]  ;;  %v9024_v19 = vld [vmem:[#allocation12_spill] sm:$0xff]  ;;  %s3510_s2 = sshll.u32 %s8241_s5, 4  ;;  %s3511_s2 = int_to_ptr.hbm [resolvable:$true] %s3510_s2 }
 0x115   :  { %v5727_v39 = vmul.f32 %v9004_v26, %v9003_v62  ;;  %v5732_v49 = vmul.f32 %v8945_v31, %v9006_v53  ;;  %9009 = vst [vmem:[#allocation96_spill] sm:$0xff] %v5743_v2  ;;  %v9010_v62 = vld [vmem:[#allocation105_spill] sm:$0xff]  ;;  %v1547_v32 = vadd.f32 %v1546_v42, %v9012_v35  ;;  %v1842_v41 = vadd.f32 %v1841_v56, %v1367_v3  ;;  %v9022_v3 = vld [vmem:[#allocation67_spill] sm:$0xff] }
 0x116   :  { %v9011_v18 = vunpack.c.h.bf16 %v9010_v62  ;;  %v1530_v22 = vadd.f32 %v1529_v58, %v1528_v44  ;;  %v1825_v24 = vrot.slane %v1824_v8, 1  ;;  %v9013_v31 = vld [vmem:[#allocation101_spill] sm:$0xff]  ;;  %v1391_v62 = vmul.f32 %v8974_v47, %v9016_v52  ;;  %v5790_v35 = vld [vmem:[%s8236_s0 + $0x228] sm:$0xff] }
 0x117   :  { %v9014_v27 = vunpack.c.h.bf16 %v9013_v31  ;;  %v9019_v56 = vld [vmem:[#allocation73_spill] sm:$0xff]  ;;  %v1548_v31 = vadd.f32 %v1547_v32, %v5642_v43 }
 0x118   :  { %v5748_v53 = vmul.f32 %v8963_v7, %v9011_v18  ;;  %v9018_v18 = vunpack.c.h.bf16 %v9017_v63  ;;  %v1826_v44 = vadd.f32 %v1825_v24, %v1824_v8  ;;  %v5766_v58 = vadd.f32 %v5743_v2, %v1530_v22  ;;  %v5778_v63 = vld [vmem:[%s8236_s0 + $0x208] sm:$0xff] }
 0x119   :  { %v1383_v55 = vmul.f32 %v5078_v46, %v9014_v27  ;;  %v5773_v27 = vld [vmem:[%s8236_s0 + $0x1e8] sm:$0xff]  ;;  %9020 = vst [vmem:[#allocation122_spill] sm:$0xff] %v5778_v63  ;;  %v1175_v8 = vmul.f32 %v9022_v3, %v9021_v54  ;;  %v9023_v22 = vunpack.c.h.bf16 %v8929_v23  ;;  %v1843_v24 = vadd.f32 %v1842_v41, %v1375_v15 }
 0x11a   :  { %v5762_v7 = vmul.f32 %v8977_v59, %v9018_v18  ;;  %v5793_v32 = vadd.f32 %v5743_v2, %v1826_v44  ;;  %v5796_v18 = vmul.f32 0.70710677, %v5766_v58  ;;  %v1549_v54 = vadd.f32 %v1548_v31, %v5666_v13  ;;  %v5803_v23 = vld [vmem:[%s8236_s0 + $0x248] sm:$0xff] }
 0x11b   :  { %v1183_v43 = vmul.f32 %v5346_v14, %v9023_v22  ;;  %9025 = vst [vmem:[#allocation99_spill] sm:$0xff] %v5803_v23  ;;  %v5808_v15 = vld [vmem:[%s8236_s0 + $0x268] sm:$0xff]  ;;  %v1844_v44 = vadd.f32 %v1843_v24, %v1383_v55  ;;  %v9031_v13 = vunpack.c.h.bf16 %v5123_v5 }
 0x11c   :  { %9026 = vst [vmem:[#allocation92_spill] sm:$0xff] %v5808_v15  ;;  %v5814_v22 = vld [vmem:[%s8236_s0 + $0x288] sm:$0xff]  ;;  %v5819_v36 = vmul.f32 0.70710677, %v5793_v32  ;;  %v2136_v52 = vmul.f32 %v5796_v18, %v5796_v18  ;;  %v1550_v42 = vadd.f32 %v1549_v54, %v9028_v11 }
 0x11d   :  { %9027 = vst [vmem:[#allocation18_spill] sm:$0xff] %v5814_v22  ;;  %v5827_v55 = vld [vmem:[%s8236_s0 + $0x2e8] sm:$0xff]  ;;  %v1407_v41 = vmul.f32 %v8995_v50, %v9031_v13  ;;  %v1845_v59 = vadd.f32 %v1844_v44, %v1391_v62 }
 0x11e   :  { %9029 = vst [vmem:[#allocation123_spill] sm:$0xff] %v5827_v55  ;;  %v5832_v24 = vld [vmem:[%s8236_s0 + $0x348] sm:$0xff]  ;;  %v5840_v54 = vmin.f32 %v2136_v52, 16.0  ;;  %v2456_v46 = vmul.f32 %v5819_v36, %v5819_v36  ;;  %v1551_v63 = vadd.f32 %v1550_v42, %v5704_v25  ;;  %v9034_v52 = vunpack.c.h.bf16 %v5162_v0 }
 0x11f   :  { %9030 = vst [vmem:[#allocation29_spill] sm:$0xff] %v5832_v24  ;;  %v5848_v31 = vld [vmem:[%s8236_s0 + $0x3a8] sm:$0xff]  ;;  %v1846_v13 = vadd.f32 %v1845_v59, %v5709_v6  ;;  %v9037_v55 = vunpack.c.h.bf16 %v8992_v40  ;;  %v9041_v40 = vunpack.c.h.bf16 %v9002_v38 }
 0x120   :  { %9032 = vst [vmem:[#allocation68_spill] sm:$0xff] %v5848_v31  ;;  %v5853_v5 = vld [vmem:[%s8236_s0 + $0x4c8] sm:$0xff]  ;;  %v1415_v44 = vmul.f32 %v9004_v26, %v9034_v52  ;;  %v2138_v11 = vmul.f32 2.1237322e-06, %v5840_v54  ;;  %v2149_v47 = vmul.f32 3.8918573e-05, %v5840_v54  ;;  %v1552_v15 = vadd.f32 %v1551_v63, %v5727_v39 }
 0x121   :  { %9033 = vst [vmem:[#allocation37_spill] sm:$0xff] %v5853_v5  ;;  %v5864_v50 = vmin.f32 %v2456_v46, 16.0  ;;  %v9035_v23 = vld [vmem:[#allocation19_spill] sm:$0xff]  ;;  %v1847_v22 = vadd.f32 %v1846_v13, %v1407_v41  ;;  %v1431_v39 = vmul.f32 %v9022_v3, %v9037_v55  ;;  %v9040_v52 = vld [vmem:[#allocation125_spill] sm:$0xff] }
 0x122   :  { %v775_v62 = vunpack.c.h.bf16 %v9035_v23  ;;  %v2139_v59 = vadd.f32 0.00028619796, %v2138_v11  ;;  %v2150_v6 = vadd.f32 0.001143296, %v2149_v47  ;;  %v9036_v42 = vld [vmem:[#allocation87_spill] sm:$0xff]  ;;  %v9080_v3 = vld [vmem:[#allocation13_spill] sm:$0xff] }
 0x123   :  { %v2458_v25 = vmul.f32 2.1237322e-06, %v5864_v50  ;;  %v1553_v26 = vadd.f32 %v1552_v15, %v9036_v42  ;;  %v2469_v24 = vmul.f32 3.8918573e-05, %v5864_v50  ;;  %v1848_v63 = vadd.f32 %v1847_v22, %v1415_v44  ;;  %v5882_v47 = vld [vmem:[%s8236_s0 + $0x4e8] sm:$0xff] }
 0x124   :  { %v2140_v41 = vmul.f32 %v2139_v59, %v5840_v54  ;;  %v2151_v13 = vmul.f32 %v2150_v6, %v5840_v54  ;;  %9038 = vst [vmem:[#allocation100_spill] sm:$0xff] %v5882_v47  ;;  %v9039_v42 = vunpack.c.h.bf16 %v9001_v4  ;;  %v1207_v22 = vmul.f32 %v5495_v30, %v9041_v40  ;;  %v5979_v23 = vld [vmem:[%s8236_s0 + $0x608] sm:$0xff] }
 0x125   :  { %v2459_v0 = vadd.f32 0.00028619796, %v2458_v25  ;;  %v1554_v11 = vadd.f32 %v1553_v26, %v1175_v8  ;;  %v2470_v15 = vadd.f32 0.001143296, %v2469_v24  ;;  %v1849_v55 = vadd.f32 %v1848_v63, %v5732_v49  ;;  %v5895_v25 = vld [vmem:[%s8236_s0 + $0x508] sm:$0xff]  ;;  %9053 = vst [vmem:[#allocation82_spill] sm:$0xff] %v5979_v23 }
 0x126   :  { %v1199_v46 = vmul.f32 %v9040_v52, %v9039_v42  ;;  %v2141_v44 = vadd.f32 0.0036580483, %v2140_v41  ;;  %v2152_v59 = vadd.f32 0.014752088, %v2151_v13  ;;  %v9042_v24 = vunpack.c.h.bf16 %v8950_v33  ;;  %v5908_v41 = vld [vmem:[%s8236_s0 + $0x528] sm:$0xff] }
 0x127   :  { %v2460_v26 = vmul.f32 %v2459_v0, %v5864_v50  ;;  %v1555_v8 = vadd.f32 %v1554_v11, %v1183_v43  ;;  %v2471_v4 = vmul.f32 %v2470_v15, %v5864_v50  ;;  %v1850_v6 = vadd.f32 %v1849_v55, %v1431_v39  ;;  %v5913_v33 = vld [vmem:[%s8236_s0 + $0x548] sm:$0xff] }
 0x128   :  { %v1439_v38 = vmul.f32 %v5346_v14, %v9042_v24  ;;  %v2142_v49 = vmul.f32 %v2141_v44, %v5840_v54  ;;  %v2153_v63 = vmul.f32 %v2152_v59, %v5840_v54  ;;  %v9043_v13 = vunpack.c.h.bf16 %v9019_v56  ;;  %v5930_v56 = vld [vmem:[%s8236_s0 + $0x2c8] sm:$0xff] }
 0x129   :  { %v2461_v0 = vadd.f32 0.0036580483, %v2460_v26  ;;  %v1556_v43 = vadd.f32 %v1555_v8, %v5625_v29  ;;  %v2472_v39 = vadd.f32 0.014752088, %v2471_v4  ;;  %v5923_v26 = vld [vmem:[%s8236_s0 + $0x2a8] sm:$0xff]  ;;  %9045 = vst [vmem:[#allocation113_spill] sm:$0xff] %v5930_v56 }
 0x12a   :  { %v1455_v11 = vmul.f32 %v9040_v52, %v9043_v13  ;;  %v1851_v15 = vadd.f32 %v1850_v6, %v1439_v38  ;;  %v2143_v55 = vadd.f32 0.05243302, %v2142_v49  ;;  %v2154_v29 = vadd.f32 0.112945676, %v2153_v63  ;;  %9044 = vst [vmem:[#allocation69_spill] sm:$0xff] %v5923_v26  ;;  %v9077_v52 = vld [vmem:[#allocation48_spill] sm:$0xff] }
 0x12b   :  { %v2462_v44 = vmul.f32 %v2461_v0, %v5864_v50  ;;  %v1557_v59 = vadd.f32 %v1556_v43, %v1199_v46  ;;  %v2473_v8 = vmul.f32 %v2472_v39, %v5864_v50  ;;  %v9046_v49 = vunpack.c.h.bf16 %v9024_v19 }
 0x12c   :  { %v1852_v4 = vadd.f32 %v1851_v15, %v5748_v53  ;;  %v2144_v46 = vmul.f32 %v2143_v55, %v5840_v54  ;;  %v2155_v6 = vmul.f32 %v2154_v29, %v5840_v54  ;;  %v5942_v53 = vld [vmem:[%s8236_s0 + $0x568] sm:$0xff]  ;;  %v9048_v39 = vunpack.c.h.bf16 %v5531_v61 }
 0x12d   :  { %v1223_v63 = vmul.f32 %v5583_v17, %v9046_v49  ;;  %v1558_v0 = vadd.f32 %v1557_v59, %v1207_v22  ;;  %9047 = vst [vmem:[#allocation115_spill] sm:$0xff] %v5942_v53  ;;  %v2474_v43 = vadd.f32 0.112945676, %v2473_v8  ;;  %v5950_v55 = vld [vmem:[%s8236_s0 + $0x588] sm:$0xff]  ;;  %v2463_v22 = vadd.f32 0.05243302, %v2462_v44 }
 0x12e   :  { %v1463_v13 = vmul.f32 %v5495_v30, %v9048_v39  ;;  %v1853_v15 = vadd.f32 %v1852_v4, %v1455_v11  ;;  %9049 = vst [vmem:[#allocation108_spill] sm:$0xff] %v5950_v55  ;;  %v2156_v29 = vadd.f32 0.4994258, %v2155_v6  ;;  %v5957_v8 = vld [vmem:[%s8236_s0 + $0x5a8] sm:$0xff]  ;;  %v1479_v4 = vmul.f32 %v5583_v17, %v775_v62 }
 0x12f   :  { %v1559_v59 = vadd.f32 %v1558_v0, %v5671_v9  ;;  %9050 = vst [vmem:[#allocation102_spill] sm:$0xff] %v5957_v8  ;;  %v2475_v11 = vmul.f32 %v2474_v43, %v5864_v50  ;;  %v5967_v44 = vld [vmem:[%s8236_s0 + $0x5c8] sm:$0xff]  ;;  %v2145_v0 = vadd.f32 0.18741608, %v2144_v46 }
 0x130   :  { %v1854_v49 = vadd.f32 %v1853_v15, %v1463_v13  ;;  %9051 = vst [vmem:[#allocation81_spill] sm:$0xff] %v5967_v44  ;;  %v5972_v9 = vld [vmem:[%s8236_s0 + $0x5e8] sm:$0xff]  ;;  %v2157_v43 = vmul.f32 %v2156_v29, %v5840_v54  ;;  %v9054_v15 = vunpack.c.h.bf16 %v5545_v48 }
 0x131   :  { %9052 = vst [vmem:[#allocation124_spill] sm:$0xff] %v5972_v9  ;;  %v1560_v39 = vadd.f32 %v1559_v59, %v1223_v63  ;;  %v2476_v13 = vadd.f32 0.4994258, %v2475_v11  ;;  %v5989_v46 = vld [vmem:[%s8236_s0 + $0x628] sm:$0xff]  ;;  %v2464_v59 = vmul.f32 %v2463_v22, %v5864_v50 }
 0x132   :  { %v1231_v61 = vmul.f32 %v5616_v60, %v9054_v15  ;;  %v1855_v19 = vadd.f32 %v1854_v49, %v5762_v7  ;;  %9055 = vst [vmem:[#allocation103_spill] sm:$0xff] %v5989_v46  ;;  %v5992_v29 = vadd.f32 1.0, %v2157_v43  ;;  %v5998_v11 = vld [vmem:[%s8236_s0 + $0x688] sm:$0xff]  ;;  %v2146_v7 = vmul.f32 %v2145_v0, %v5840_v54  ;;  %v9064_v49 = vld [vmem:[#allocation97_spill] sm:$0xff] }
 0x133   :  { %9056 = vst [vmem:[#allocation111_spill] sm:$0xff] %v5998_v11  ;;  %v6003_v48 = vld [vmem:[%s8236_s0 + $0x6e8] sm:$0xff]  ;;  %v2477_v15 = vmul.f32 %v2476_v13, %v5864_v50  ;;  %v9060_v13 = vunpack.c.h.bf16 %v5599_v28  ;;  %v2465_v24 = vadd.f32 0.18741608, %v2464_v59  ;;  %v9061_v28 = vunpack.c.l.bf16 %v5654_v57 }
 0x134   :  { %9057 = vst [vmem:[#allocation105_spill] sm:$0xff] %v6003_v48  ;;  %v1561_v43 = vadd.f32 %v1560_v39, %v1231_v61  ;;  %v1856_v63 = vadd.f32 %v1855_v19, %v1479_v4  ;;  %v6011_v22 = vld [vmem:[%s8236_s0 + $0x308] sm:$0xff]  ;;  %3861 = vrcp.f32 %v5992_v29  ;;  %v9065_v42 = vunpack.c.l.bf16 %v9064_v49 }
 0x135   :  { %9058 = vst [vmem:[#allocation126_spill] sm:$0xff] %v6011_v22  ;;  %v6016_v62 = vld [vmem:[%s8236_s0 + $0x748] sm:$0xff]  ;;  %v1487_v19 = vmul.f32 %v5616_v60, %v9060_v13  ;;  %v6025_v4 = vadd.f32 1.0, %v2477_v15  ;;  %v9063_v15 = vunpack.c.l.bf16 %v5659_v37  ;;  %v9066_v54 = vunpack.c.l.bf16 %v5677_v34 }
 0x136   :  { %9059 = vst [vmem:[#allocation101_spill] sm:$0xff] %v6016_v62  ;;  %v1562_v39 = vrot.slane %v1561_v43, 4  ;;  %v9062_v0 = vld [vmem:[#allocation47_spill] sm:$0xff]  ;;  %v6043_v59 = vmul.f32 %v8893_v21, %v9065_v42  ;;  %v9070_v42 = vunpack.c.l.bf16 %v5720_v45  ;;  %v9073_v34 = vld [vmem:[#allocation70_spill] sm:$0xff]  ;;  %v2170_v45 = vand.u32 2147483648, %v5992_v29 }
 0x137   :  { %v1857_v40 = vadd.f32 %v1856_v63, %v1487_v19  ;;  %3863 = vrcp.f32 %v6025_v4  ;;  %v1032_v13 = vmul.f32 %v9062_v0, %v9061_v28  ;;  %v6038_v61 = vmul.f32 %v8887_v10, %v9063_v15  ;;  %v9068_v15 = vld [vmem:[#allocation98_spill] sm:$0xff] }
 0x138   :  { %v2147_v63 = vadd.f32 1.1283791, %v2146_v7  ;;  %v1563_v19 = vadd.f32 %v1562_v39, %v1561_v43  ;;  %v6048_v6 = vmul.f32 %v8895_v16, %v9066_v54  ;;  %v9067_v28 = vunpack.c.l.bf16 %v5715_v20  ;;  %v9071_v7 = vld [vmem:[#allocation71_spill] sm:$0xff]  ;;  %v9076_v62 = vld [vmem:[#allocation74_spill] sm:$0xff] }
 0x139   :  { %v1858_v38 = vrot.slane %v1857_v40, 4  ;;  %v9069_v60 = vunpack.c.l.bf16 %v9068_v15  ;;  %v6063_v43 = vmul.f32 %v9071_v7, %v9070_v42  ;;  %v9072_v39 = vunpack.c.l.bf16 %v5738_v1  ;;  %v9079_v11 = vld [vmem:[#allocation54_spill] sm:$0xff] }
 0x13a   :  { %v6053_v37 = vmul.f32 %v8901_v51, %v9067_v28  ;;  %v3862_v57 = vpop.eup %3861  ;;  %v6071_v20 = vmul.f32 0.5, %v5766_v58  ;;  %v2466_v28 = vmul.f32 %v2465_v24, %v5864_v50  ;;  %v1564_v15 = vrot.slane %v1563_v19, 2 }
 0x13b   :  { %v6058_v49 = vmul.f32 %v4442_v12, %v9069_v60  ;;  %v6068_v54 = vmul.f32 %v9073_v34, %v9072_v39  ;;  %v1859_v17 = vadd.f32 %v1858_v38, %v1857_v40  ;;  %v2160_v60 = vmul.f32 %v3862_v57, %v5992_v29 }
 0x13c   :  { %v9074_v42 = vunpack.c.l.bf16 %v5853_v5  ;;  %v9075_v1 = vunpack.c.l.bf16 %v5882_v47  ;;  %v2148_v31 = vmul.f32 %v2147_v63, %v5796_v18  ;;  %vm2164_vm0 = vweird.f32 %v5992_v29  ;;  %v9078_v5 = vld [vmem:[#allocation26_spill] sm:$0xff] }
 0x13d   :  { %v1565_v58 = vadd.f32 %v1564_v15, %v1563_v19  ;;  %v1860_v50 = vrot.slane %v1859_v17, 2  ;;  %v3864_v24 = vpop.eup %3863  ;;  %v2161_v40 = vsub.f32 1.0, %v2160_v60  ;;  %v2168_v38 = vand.u32 2147483647, %v5992_v29 }
 0x13e   :  { %v1288_v30 = vmul.f32 %v9062_v0, %v9074_v42  ;;  %v1296_v39 = vmul.f32 %v8887_v10, %v9075_v1  ;;  %v1570_v48 = vadd.f32 %v9077_v52, %v9076_v62  ;;  %v1866_v42 = vadd.f32 %v9079_v11, %v9078_v5  ;;  %v9081_v5 = vld [vmem:[#allocation20_spill] sm:$0xff] }
 0x13f   :  { %v2467_v0 = vadd.f32 1.1283791, %v2466_v28  ;;  %v2480_v47 = vmul.f32 %v3864_v24, %v6025_v4  ;;  %v1566_v1 = vrot.slane %v1565_v58, 1  ;;  %v1861_v10 = vadd.f32 %v1860_v50, %v1859_v17  ;;  %v9082_v28 = vld [vmem:[#allocation31_spill] sm:$0xff] }
 0x140   :  { %v2162_v18 = vmul.f32 %v3862_v57, %v2161_v40  ;;  %vm2165_vm1 = vweird.f32 %v3862_v57  ;;  %v2171_v63 = vor.u32 1.1754944e-38, %v2170_v45  ;;  %v2490_v19 = vand.u32 2147483648, %v6025_v4 }
 0x141   :  { %v2481_v15 = vsub.f32 1.0, %v2480_v47  ;;  %v1567_v60 = vadd.f32 %v1566_v1, %v1565_v58  ;;  %v1862_v14 = vrot.slane %v1861_v10, 1  ;;  %v1571_v22 = vadd.f32 %v1570_v48, %v9080_v3  ;;  %vm2166_vm3 = vmor %vm2164_vm0, %vm2165_vm1  ;;  %v9083_v3 = vld [vmem:[#allocation39_spill] sm:$0xff] }
 0x142   :  { %v2163_v56 = vadd.f32 %v3862_v57, %v2162_v18  ;;  %vm2485_vm2 = vweird.f32 %v3864_v24  ;;  %v2488_v52 = vand.u32 2147483647, %v6025_v4  ;;  %v1867_v62 = vadd.f32 %v1866_v42, %v9081_v5 }
 0x143   :  { %v2482_v17 = vmul.f32 %v3864_v24, %v2481_v15  ;;  %v1863_v11 = vadd.f32 %v1862_v14, %v1861_v10  ;;  %v6097_v45 = vadd.f32 %v5743_v2, %v1567_v60  ;;  %v1572_v47 = vadd.f32 %v1571_v22, %v9082_v28 }
 0x144   :  { %v2167_v58 = vsel %vm2166_vm3, %v3862_v57, %v2163_v56  ;;  %vm2169_vm4 = vcmp.eq.f32.partialorder %v2168_v38, 8.507059e+37  ;;  %vm2484_vm5 = vweird.f32 %v6025_v4  ;;  %v1868_v48 = vadd.f32 %v1867_v62, %v9083_v3 }
 0x145   :  { %v2172_v50 = vsel %vm2169_vm4, %v2171_v63, %v2167_v58  ;;  %v2483_v40 = vadd.f32 %v3864_v24, %v2482_v17  ;;  %v2491_v1 = vor.u32 1.1754944e-38, %v2490_v19  ;;  %v6103_v42 = vadd.f32 %v5743_v2, %v1863_v11  ;;  %vm2486_vm6 = vmor %vm2484_vm5, %vm2485_vm2 }
 0x146   :  { %v2173_v29 = vmul.f32 %v2172_v50, %v2148_v31  ;;  %v6107_v10 = vmul.f32 0.70710677, %v6097_v45  ;;  %v1573_v14 = vadd.f32 %v1572_v47, %v1032_v13  ;;  %v1869_v22 = vadd.f32 %v1868_v48, %v1288_v30 }
 0x147   :  { %v2468_v57 = vmul.f32 %v2467_v0, %v5819_v36  ;;  %v2487_v56 = vsel %vm2486_vm6, %v3864_v24, %v2483_v40  ;;  %vm2489_vm7 = vcmp.eq.f32.partialorder %v2488_v52, 8.507059e+37  ;;  %v6111_v4 = vmul.f32 0.70710677, %v6103_v42 }
 0x148   :  { %v3519_v38 = vclamps-f32 %v2173_v29, 1.0  ;;  %v2492_v18 = vsel %vm2489_vm7, %v2491_v1, %v2487_v56  ;;  %v2176_v63 = vmul.f32 %v6107_v10, %v6107_v10  ;;  %v9084_v31 = vunpack.c.l.bf16 %v5895_v25 }
 0x149   :  { %v2493_v15 = vmul.f32 %v2492_v18, %v2468_v57  ;;  %v2496_v30 = vmul.f32 %v6111_v4, %v6111_v4  ;;  %v1574_v36 = vadd.f32 %v1573_v14, %v6038_v61  ;;  %v1870_v0 = vadd.f32 %v1869_v22, %v1296_v39 }
 0x14a   :  { %v1304_v19 = vmul.f32 %v8893_v21, %v9084_v31  ;;  %v2112_v13 = vmul.f32 0.5, %v5793_v32  ;;  %v2776_v24 = vadd.f32 1.0, %v3519_v38  ;;  %v6122_v60 = vmin.f32 %v2176_v63, 16.0  ;;  %v9129_v21 = vld [vmem:[#allocation113_spill] sm:$0xff] }
 0x14b   :  { %v9085_v52 = vunpack.c.l.bf16 %v5908_v41  ;;  %v3527_v62 = vclamps-f32 %v2493_v15, 1.0  ;;  %v6127_v17 = vmin.f32 %v2496_v30, 16.0  ;;  %v1575_v11 = vadd.f32 %v1574_v36, %v6043_v59 }
 0x14c   :  { %v1871_v28 = vadd.f32 %v1870_v0, %v1304_v19  ;;  %v2792_v47 = vmul.f32 %v2776_v24, %v6071_v20  ;;  %v2178_v61 = vmul.f32 2.1237322e-06, %v6122_v60  ;;  %v2189_v39 = vmul.f32 3.8918573e-05, %v6122_v60 }
 0x14d   :  { %v1312_v5 = vmul.f32 %v8895_v16, %v9085_v52  ;;  %v9086_v32 = vunpack.c.l.bf16 %v5913_v33  ;;  %v2784_v3 = vadd.f32 1.0, %v3527_v62  ;;  %v2498_v48 = vmul.f32 2.1237322e-06, %v6127_v17 }
 0x14e   :  { %v2509_v50 = vmul.f32 3.8918573e-05, %v6127_v17  ;;  %v1576_v40 = vadd.f32 %v1575_v11, %v6048_v6  ;;  %v2808_v1 = vpack.c.bf16 %v2792_v47, %v2792_v47  ;;  %v2179_v59 = vadd.f32 0.00028619796, %v2178_v61 }
 0x14f   :  { %v1320_v58 = vmul.f32 %v8901_v51, %v9086_v32  ;;  %v2190_v29 = vadd.f32 0.001143296, %v2189_v39  ;;  %v1872_v14 = vadd.f32 %v1871_v28, %v1312_v5  ;;  %v2800_v20 = vmul.f32 %v2784_v3, %v2112_v13 }
 0x150   :  { %v2499_v22 = vadd.f32 0.00028619796, %v2498_v48  ;;  %v2510_v57 = vadd.f32 0.001143296, %v2509_v50  ;;  %v9087_v56 = vunpack.c.l.bf16 %v5942_v53  ;;  %v2972_v18 = vunpack.c.l.b16 %v2808_v1 }
 0x151   :  { %v2180_v63 = vmul.f32 %v2179_v59, %v6122_v60  ;;  %v2191_v31 = vmul.f32 %v2190_v29, %v6122_v60  ;;  %v9088_v19 = vunpack.c.l.bf16 %v5950_v55  ;;  %v2816_v15 = vpack.c.bf16 %v2800_v20, %v2800_v20  ;;  %v6163_v59 = vld [vmem:[%s8236_s0 + $0x328] sm:$0xff] }
 0x152   :  { %v1328_v38 = vmul.f32 %v4442_v12, %v9087_v56  ;;  %v2500_v30 = vmul.f32 %v2499_v22, %v6127_v17  ;;  %v2511_v36 = vmul.f32 %v2510_v57, %v6127_v17  ;;  %v1577_v0 = vadd.f32 %v1576_v40, %v6053_v37  ;;  %9090 = vst [vmem:[#allocation104_spill] sm:$0xff] %v6163_v59  ;;  %v6168_v20 = vld [vmem:[%s8236_s0 + $0x648] sm:$0xff]  ;;  %v9094_v56 = vld [vmem:[#allocation45_spill] sm:$0xff] }
 0x153   :  { %v1336_v6 = vmul.f32 %v9071_v7, %v9088_v19  ;;  %v2181_v13 = vadd.f32 0.0036580483, %v2180_v63  ;;  %v2192_v24 = vadd.f32 0.014752088, %v2191_v31  ;;  %v1873_v52 = vadd.f32 %v1872_v14, %v1320_v58  ;;  %9091 = vst [vmem:[#allocation106_spill] sm:$0xff] %v6168_v20  ;;  %v9092_v22 = vld [vmem:[#allocation30_spill] sm:$0xff] }
 0x154   :  { %v2980_v5 = vunpack.c.l.b16 %v2816_v15  ;;  %v2501_v62 = vadd.f32 0.0036580483, %v2500_v30  ;;  %v2512_v11 = vadd.f32 0.014752088, %v2511_v36  ;;  %v1578_v28 = vadd.f32 %v1577_v0, %v6058_v49  ;;  %v6183_v15 = vld [vmem:[%s8236_s0 + $0x368] sm:$0xff]  ;;  %v9121_v12 = vld [vmem:[#allocation29_spill] sm:$0xff] }
 0x155   :  { %v2182_v47 = vmul.f32 %v2181_v13, %v6122_v60  ;;  %v2193_v61 = vmul.f32 %v2192_v24, %v6122_v60  ;;  %v9089_v39 = vunpack.c.l.bf16 %v5957_v8  ;;  %v1874_v3 = vadd.f32 %v1873_v52, %v1328_v38  ;;  %v6188_v30 = vld [vmem:[%s8236_s0 + $0x668] sm:$0xff]  ;;  %v9135_v8 = vld [vmem:[#allocation57_spill] sm:$0xff] }
 0x156   :  { %v2989_v37 = vsel %vm2988_vm8, %v2980_v5, %v2972_v18  ;;  %v2502_v48 = vmul.f32 %v2501_v62, %v6127_v17  ;;  %v2513_v58 = vmul.f32 %v2512_v11, %v6127_v17  ;;  %v1579_v50 = vadd.f32 %v1578_v28, %v6063_v43  ;;  %v9096_v18 = vld [vmem:[#allocation86_spill] sm:$0xff]  ;;  %9098 = vst [vmem:[#allocation73_spill] sm:$0xff] %v6188_v30  ;;  %v9136_v55 = vld [vmem:[#allocation111_spill] sm:$0xff] }
 0x157   :  { %v1344_v32 = vmul.f32 %v9073_v34, %v9089_v39  ;;  %v2997_v40 = vpack.c.b16 %v2989_v37, %v2989_v37  ;;  %v2183_v1 = vadd.f32 0.05243302, %v2182_v47  ;;  %v2194_v49 = vadd.f32 0.112945676, %v2193_v61  ;;  %v6193_v36 = vld [vmem:[%s8236_s0 + $0x7a8] sm:$0xff] }
 0x158   :  { %v1875_v29 = vadd.f32 %v1874_v3, %v1336_v6  ;;  %v2514_v14 = vadd.f32 0.112945676, %v2513_v58  ;;  %v9093_v57 = vunpack.c.l.bf16 %v9092_v22  ;;  %v9095_v43 = vunpack.c.l.bf16 %v5773_v27  ;;  %v6206_v58 = vld [vmem:[%s8236_s0 + $0x388] sm:$0xff] }
 0x159   :  { %v9097_v31 = vunpack.c.l.bf16 %v5967_v44  ;;  %3405 = vmatmul.bf16.vlgmr.msra.gmra.mxu0 %v2997_v40  ;;  %v2195_v6 = vmul.f32 %v2194_v49, %v6122_v60  ;;  %v9099_v0 = vunpack.c.l.bf16 %v5972_v9  ;;  %v1580_v24 = vadd.f32 %v1579_v50, %v6068_v54  ;;  %v6211_v54 = vld [vmem:[%s8236_s0 + $0x6a8] sm:$0xff] }
 0x15a   :  { %v1096_v38 = vmul.f32 %v9094_v56, %v9093_v57  ;;  %v1104_v63 = vmul.f32 %v9096_v18, %v9095_v43  ;;  %v1876_v52 = vadd.f32 %v1875_v29, %v1344_v32  ;;  %v2184_v5 = vmul.f32 %v2183_v1, %v6122_v60  ;;  %9100 = vst [vmem:[#allocation12_spill] sm:$0xff] %v6211_v54  ;;  %v6220_v1 = vld [vmem:[%s8236_s0 + $0x6c8] sm:$0xff] }
 0x15b   :  { %v1352_v19 = vmul.f32 %v9094_v56, %v9097_v31  ;;  %v1360_v13 = vmul.f32 %v9096_v18, %v9099_v0  ;;  %v2503_v62 = vadd.f32 0.05243302, %v2502_v48  ;;  %v2515_v11 = vmul.f32 %v2514_v14, %v6127_v17  ;;  %9101 = vst [vmem:[#allocation112_spill] sm:$0xff] %v6220_v1  ;;  %v9102_v49 = vld [vmem:[#allocation122_spill] sm:$0xff]  ;;  %v9104_v14 = vld [vmem:[#allocation93_spill] sm:$0xff]  ;;  %v9118_v56 = vld [vmem:[#allocation123_spill] sm:$0xff] }
 0x15c   :  { %v480_v28 = vunpack.c.l.bf16 %v6163_v59  ;;  %v2196_v47 = vadd.f32 0.4994258, %v2195_v6  ;;  %v680_v61 = vunpack.c.l.bf16 %v6168_v20  ;;  %v1581_v39 = vadd.f32 %v1580_v24, %v1096_v38  ;;  %v9120_v34 = vld [vmem:[#allocation11_spill] sm:$0xff]  ;;  %v9124_v20 = vld [vmem:[#allocation92_spill] sm:$0xff]  ;;  %v9126_v59 = vld [vmem:[#allocation109_spill] sm:$0xff] }
 0x15d   :  { %v1877_v3 = vadd.f32 %v1876_v52, %v1352_v19  ;;  %v2516_v37 = vadd.f32 0.4994258, %v2515_v11  ;;  %v688_v48 = vunpack.c.l.bf16 %v6188_v30  ;;  %v9103_v29 = vunpack.c.l.bf16 %v9102_v49 }
 0x15e   :  { %v2197_v40 = vmul.f32 %v2196_v47, %v6122_v60  ;;  %v1582_v57 = vadd.f32 %v1581_v39, %v1104_v63  ;;  %v2185_v43 = vadd.f32 0.18741608, %v2184_v5  ;;  %v2504_v31 = vmul.f32 %v2503_v62, %v6127_v17  ;;  %v6239_v63 = vld [vmem:[%s8236_s0 + $0x3c8] sm:$0xff]  ;;  %v9107_v62 = vld [vmem:[#allocation56_spill] sm:$0xff] }
 0x15f   :  { %v1112_v22 = vmul.f32 %v9104_v14, %v9103_v29  ;;  %v1878_v38 = vadd.f32 %v1877_v3, %v1360_v13  ;;  %v2517_v19 = vmul.f32 %v2516_v37, %v6127_v17  ;;  %v9105_v6 = vunpack.c.l.bf16 %v5979_v23  ;;  %v6249_v37 = vld [vmem:[%s8236_s0 + $0x708] sm:$0xff] }
 0x160   :  { %v6230_v24 = vadd.f32 1.0, %v2197_v40  ;;  %v704_v11 = vunpack.c.l.bf16 %v6211_v54  ;;  %v712_v13 = vunpack.c.l.bf16 %v6220_v1  ;;  %v9106_v5 = vunpack.c.l.bf16 %v5790_v35  ;;  %9108 = vst [vmem:[#allocation19_spill] sm:$0xff] %v6249_v37  ;;  %v6254_v40 = vld [vmem:[%s8236_s0 + $0x728] sm:$0xff] }
 0x161   :  { %v1368_v0 = vmul.f32 %v9104_v14, %v9105_v6  ;;  %v1583_v47 = vadd.f32 %v1582_v57, %v1112_v22  ;;  %v6234_v50 = vadd.f32 1.0, %v2517_v19  ;;  %9109 = vst [vmem:[#allocation87_spill] sm:$0xff] %v6254_v40  ;;  %v9110_v29 = vld [vmem:[#allocation99_spill] sm:$0xff]  ;;  %v9113_v6 = vld [vmem:[#allocation18_spill] sm:$0xff]  ;;  %v2186_v1 = vmul.f32 %v2185_v43, %v6122_v60 }
 0x162   :  { %v1120_v39 = vmul.f32 %v9107_v62, %v9106_v5  ;;  %3865 = vrcp.f32 %v6230_v24  ;;  %v9111_v22 = vunpack.c.l.bf16 %v9110_v29  ;;  %v9112_v57 = vld [vmem:[#allocation107_spill] sm:$0xff]  ;;  %v9114_v52 = vunpack.c.l.bf16 %v9113_v6  ;;  %v9115_v5 = vld [vmem:[#allocation72_spill] sm:$0xff] }
 0x163   :  { %v1879_v3 = vadd.f32 %v1878_v38, %v1368_v0  ;;  %v9116_v0 = vunpack.c.l.bf16 %v5989_v46  ;;  %v2505_v54 = vadd.f32 0.18741608, %v2504_v31  ;;  %3867 = vrcp.f32 %v6234_v50  ;;  %v6270_v14 = vld [vmem:[%s8236_s0 + $0x768] sm:$0xff] }
 0x164   :  { %v1128_v19 = vmul.f32 %v9112_v57, %v9111_v22  ;;  %v1144_v38 = vmul.f32 %v9115_v5, %v9114_v52  ;;  %9117 = vst [vmem:[#allocation97_spill] sm:$0xff] %v6270_v14  ;;  %v1384_v22 = vmul.f32 %v9112_v57, %v680_v61  ;;  %v9119_v52 = vunpack.c.l.bf16 %v9118_v56 }
 0x165   :  { %v1376_v32 = vmul.f32 %v9107_v62, %v9116_v0  ;;  %v9122_v0 = vunpack.c.l.bf16 %v9121_v12  ;;  %v9123_v62 = vld [vmem:[#allocation110_spill] sm:$0xff]  ;;  %v1584_v43 = vadd.f32 %v1583_v47, %v1120_v39  ;;  %v728_v31 = vunpack.c.l.bf16 %v6249_v37 }
 0x166   :  { %v1168_v7 = vmul.f32 %v9120_v34, %v9119_v52  ;;  %v9125_v51 = vunpack.c.l.bf16 %v9124_v20  ;;  %v9127_v2 = vunpack.c.l.bf16 %v5923_v26  ;;  %v9128_v52 = vld [vmem:[#allocation117_spill] sm:$0xff]  ;;  %v9130_v46 = vunpack.c.l.bf16 %v9129_v21 }
 0x167   :  { %v6280_v60 = vmul.f32 %v9123_v62, %v9122_v0  ;;  %v1880_v57 = vadd.f32 %v1879_v3, %v1376_v32  ;;  %v9131_v0 = vld [vmem:[#allocation120_spill] sm:$0xff]  ;;  %v1585_v47 = vadd.f32 %v1584_v43, %v1128_v19  ;;  %v2187_v39 = vadd.f32 1.1283791, %v2186_v1  ;;  %v9134_v3 = vld [vmem:[#allocation67_spill] sm:$0xff] }
 0x168   :  { %v1136_v61 = vmul.f32 %v9126_v59, %v9125_v51  ;;  %v1152_v16 = vmul.f32 %v9128_v52, %v9127_v2  ;;  %v1160_v23 = vmul.f32 %v9131_v0, %v9130_v46  ;;  %v2506_v37 = vmul.f32 %v2505_v54, %v6127_v17  ;;  %v3866_v44 = vpop.eup %3865  ;;  %v9132_v51 = vld [vmem:[#allocation126_spill] sm:$0xff]  ;;  %v9138_v54 = vld [vmem:[#allocation105_spill] sm:$0xff] }
 0x169   :  { %v1392_v30 = vmul.f32 %v9126_v59, %v688_v48  ;;  %v1881_v9 = vadd.f32 %v1880_v57, %v1384_v22  ;;  %v9133_v32 = vunpack.c.l.bf16 %v9132_v51  ;;  %v1184_v26 = vmul.f32 %v9135_v8, %v480_v28  ;;  %v3868_v46 = vpop.eup %3867 }
 0x16a   :  { %v9137_v2 = vunpack.c.l.bf16 %v9136_v55  ;;  %v1586_v53 = vadd.f32 %v1585_v47, %v1136_v61  ;;  %v2200_v1 = vmul.f32 %v3866_v44, %v6230_v24  ;;  %v1408_v17 = vmul.f32 %v9128_v52, %v704_v11 }
 0x16b   :  { %v1176_v18 = vmul.f32 %v9134_v3, %v9133_v32  ;;  %v9139_v48 = vunpack.c.l.bf16 %v9138_v54  ;;  %v1882_v19 = vadd.f32 %v1881_v9, %v1392_v30  ;;  %v2520_v22 = vmul.f32 %v3868_v46, %v6234_v50 }
 0x16c   :  { %v1400_v21 = vmul.f32 %v9115_v5, %v9137_v2  ;;  %v1416_v43 = vmul.f32 %v9131_v0, %v712_v13  ;;  %v1432_v28 = vmul.f32 %v9134_v3, %v728_v31  ;;  %v1587_v32 = vadd.f32 %v1586_v53, %v1144_v38 }
 0x16d   :  { %v1424_v57 = vmul.f32 %v9120_v34, %v9139_v48  ;;  %v2188_v2 = vmul.f32 %v2187_v39, %v6107_v10  ;;  %v2201_v61 = vsub.f32 1.0, %v2200_v1  ;;  %v2507_v47 = vadd.f32 1.1283791, %v2506_v37 }
 0x16e   :  { %v1883_v59 = vadd.f32 %v1882_v19, %v1400_v21  ;;  %v2208_v5 = vand.u32 2147483647, %v6230_v24  ;;  %v2210_v11 = vand.u32 2147483648, %v6230_v24  ;;  %v2521_v52 = vsub.f32 1.0, %v2520_v22 }
 0x16f   :  { %v1588_v51 = vadd.f32 %v1587_v32, %v1152_v16  ;;  %v2202_v48 = vmul.f32 %v3866_v44, %v2201_v61  ;;  %vm2205_vm9 = vweird.f32 %v3866_v44  ;;  %v2530_v9 = vand.u32 2147483648, %v6234_v50 }
 0x170   :  { %v1884_v30 = vadd.f32 %v1883_v59, %v1408_v17  ;;  %v2522_v13 = vmul.f32 %v3868_v46, %v2521_v52  ;;  %vm2525_vm10 = vweird.f32 %v3868_v46  ;;  %v2528_v53 = vand.u32 2147483647, %v6234_v50 }
 0x171   :  { %v1589_v38 = vadd.f32 %v1588_v51, %v1160_v23  ;;  %v2203_v10 = vadd.f32 %v3866_v44, %v2202_v48  ;;  %vm2204_vm11 = vweird.f32 %v6230_v24  ;;  %v2508_v21 = vmul.f32 %v2507_v47, %v6111_v4  ;;  %v6322_v23 = vld [vmem:[%s8236_s0 + $0x788] sm:$0xff]  ;;  %v9145_v47 = vld [vmem:[#allocation101_spill] sm:$0xff] }
 0x172   :  { %v1885_v37 = vadd.f32 %v1884_v30, %v1416_v43  ;;  %vm2206_vm12 = vmor %vm2204_vm11, %vm2205_vm9  ;;  %v2211_v31 = vor.u32 1.1754944e-38, %v2210_v11  ;;  %v2523_v39 = vadd.f32 %v3868_v46, %v2522_v13  ;;  %vm2524_vm13 = vweird.f32 %v6234_v50  ;;  %9140 = vst [vmem:[#allocation98_spill] sm:$0xff] %v6322_v23  ;;  %v9144_v43 = vld [vmem:[#allocation125_spill] sm:$0xff] }
 0x173   :  { %v1590_v16 = vadd.f32 %v1589_v38, %v1168_v7  ;;  %v2207_v1 = vsel %vm2206_vm12, %v3866_v44, %v2203_v10  ;;  %vm2209_vm14 = vcmp.eq.f32.partialorder %v2208_v5, 8.507059e+37  ;;  %vm2526_vm15 = vmor %vm2524_vm13, %vm2525_vm10  ;;  %v2531_v59 = vor.u32 1.1754944e-38, %v2530_v9  ;;  %v6327_v7 = vld [vmem:[%s8236_s0 + $0x3e8] sm:$0xff]  ;;  %v9149_v10 = vld [vmem:[#allocation68_spill] sm:$0xff] }
 0x174   :  { %v1886_v52 = vadd.f32 %v1885_v37, %v1424_v57  ;;  %v2212_v24 = vsel %vm2209_vm14, %v2211_v31, %v2207_v1  ;;  %v2527_v51 = vsel %vm2526_vm15, %v3868_v46, %v2523_v39  ;;  %vm2529_vm0 = vcmp.eq.f32.partialorder %v2528_v53, 8.507059e+37  ;;  %v6335_v57 = vld [vmem:[%s8236_s0 + $0x7c8] sm:$0xff] }
 0x175   :  { %v1591_v4 = vadd.f32 %v1590_v16, %v1176_v18  ;;  %v2213_v17 = vmul.f32 %v2212_v24, %v2188_v2  ;;  %v2532_v19 = vsel %vm2529_vm0, %v2531_v59, %v2527_v51  ;;  %v9141_v44 = vunpack.c.l.bf16 %v6254_v40  ;;  %9142 = vst [vmem:[#allocation74_spill] sm:$0xff] %v6335_v57  ;;  %v6350_v53 = vld [vmem:[%s8236_s0 + $0x7e8] sm:$0xff] }
 0x176   :  { %v1887_v5 = vadd.f32 %v1886_v52, %v1432_v28  ;;  %v2533_v22 = vmul.f32 %v2532_v19, %v2508_v21  ;;  %v760_v18 = vunpack.c.l.bf16 %v6322_v23  ;;  %v9143_v46 = vunpack.c.l.bf16 %v6183_v15  ;;  %9148 = vst [vmem:[#allocation48_spill] sm:$0xff] %v6350_v53  ;;  %v9151_v21 = vld [vmem:[#allocation121_spill] sm:$0xff]  ;;  %v9178_v23 = vld [vmem:[#allocation124_spill] sm:$0xff] }
 0x177   :  { %v1440_v50 = vmul.f32 %v9135_v8, %v9141_v44  ;;  %v1592_v2 = vadd.f32 %v1591_v4, %v1184_v26  ;;  %v3520_v61 = vclamps-f32 %v2213_v17, 1.0  ;;  %v9146_v11 = vunpack.c.l.bf16 %v9145_v47  ;;  %v9153_v4 = vld [vmem:[#allocation22_spill] sm:$0xff]  ;;  %v9176_v8 = vld [vmem:[#allocation81_spill] sm:$0xff] }
 0x178   :  { %v1200_v32 = vmul.f32 %v9144_v43, %v9143_v46  ;;  %v9147_v28 = vunpack.c.l.bf16 %v6270_v14  ;;  %v3528_v13 = vclamps-f32 %v2533_v22, 1.0  ;;  %v528_v38 = vunpack.c.l.bf16 %v6327_v7  ;;  %v9155_v46 = vld [vmem:[#allocation114_spill] sm:$0xff]  ;;  %v9181_v14 = vld [vmem:[#allocation8_spill] sm:$0xff] }
 0x179   :  { %v1448_v48 = vmul.f32 %v9123_v62, %v9146_v11  ;;  %v1888_v30 = vadd.f32 %v1887_v5, %v1440_v50  ;;  %v9150_v26 = vunpack.c.l.bf16 %v9149_v10  ;;  %v1593_v31 = vadd.f32 %v1592_v2, %v6280_v60  ;;  %v9156_v11 = vld [vmem:[#allocation95_spill] sm:$0xff] }
 0x17a   :  { %v1456_v9 = vmul.f32 %v9144_v43, %v9147_v28  ;;  %v2105_v39 = vmul.f32 0.5, %v6097_v45  ;;  %v2777_v16 = vadd.f32 1.0, %v3520_v61  ;;  %v776_v1 = vunpack.c.l.bf16 %v6335_v57 }
 0x17b   :  { %v1216_v37 = vmul.f32 %v9151_v21, %v9150_v26  ;;  %v1889_v59 = vadd.f32 %v1888_v30, %v1448_v48  ;;  %v2113_v52 = vmul.f32 0.5, %v6103_v42  ;;  %v2785_v24 = vadd.f32 1.0, %v3528_v13  ;;  %v9168_v42 = vld [vmem:[#allocation115_spill] sm:$0xff] }
 0x17c   :  { %v9152_v51 = vunpack.c.l.bf16 %v6206_v58  ;;  %v1594_v19 = vadd.f32 %v1593_v31, %v1200_v32  ;;  %v2793_v44 = vmul.f32 %v2777_v16, %v2105_v39  ;;  %v784_v50 = vunpack.c.l.bf16 %v6350_v53  ;;  %v9158_v31 = vld [vmem:[#allocation94_spill] sm:$0xff] }
 0x17d   :  { %v1464_v5 = vmul.f32 %v9153_v4, %v760_v18  ;;  %v1890_v60 = vadd.f32 %v1889_v59, %v1456_v9  ;;  %v2801_v22 = vmul.f32 %v2785_v24, %v2113_v52  ;;  %v9154_v45 = vunpack.c.l.bf16 %v6239_v63  ;;  %v9159_v39 = vld [vmem:[#allocation66_spill] sm:$0xff] }
 0x17e   :  { %v1208_v17 = vmul.f32 %v9153_v4, %v9152_v51  ;;  %v2809_v48 = vpack.c.bf16 %v2793_v44, %v2793_v44  ;;  %v9157_v28 = vunpack.c.l.bf16 %v6193_v36  ;;  %v1480_v32 = vmul.f32 %v9155_v46, %v776_v1  ;;  %v6378_v24 = vld [vmem:[%s8236_s0 + $0x108] sm:$0xff] }
 0x17f   :  { %v1224_v2 = vmul.f32 %v9155_v46, %v9154_v45  ;;  %v1891_v13 = vadd.f32 %v1890_v60, %v1464_v5  ;;  %v2817_v26 = vpack.c.bf16 %v2801_v22, %v2801_v22  ;;  %v1232_v18 = vmul.f32 %v9158_v31, %v528_v38  ;;  %v9161_v5 = vld [vmem:[#allocation38_spill] sm:$0xff] }
 0x180   :  { %v1595_v61 = vadd.f32 %v1594_v19, %v1208_v17  ;;  %v1472_v30 = vmul.f32 %v9151_v21, %v9157_v28  ;;  %v337_v16 = vunpack.c.h.bf16 %v9159_v39  ;;  %v2973_v59 = vunpack.c.l.b16 %v2809_v48  ;;  %v9160_v17 = vld [vmem:[#allocation118_spill] sm:$0xff]  ;;  %v9163_v28 = vld [vmem:[#allocation119_spill] sm:$0xff]  ;;  %v9165_v39 = vld [vmem:[#allocation100_spill] sm:$0xff] }
 0x181   :  { %v2981_v44 = vunpack.c.l.b16 %v2817_v26  ;;  %v6386_v38 = vld [vmem:[%s8236_s0 + $0x168] sm:$0xff]  ;;  %v1488_v22 = vmul.f32 %v9158_v31, %v784_v50  ;;  %v601_v48 = vunpack.c.h.bf16 %v5895_v25  ;;  %v9167_v19 = vld [vmem:[#allocation49_spill] sm:$0xff]  ;;  %v9169_v31 = vld [vmem:[#allocation108_spill] sm:$0xff]  ;;  %v9179_v3 = vunpack.c.h.bf16 %v9156_v11 }
 0x182   :  { %v1596_v9 = vadd.f32 %v1595_v61, %v1216_v37  ;;  %v1892_v52 = vadd.f32 %v1891_v13, %v1472_v30  ;;  %v9162_v61 = vld [vmem:[#allocation116_spill] sm:$0xff]  ;;  %v9189_v25 = vld [vmem:[#allocation63_spill] sm:$0xff] }
 0x183   :  { %v2990_v13 = vsel %vm2988_vm8, %v2981_v44, %v2973_v59  ;;  %v617_v59 = vunpack.c.h.bf16 %v5913_v33  ;;  %v9175_v33 = vld [vmem:[#allocation102_spill] sm:$0xff] }
 0x184   :  { %v1597_v1 = vadd.f32 %v1596_v9, %v1224_v2  ;;  %v1893_v45 = vadd.f32 %v1892_v52, %v1480_v32  ;;  %v6396_v2 = vld [vmem:[%s8236_s0 + $0x1c8] sm:$0xff]  ;;  %v2998_v37 = vpack.c.b16 %v2990_v13, %v2990_v13  ;;  %v593_v32 = vunpack.c.h.bf16 %v9165_v39  ;;  %v9172_v39 = vld [vmem:[#allocation69_spill] sm:$0xff] }
 0x185   :  { %v625_v9 = vunpack.c.h.bf16 %v9168_v42  ;;  %v633_v13 = vunpack.c.h.bf16 %v9169_v31  ;;  %v9187_v31 = vld [vmem:[#allocation10_spill] sm:$0xff] }
 0x186   :  { %v1598_v26 = vadd.f32 %v1597_v1, %v1232_v18  ;;  %v1894_v60 = vadd.f32 %v1893_v45, %v1488_v22  ;;  %3418 = vmatmul.bf16.vlgmr.msra.gmra.mxu1 %v2998_v37  ;;  %v9164_v45 = vld [vmem:[#allocation37_spill] sm:$0xff]  ;;  %v609_v18 = vunpack.c.h.bf16 %v5908_v41  ;;  %v9166_v37 = vld [vmem:[#allocation43_spill] sm:$0xff] }
 0x187   :  { %v585_v50 = vunpack.c.h.bf16 %v9164_v45  ;;  %v1607_v51 = vadd.f32 %v9167_v19, %v9166_v37  ;;  %v9177_v37 = vld [vmem:[#allocation7_spill] sm:$0xff] }
 0x188   :  { %v1599_v52 = vrot.slane %v1598_v26, 4  ;;  %v1895_v44 = vrot.slane %v1894_v60, 4 }
 0x18a   :  { %v1600_v22 = vadd.f32 %v1599_v52, %v1598_v26  ;;  %v1896_v30 = vadd.f32 %v1895_v44, %v1894_v60  ;;  %v9170_v26 = vld [vmem:[#allocation44_spill] sm:$0xff]  ;;  %v9171_v52 = vld [vmem:[#allocation55_spill] sm:$0xff]  ;;  %v9174_v44 = vld [vmem:[#allocation6_spill] sm:$0xff] }
 0x18b   :  { %v1903_v45 = vadd.f32 %v9171_v52, %v9170_v26  ;;  %v1608_v41 = vadd.f32 %v1607_v51, %v9174_v44  ;;  %v9180_v26 = vld [vmem:[#allocation47_spill] sm:$0xff]  ;;  %v9182_v60 = vld [vmem:[#allocation82_spill] sm:$0xff] }
 0x18c   :  { %v1601_v1 = vrot.slane %v1600_v22, 2  ;;  %v1897_v46 = vrot.slane %v1896_v30, 2  ;;  %v1033_v52 = vmul.f32 %v9180_v26, %v9179_v3  ;;  %v9183_v51 = vld [vmem:[#allocation103_spill] sm:$0xff]  ;;  %v1289_v19 = vmul.f32 %v9180_v26, %v585_v50  ;;  %v9190_v50 = vld [vmem:[#allocation96_spill] sm:$0xff] }
 0x18d   :  { %v1904_v57 = vadd.f32 %v1903_v45, %v9177_v37  ;;  %v1609_v4 = vadd.f32 %v1608_v41, %v9181_v14  ;;  %v9186_v3 = vunpack.c.h.bf16 %v6378_v24  ;;  %v9188_v41 = vunpack.c.h.bf16 %v9160_v17 }
 0x18e   :  { %v1602_v43 = vadd.f32 %v1601_v1, %v1600_v22  ;;  %v1898_v42 = vadd.f32 %v1897_v46, %v1896_v30  ;;  %v9184_v22 = vld [vmem:[#allocation46_spill] sm:$0xff]  ;;  %v9185_v46 = vld [vmem:[#allocation9_spill] sm:$0xff]  ;;  %v1313_v17 = vmul.f32 %v9189_v25, %v609_v18 }
 0x18f   :  { %v1041_v44 = vmul.f32 %v9184_v22, %v337_v16  ;;  %v1610_v45 = vadd.f32 %v1609_v4, %v1033_v52  ;;  %v1905_v30 = vadd.f32 %v1904_v57, %v9185_v46  ;;  %v1049_v14 = vmul.f32 %v9187_v31, %v9186_v3  ;;  %v9200_v57 = vld [vmem:[#allocation71_spill] sm:$0xff] }
 0x190   :  { %v1603_v0 = vrot.slane %v1602_v43, 1  ;;  %v1899_v53 = vrot.slane %v1898_v42, 1  ;;  %v1057_v40 = vmul.f32 %v9189_v25, %v9188_v41  ;;  %v1297_v16 = vmul.f32 %v9184_v22, %v593_v32 }
 0x191   :  { %v1611_v21 = vadd.f32 %v1610_v45, %v1041_v44  ;;  %v1906_v10 = vadd.f32 %v1905_v30, %v1289_v19  ;;  %v9191_v19 = vld [vmem:[#allocation126_spill] sm:$0xff]  ;;  %v9192_v44 = vld [vmem:[#allocation104_spill] sm:$0xff]  ;;  %v9193_v46 = vunpack.c.h.bf16 %v9161_v5  ;;  %v9199_v5 = vunpack.c.h.bf16 %v9162_v61 }
 0x192   :  { %v1604_v37 = vadd.f32 %v1603_v0, %v1602_v43  ;;  %v1900_v1 = vadd.f32 %v1899_v53, %v1898_v42  ;;  %v1305_v43 = vmul.f32 %v9187_v31, %v601_v48  ;;  %v9194_v30 = vld [vmem:[#allocation62_spill] sm:$0xff]  ;;  %v9198_v42 = vld [vmem:[#allocation32_spill] sm:$0xff] }
 0x193   :  { %v1612_v52 = vadd.f32 %v1611_v21, %v1049_v14  ;;  %v1907_v53 = vadd.f32 %v1906_v10, %v1297_v16  ;;  %v9196_v21 = vld [vmem:[#allocation73_spill] sm:$0xff]  ;;  %v9197_v16 = vunpack.c.h.bf16 %v6386_v38  ;;  %v1321_v11 = vmul.f32 %v9194_v30, %v617_v59  ;;  %v9202_v38 = vld [vmem:[#allocation70_spill] sm:$0xff] }
 0x194   :  { %v6444_v4 = vadd.f32 %v9190_v50, %v1604_v37  ;;  %v6450_v24 = vadd.f32 %v9190_v50, %v1900_v1  ;;  %v1065_v37 = vmul.f32 %v9194_v30, %v9193_v46  ;;  %v9195_v1 = vld [vmem:[#allocation106_spill] sm:$0xff]  ;;  %v1081_v46 = vmul.f32 %v9200_v57, %v9199_v5 }
 0x195   :  { %v1613_v41 = vadd.f32 %v1612_v52, %v1057_v40  ;;  %v1908_v18 = vadd.f32 %v1907_v53, %v1305_v43  ;;  %v1073_v45 = vmul.f32 %v9198_v42, %v9197_v16  ;;  %v9201_v14 = vunpack.c.h.bf16 %v9163_v28 }
 0x196   :  { %v6454_v32 = vmul.f32 0.70710677, %v6444_v4  ;;  %v6462_v48 = vmul.f32 0.70710677, %v6450_v24  ;;  %v1329_v16 = vmul.f32 %v9198_v42, %v625_v9  ;;  %v1337_v5 = vmul.f32 %v9200_v57, %v633_v13 }
 0x197   :  { %v1614_v40 = vadd.f32 %v1613_v41, %v1065_v37  ;;  %v1909_v43 = vadd.f32 %v1908_v18, %v1313_v17  ;;  %v1089_v3 = vmul.f32 %v9202_v38, %v9201_v14  ;;  %v9203_v37 = vunpack.c.h.bf16 %v6396_v2  ;;  %v9204_v41 = vld [vmem:[#allocation45_spill] sm:$0xff] }
 0x198   :  { %v2216_v10 = vmul.f32 %v6454_v32, %v6454_v32  ;;  %v2536_v0 = vmul.f32 %v6462_v48, %v6462_v48  ;;  %v9205_v28 = vunpack.c.h.bf16 %v5773_v27  ;;  %v9209_v2 = vunpack.c.h.bf16 %v9175_v33 }
 0x199   :  { %v1615_v26 = vadd.f32 %v1614_v40, %v1073_v45  ;;  %v1910_v25 = vadd.f32 %v1909_v43, %v1321_v11  ;;  %v1097_v18 = vmul.f32 %v9204_v41, %v9203_v37  ;;  %v9207_v40 = vunpack.c.h.bf16 %v9102_v49  ;;  %v9208_v43 = vld [vmem:[#allocation93_spill] sm:$0xff] }
 0x19a   :  { %v6477_v52 = vmin.f32 %v2216_v10, 16.0  ;;  %v6484_v61 = vmin.f32 %v2536_v0, 16.0  ;;  %v9206_v10 = vld [vmem:[#allocation86_spill] sm:$0xff]  ;;  %v1345_v37 = vmul.f32 %v9202_v38, %v9209_v2  ;;  %v9211_v49 = vunpack.c.h.bf16 %v9178_v23 }
 0x19b   :  { %v1105_v14 = vmul.f32 %v9206_v10, %v9205_v28  ;;  %v1616_v53 = vadd.f32 %v1615_v26, %v1081_v46  ;;  %v1911_v13 = vadd.f32 %v1910_v25, %v1329_v16  ;;  %v1113_v57 = vmul.f32 %v9208_v43, %v9207_v40 }
 0x19c   :  { %v2218_v59 = vmul.f32 2.1237322e-06, %v6477_v52  ;;  %v2229_v17 = vmul.f32 3.8918573e-05, %v6477_v52  ;;  %v2538_v9 = vmul.f32 2.1237322e-06, %v6484_v61  ;;  %v9210_v25 = vunpack.c.h.bf16 %v9176_v8 }
 0x19d   :  { %v2549_v0 = vmul.f32 3.8918573e-05, %v6484_v61  ;;  %v1617_v30 = vadd.f32 %v1616_v53, %v1089_v3  ;;  %v1912_v28 = vadd.f32 %v1911_v13, %v1337_v5  ;;  %v1361_v46 = vmul.f32 %v9206_v10, %v9211_v49  ;;  %v9215_v13 = vld [vmem:[#allocation72_spill] sm:$0xff] }
 0x19e   :  { %v2219_v45 = vadd.f32 0.00028619796, %v2218_v59  ;;  %v2230_v11 = vadd.f32 0.001143296, %v2229_v17  ;;  %v2539_v42 = vadd.f32 0.00028619796, %v2538_v9  ;;  %v1353_v26 = vmul.f32 %v9204_v41, %v9210_v25 }
 0x19f   :  { %v2550_v27 = vadd.f32 0.001143296, %v2549_v0  ;;  %v1618_v59 = vadd.f32 %v1617_v30, %v1097_v18  ;;  %v1913_v17 = vadd.f32 %v1912_v28, %v1345_v37  ;;  %v9212_v5 = vunpack.c.h.bf16 %v5790_v35  ;;  %v9213_v9 = vld [vmem:[#allocation56_spill] sm:$0xff] }
 0x1a0   :  { %v2220_v31 = vmul.f32 %v2219_v45, %v6477_v52  ;;  %v2231_v22 = vmul.f32 %v2230_v11, %v6477_v52  ;;  %v2540_v33 = vmul.f32 %v2539_v42, %v6484_v61  ;;  %v9214_v8 = vunpack.c.h.bf16 %v9113_v6 }
 0x1a1   :  { %v2551_v16 = vmul.f32 %v2550_v27, %v6484_v61  ;;  %v1121_v0 = vmul.f32 %v9213_v9, %v9212_v5  ;;  %v1619_v40 = vadd.f32 %v1618_v59, %v1105_v14  ;;  %v1914_v2 = vadd.f32 %v1913_v17, %v1353_v26 }
 0x1a2   :  { %v2221_v3 = vadd.f32 0.0036580483, %v2220_v31  ;;  %v2232_v53 = vadd.f32 0.014752088, %v2231_v22  ;;  %v1145_v45 = vmul.f32 %v9215_v13, %v9214_v8  ;;  %v2541_v11 = vadd.f32 0.0036580483, %v2540_v33 }
 0x1a3   :  { %v2552_v23 = vadd.f32 0.014752088, %v2551_v16  ;;  %v9216_v30 = vunpack.c.h.bf16 %v9110_v29  ;;  %v9217_v31 = vld [vmem:[#allocation107_spill] sm:$0xff]  ;;  %v9218_v35 = vunpack.c.h.bf16 %v9182_v60  ;;  %v1620_v28 = vadd.f32 %v1619_v40, %v1113_v57  ;;  %v9223_v8 = vld [vmem:[#allocation109_spill] sm:$0xff] }
 0x1a4   :  { %v2222_v42 = vmul.f32 %v2221_v3, %v6477_v52  ;;  %v2233_v27 = vmul.f32 %v2232_v53, %v6477_v52  ;;  %v2542_v6 = vmul.f32 %v2541_v11, %v6484_v61  ;;  %v1915_v25 = vadd.f32 %v1914_v2, %v1361_v46 }
 0x1a5   :  { %v1129_v22 = vmul.f32 %v9217_v31, %v9216_v30  ;;  %v1369_v18 = vmul.f32 %v9208_v43, %v9218_v35  ;;  %v2553_v37 = vmul.f32 %v2552_v23, %v6484_v61  ;;  %v9219_v49 = vunpack.c.h.bf16 %v9118_v56  ;;  %v9227_v35 = vld [vmem:[#allocation117_spill] sm:$0xff] }
 0x1a6   :  { %v2223_v14 = vadd.f32 0.05243302, %v2222_v42  ;;  %v2234_v26 = vadd.f32 0.112945676, %v2233_v27  ;;  %v9220_v29 = vunpack.c.h.bf16 %v9183_v51  ;;  %v9221_v60 = vunpack.c.h.bf16 %v9195_v1  ;;  %v9225_v27 = vld [vmem:[#allocation12_spill] sm:$0xff] }
 0x1a7   :  { %v1169_v33 = vmul.f32 %v9120_v34, %v9219_v49  ;;  %v2554_v59 = vadd.f32 0.112945676, %v2553_v37  ;;  %v1621_v3 = vadd.f32 %v1620_v28, %v1121_v0  ;;  %v1916_v53 = vadd.f32 %v1915_v25, %v1369_v18 }
 0x1a8   :  { %v1377_v16 = vmul.f32 %v9213_v9, %v9220_v29  ;;  %v1385_v17 = vmul.f32 %v9217_v31, %v9221_v60  ;;  %v2235_v57 = vmul.f32 %v2234_v26, %v6477_v52  ;;  %v2543_v46 = vadd.f32 0.05243302, %v2542_v6 }
 0x1a9   :  { %v9222_v5 = vunpack.c.h.bf16 %v9124_v20  ;;  %v9224_v11 = vunpack.c.h.bf16 %v9121_v12  ;;  %v2224_v23 = vmul.f32 %v2223_v14, %v6477_v52  ;;  %v2555_v1 = vmul.f32 %v2554_v59, %v6484_v61 }
 0x1aa   :  { %v1622_v40 = vadd.f32 %v1621_v3, %v1129_v22  ;;  %v1917_v2 = vadd.f32 %v1916_v53, %v1377_v16  ;;  %v2236_v0 = vadd.f32 0.4994258, %v2235_v57  ;;  %v497_v42 = vunpack.c.h.bf16 %v6183_v15  ;;  %v9229_v15 = vld [vmem:[#allocation112_spill] sm:$0xff]  ;;  %v9232_v57 = vld [vmem:[#allocation121_spill] sm:$0xff] }
 0x1ab   :  { %v1137_v56 = vmul.f32 %v9223_v8, %v9222_v5  ;;  %v6545_v51 = vmul.f32 %v9123_v62, %v9224_v11  ;;  %v705_v30 = vunpack.c.h.bf16 %v9225_v27  ;;  %v9226_v20 = vunpack.c.h.bf16 %v9172_v39  ;;  %v9236_v27 = vld [vmem:[#allocation113_spill] sm:$0xff] }
 0x1ac   :  { %v2556_v6 = vadd.f32 0.4994258, %v2555_v1  ;;  %v9228_v12 = vunpack.c.h.bf16 %v9196_v21  ;;  %v1918_v25 = vadd.f32 %v1917_v2, %v1385_v17  ;;  %v2237_v14 = vmul.f32 %v2236_v0, %v6477_v52  ;;  %v9230_v17 = vld [vmem:[#allocation68_spill] sm:$0xff] }
 0x1ad   :  { %v1153_v18 = vmul.f32 %v9227_v35, %v9226_v20  ;;  %v1623_v28 = vadd.f32 %v1622_v40, %v1137_v56  ;;  %v2544_v22 = vmul.f32 %v2543_v46, %v6484_v61  ;;  %v505_v26 = vunpack.c.h.bf16 %v6206_v58  ;;  %v9235_v40 = vld [vmem:[#allocation87_spill] sm:$0xff] }
 0x1ae   :  { %v1393_v37 = vmul.f32 %v9223_v8, %v9228_v12  ;;  %v713_v49 = vunpack.c.h.bf16 %v9229_v15  ;;  %v2225_v29 = vadd.f32 0.18741608, %v2224_v23  ;;  %v2557_v39 = vmul.f32 %v2556_v6, %v6484_v61  ;;  %v9238_v6 = vld [vmem:[#allocation120_spill] sm:$0xff] }
 0x1af   :  { %v1624_v16 = vadd.f32 %v1623_v28, %v1145_v45  ;;  %v6562_v60 = vadd.f32 1.0, %v2237_v14  ;;  %v521_v21 = vunpack.c.h.bf16 %v6239_v63  ;;  %v529_v3 = vunpack.c.h.bf16 %v6327_v7  ;;  %v9234_v63 = vld [vmem:[#allocation19_spill] sm:$0xff] }
 0x1b0   :  { %v1919_v59 = vadd.f32 %v1918_v25, %v1393_v37  ;;  %v9231_v53 = vunpack.c.h.bf16 %v9230_v17  ;;  %v6571_v46 = vadd.f32 1.0, %v2557_v39  ;;  %v9233_v58 = vunpack.c.h.bf16 %v9136_v55  ;;  %v9239_v37 = vld [vmem:[#allocation97_spill] sm:$0xff]  ;;  %v6674_v7 = vld [vmem:[%s8236_s0 + $0x1d0] sm:$0xff] }
 0x1b1   :  { %v1409_v45 = vmul.f32 %v9227_v35, %v705_v30  ;;  %v1625_v11 = vadd.f32 %v1624_v16, %v1153_v18  ;;  %3869 = vrcp.f32 %v6562_v60  ;;  %v2545_v23 = vadd.f32 0.18741608, %v2544_v22 }
 0x1b2   :  { %v6569_v5 = vmul.f32 %v9232_v57, %v9231_v53  ;;  %v1401_v56 = vmul.f32 %v9215_v13, %v9233_v58  ;;  %v729_v1 = vunpack.c.h.bf16 %v9234_v63  ;;  %v737_v2 = vunpack.c.h.bf16 %v9235_v40  ;;  %v9245_v53 = vld [vmem:[#allocation98_spill] sm:$0xff] }
 0x1b3   :  { %v2226_v0 = vmul.f32 %v2225_v29, %v6477_v52  ;;  %3871 = vrcp.f32 %v6571_v46  ;;  %v9237_v20 = vunpack.c.h.bf16 %v9236_v27  ;;  %v753_v28 = vunpack.c.h.bf16 %v9239_v37  ;;  %v9244_v29 = vld [vmem:[#allocation67_spill] sm:$0xff] }
 0x1b4   :  { %v1920_v12 = vadd.f32 %v1919_v59, %v1401_v56  ;;  %v9240_v30 = vunpack.c.h.bf16 %v9138_v54  ;;  %v9241_v25 = vunpack.c.h.bf16 %v9145_v47  ;;  %v9242_v22 = vunpack.c.h.bf16 %v6193_v36  ;;  %v9246_v47 = vld [vmem:[#allocation74_spill] sm:$0xff]  ;;  %v9248_v36 = vld [vmem:[#allocation57_spill] sm:$0xff] }
 0x1b5   :  { %v1161_v55 = vmul.f32 %v9238_v6, %v9237_v20  ;;  %v9243_v15 = vunpack.c.h.bf16 %v9191_v19  ;;  %v1417_v16 = vmul.f32 %v9238_v6, %v713_v49  ;;  %v2546_v54 = vmul.f32 %v2545_v23, %v6484_v61 }
 0x1b6   :  { %v1425_v18 = vmul.f32 %v9120_v34, %v9240_v30  ;;  %v1449_v14 = vmul.f32 %v9123_v62, %v9241_v25  ;;  %v6595_v52 = vmul.f32 %v9232_v57, %v9242_v22  ;;  %v1921_v17 = vadd.f32 %v1920_v12, %v1409_v45  ;;  %v9249_v25 = vld [vmem:[#allocation48_spill] sm:$0xff] }
 0x1b7   :  { %v1177_v39 = vmul.f32 %v9244_v29, %v9243_v15  ;;  %v1626_v59 = vadd.f32 %v1625_v11, %v1161_v55  ;;  %v761_v58 = vunpack.c.h.bf16 %v9245_v53  ;;  %v777_v56 = vunpack.c.h.bf16 %v9246_v47  ;;  %v3870_v30 = vpop.eup %3869  ;;  %v9250_v11 = vld [vmem:[#allocation125_spill] sm:$0xff]  ;;  %v9251_v55 = vld [vmem:[#allocation22_spill] sm:$0xff] }
 0x1b8   :  { %v9247_v63 = vunpack.c.h.bf16 %v9192_v44  ;;  %v2227_v27 = vadd.f32 1.1283791, %v2226_v0  ;;  %v1433_v20 = vmul.f32 %v9244_v29, %v729_v1  ;;  %v1922_v37 = vadd.f32 %v1921_v17, %v1417_v16  ;;  %v9252_v44 = vld [vmem:[#allocation114_spill] sm:$0xff] }
 0x1b9   :  { %v1627_v19 = vadd.f32 %v1626_v59, %v1169_v33  ;;  %v1201_v45 = vmul.f32 %v9250_v11, %v497_v42  ;;  %v1209_v61 = vmul.f32 %v9251_v55, %v505_v26  ;;  %v1441_v23 = vmul.f32 %v9248_v36, %v737_v2  ;;  %v3872_v12 = vpop.eup %3871 }
 0x1ba   :  { %v1185_v40 = vmul.f32 %v9248_v36, %v9247_v63  ;;  %v2240_v22 = vmul.f32 %v3870_v30, %v6562_v60  ;;  %v1225_v15 = vmul.f32 %v9252_v44, %v521_v21  ;;  %v1923_v0 = vadd.f32 %v1922_v37, %v1425_v18 }
 0x1bb   :  { %v1628_v53 = vadd.f32 %v1627_v19, %v1177_v39  ;;  %v2547_v47 = vadd.f32 1.1283791, %v2546_v54  ;;  %v2560_v33 = vmul.f32 %v3872_v12, %v6571_v46  ;;  %v1457_v1 = vmul.f32 %v9250_v11, %v753_v28 }
 0x1bc   :  { %v1465_v16 = vmul.f32 %v9251_v55, %v761_v58  ;;  %v2228_v42 = vmul.f32 %v2227_v27, %v6454_v32  ;;  %v2241_v59 = vsub.f32 1.0, %v2240_v22  ;;  %v1924_v17 = vadd.f32 %v1923_v0, %v1433_v20  ;;  %v6832_v55 = vld [vmem:[%s8236_s0 + $0x610] sm:$0xff] }
 0x1bd   :  { %v1629_v26 = vadd.f32 %v1628_v53, %v1185_v40  ;;  %v2248_v2 = vand.u32 2147483647, %v6562_v60  ;;  %v2250_v63 = vand.u32 2147483648, %v6562_v60  ;;  %v2561_v49 = vsub.f32 1.0, %v2560_v33  ;;  %v6646_v33 = vld [vmem:[%s8236_s0 + $0x150] sm:$0xff]  ;;  %9281 = vst [vmem:[#allocation116_spill] sm:$0xff] %v6832_v55 }
 0x1be   :  { %v2570_v21 = vand.u32 2147483648, %v6571_v46  ;;  %v2242_v18 = vmul.f32 %v3870_v30, %v2241_v59  ;;  %vm2245_vm1 = vweird.f32 %v3870_v30  ;;  %v1925_v54 = vadd.f32 %v1924_v17, %v1441_v23  ;;  %9256 = vst [vmem:[#allocation20_spill] sm:$0xff] %v6646_v33 }
 0x1bf   :  { %v1630_v39 = vadd.f32 %v1629_v26, %v6545_v51  ;;  %vm2244_vm2 = vweird.f32 %v6562_v60  ;;  %v2562_v28 = vmul.f32 %v3872_v12, %v2561_v49  ;;  %vm2565_vm3 = vweird.f32 %v3872_v12  ;;  %v6629_v51 = vld [vmem:[%s8236_s0 + $0x110] sm:$0xff] }
 0x1c0   :  { %v2568_v32 = vand.u32 2147483647, %v6571_v46  ;;  %v2243_v58 = vadd.f32 %v3870_v30, %v2242_v18  ;;  %v2548_v40 = vmul.f32 %v2547_v47, %v6462_v48  ;;  %v1926_v20 = vadd.f32 %v1925_v54, %v1449_v14  ;;  %vm2246_vm4 = vmor %vm2244_vm2, %vm2245_vm1  ;;  %9253 = vst [vmem:[#allocation26_spill] sm:$0xff] %v6629_v51  ;;  %v6634_v48 = vld [vmem:[%s8236_s0 + $0xf0] sm:$0xff] }
 0x1c1   :  { %v1631_v27 = vadd.f32 %v1630_v39, %v1201_v45  ;;  %vm2249_vm5 = vcmp.eq.f32.partialorder %v2248_v2, 8.507059e+37  ;;  %v2251_v19 = vor.u32 1.1754944e-38, %v2250_v63  ;;  %v2563_v37 = vadd.f32 %v3872_v12, %v2562_v28  ;;  %9254 = vst [vmem:[#allocation54_spill] sm:$0xff] %v6634_v48  ;;  %v6639_v14 = vld [vmem:[%s8236_s0 + $0x130] sm:$0xff] }
 0x1c2   :  { %vm2564_vm6 = vweird.f32 %v6571_v46  ;;  %v2247_v60 = vsel %vm2246_vm4, %v3870_v30, %v2243_v58  ;;  %v2571_v49 = vor.u32 1.1754944e-38, %v2570_v21  ;;  %v1927_v22 = vadd.f32 %v1926_v20, %v1457_v1  ;;  %9255 = vst [vmem:[#allocation13_spill] sm:$0xff] %v6639_v14  ;;  %v6651_v1 = vld [vmem:[%s8236_s0 + $0x170] sm:$0xff] }
 0x1c3   :  { %vm2566_vm7 = vmor %vm2564_vm6, %vm2565_vm3  ;;  %v1632_v23 = vadd.f32 %v1631_v27, %v1209_v61  ;;  %v2252_v46 = vsel %vm2249_vm5, %v2251_v19, %v2247_v60  ;;  %vm2569_vm9 = vcmp.eq.f32.partialorder %v2568_v32, 8.507059e+37  ;;  %v1481_v53 = vmul.f32 %v9252_v44, %v777_v56  ;;  %9257 = vst [vmem:[#allocation31_spill] sm:$0xff] %v6651_v1  ;;  %v6663_v63 = vld [vmem:[%s8236_s0 + $0x190] sm:$0xff]  ;;  %v9269_v60 = vld [vmem:[#allocation50_spill] sm:$0xff] }
 0x1c4   :  { %v2567_v45 = vsel %vm2566_vm7, %v3872_v12, %v2563_v37  ;;  %v2253_v30 = vmul.f32 %v2252_v46, %v2228_v42  ;;  %v1928_v47 = vadd.f32 %v1927_v22, %v1465_v16  ;;  %9259 = vst [vmem:[#allocation39_spill] sm:$0xff] %v6663_v63  ;;  %v6668_v21 = vld [vmem:[%s8236_s0 + $0x1b0] sm:$0xff]  ;;  %v2106_v18 = vmul.f32 0.5, %v6444_v4  ;;  %v9278_v56 = vld [vmem:[#allocation14_spill] sm:$0xff] }
 0x1c5   :  { %v2572_v0 = vsel %vm2569_vm9, %v2571_v49, %v2567_v45  ;;  %v1633_v61 = vadd.f32 %v1632_v23, %v6569_v5  ;;  %v9258_v5 = vld [vmem:[#allocation94_spill] sm:$0xff]  ;;  %v9260_v54 = vunpack.c.h.bf16 %v9249_v25  ;;  %v6684_v4 = vld [vmem:[%s8236_s0 + $0x1f0] sm:$0xff]  ;;  %v2114_v25 = vmul.f32 0.5, %v6450_v24 }
 0x1c6   :  { %v2573_v59 = vmul.f32 %v2572_v0, %v2548_v40  ;;  %v3521_v26 = vclamps-f32 %v2253_v30, 1.0  ;;  %v1233_v16 = vmul.f32 %v9258_v5, %v529_v3  ;;  %v1929_v2 = vadd.f32 %v1928_v47, %v6595_v52  ;;  %v6689_v40 = vld [vmem:[%s8236_s0 + $0x210] sm:$0xff]  ;;  %v9271_v52 = vld [vmem:[#allocation58_spill] sm:$0xff] }
 0x1c7   :  { %v1634_v17 = vadd.f32 %v1633_v61, %v1225_v15  ;;  %v1489_v28 = vmul.f32 %v9258_v5, %v9260_v54  ;;  %v6694_v27 = vld [vmem:[%s8236_s0 + $0x230] sm:$0xff] }
 0x1c8   :  { %v3529_v39 = vclamps-f32 %v2573_v59, 1.0  ;;  %v2778_v15 = vadd.f32 1.0, %v3521_v26  ;;  %v1930_v58 = vadd.f32 %v1929_v2, %v1481_v53  ;;  %v6700_v19 = vld [vmem:[%s8236_s0 + $0x290] sm:$0xff] }
 0x1c9   :  { %v1635_v32 = vadd.f32 %v1634_v17, %v1233_v16  ;;  %v6707_v46 = vld [vmem:[%s8236_s0 + $0x2f0] sm:$0xff] }
 0x1ca   :  { %v2786_v20 = vadd.f32 1.0, %v3529_v39  ;;  %v2794_v49 = vmul.f32 %v2778_v15, %v2106_v18  ;;  %v1931_v22 = vadd.f32 %v1930_v58, %v1489_v28  ;;  %v6712_v24 = vld [vmem:[%s8236_s0 + $0x350] sm:$0xff] }
 0x1cb   :  { %v1636_v23 = vrot.slane %v1635_v32, 4  ;;  %v6717_v45 = vld [vmem:[%s8236_s0 + $0x4f0] sm:$0xff] }
 0x1cc   :  { %9261 = vst [vmem:[#allocation30_spill] sm:$0xff] %v6717_v45  ;;  %v2802_v30 = vmul.f32 %v2786_v20, %v2114_v25  ;;  %v6723_v0 = vld [vmem:[%s8236_s0 + $0x250] sm:$0xff]  ;;  %v2810_v26 = vpack.c.bf16 %v2794_v49, %v2794_v49  ;;  %v1932_v17 = vrot.slane %v1931_v22, 4 }
 0x1cd   :  { %v1637_v16 = vadd.f32 %v1636_v23, %v1635_v32  ;;  %v6731_v2 = vld [vmem:[%s8236_s0 + $0x270] sm:$0xff] }
 0x1ce   :  { %v6736_v18 = vld [vmem:[%s8236_s0 + $0x3b0] sm:$0xff]  ;;  %v2818_v54 = vpack.c.bf16 %v2802_v30, %v2802_v30  ;;  %v2974_v25 = vunpack.c.l.b16 %v2810_v26  ;;  %v1933_v49 = vadd.f32 %v1932_v17, %v1931_v22 }
 0x1cf   :  { %v6741_v39 = vld [vmem:[%s8236_s0 + $0x510] sm:$0xff]  ;;  %v1638_v20 = vrot.slane %v1637_v16, 2 }
 0x1d0   :  { %9262 = vst [vmem:[#allocation122_spill] sm:$0xff] %v6741_v39  ;;  %v6750_v23 = vld [vmem:[%s8236_s0 + $0x2b0] sm:$0xff]  ;;  %v2982_v26 = vunpack.c.l.b16 %v2818_v54  ;;  %v602_v15 = vunpack.c.l.bf16 %v6741_v39  ;;  %v1934_v61 = vrot.slane %v1933_v49, 2 }
 0x1d1   :  { %v6755_v59 = vld [vmem:[%s8236_s0 + $0x2d0] sm:$0xff]  ;;  %v1639_v47 = vadd.f32 %v1638_v20, %v1637_v16 }
 0x1d2   :  { %9263 = vst [vmem:[#allocation99_spill] sm:$0xff] %v6755_v59  ;;  %v6760_v30 = vld [vmem:[%s8236_s0 + $0x530] sm:$0xff]  ;;  %v2991_v3 = vsel %vm2988_vm8, %v2982_v26, %v2974_v25 }
 0x1d3   :  { %9264 = vst [vmem:[#allocation18_spill] sm:$0xff] %v6760_v30  ;;  %v6766_v22 = vld [vmem:[%s8236_s0 + $0x550] sm:$0xff] }
 0x1d4   :  { %9265 = vst [vmem:[#allocation123_spill] sm:$0xff] %v6766_v22  ;;  %v6774_v53 = vld [vmem:[%s8236_s0 + $0x310] sm:$0xff]  ;;  %v618_v42 = vunpack.c.l.bf16 %v6766_v22 }
 0x1d5   :  { %9266 = vst [vmem:[#allocation29_spill] sm:$0xff] %v6774_v53  ;;  %v6779_v54 = vld [vmem:[%s8236_s0 + $0x330] sm:$0xff] }
 0x1d6   :  { %9267 = vst [vmem:[#allocation92_spill] sm:$0xff] %v6779_v54  ;;  %v9268_v32 = vld [vmem:[#allocation75_spill] sm:$0xff] }
 0x1d7   :  { %v1644_v37 = vadd.f32 %v9269_v60, %v9268_v32  ;;  %v9270_v17 = vld [vmem:[#allocation27_spill] sm:$0xff]  ;;  %v610_v60 = vunpack.c.l.bf16 %v6760_v30  ;;  %v2999_v32 = vpack.c.b16 %v2991_v3, %v2991_v3  ;;  %v9279_v30 = vld [vmem:[#allocation21_spill] sm:$0xff] }
 0x1d8   :  { %v1940_v28 = vadd.f32 %v9271_v52, %v9270_v17  ;;  %v6789_v16 = vld [vmem:[%s8236_s0 + $0x570] sm:$0xff]  ;;  %v1640_v52 = vrot.slane %v1639_v47, 1  ;;  %v1935_v17 = vadd.f32 %v1934_v61, %v1933_v49 }
 0x1d9   :  { %9272 = vst [vmem:[#allocation111_spill] sm:$0xff] %v6789_v16  ;;  %v6794_v20 = vld [vmem:[%s8236_s0 + $0x590] sm:$0xff]  ;;  %v1645_v12 = vadd.f32 %v1644_v37, %v9278_v56  ;;  %3431 = vmatmul.bf16.vlgmr.msra.gmra.mxu2 %v2999_v32  ;;  %v626_v61 = vunpack.c.l.bf16 %v6789_v16 }
 0x1da   :  { %9273 = vst [vmem:[#allocation105_spill] sm:$0xff] %v6794_v20  ;;  %v6802_v25 = vld [vmem:[%s8236_s0 + $0x370] sm:$0xff]  ;;  %v1941_v39 = vadd.f32 %v1940_v28, %v9279_v30  ;;  %v1641_v5 = vadd.f32 %v1640_v52, %v1639_v47  ;;  %v1936_v44 = vrot.slane %v1935_v17, 1  ;;  %v9283_v30 = vld [vmem:[#allocation33_spill] sm:$0xff] }
 0x1db   :  { %9274 = vst [vmem:[#allocation101_spill] sm:$0xff] %v6802_v25  ;;  %v6807_v26 = vld [vmem:[%s8236_s0 + $0x5b0] sm:$0xff]  ;;  %v1646_v32 = vadd.f32 %v1645_v12, %v9283_v30  ;;  %v9298_v12 = vunpack.c.l.bf16 %v6639_v14  ;;  %v9306_v14 = vunpack.c.l.bf16 %v6651_v1 }
 0x1dc   :  { %9275 = vst [vmem:[#allocation95_spill] sm:$0xff] %v6807_v26  ;;  %v6812_v58 = vld [vmem:[%s8236_s0 + $0x5d0] sm:$0xff]  ;;  %v1937_v52 = vadd.f32 %v1936_v44, %v1935_v17  ;;  %v6846_v11 = vadd.f32 %v9190_v50, %v1641_v5  ;;  %v9288_v5 = vunpack.c.l.bf16 %v6634_v48  ;;  %v9289_v17 = vld [vmem:[#allocation46_spill] sm:$0xff] }
 0x1dd   :  { %9276 = vst [vmem:[#allocation66_spill] sm:$0xff] %v6812_v58  ;;  %v6818_v3 = vld [vmem:[%s8236_s0 + $0x390] sm:$0xff] }
 0x1de   :  { %9277 = vst [vmem:[#allocation118_spill] sm:$0xff] %v6818_v3  ;;  %v6827_v22 = vld [vmem:[%s8236_s0 + $0x5f0] sm:$0xff]  ;;  %v1042_v30 = vmul.f32 %v9289_v17, %v9288_v5  ;;  %v6870_v28 = vmul.f32 0.70710677, %v6846_v11  ;;  %v9293_v3 = vld [vmem:[#allocation89_spill] sm:$0xff] }
 0x1df   :  { %9280 = vst [vmem:[#allocation38_spill] sm:$0xff] %v6827_v22  ;;  %v6839_v56 = vld [vmem:[%s8236_s0 + $0x630] sm:$0xff] }
 0x1e0   :  { %9282 = vst [vmem:[#allocation119_spill] sm:$0xff] %v6839_v56  ;;  %v9285_v49 = vld [vmem:[#allocation40_spill] sm:$0xff]  ;;  %v9290_v16 = vld [vmem:[#allocation83_spill] sm:$0xff]  ;;  %v2256_v53 = vmul.f32 %v6870_v28, %v6870_v28 }
 0x1e1   :  { %9284 = vst [vmem:[#allocation37_spill] sm:$0xff] %v6846_v11  ;;  %v1942_v36 = vadd.f32 %v1941_v39, %v9285_v49  ;;  %v6853_v54 = vld [vmem:[%s8236_s0 + $0x650] sm:$0xff]  ;;  %v1647_v39 = vadd.f32 %v1646_v32, %v9290_v16  ;;  %v6867_v49 = vadd.f32 %v9190_v50, %v1937_v52  ;;  %v9296_v16 = vunpack.c.l.bf16 %v6629_v51  ;;  %v9297_v32 = vld [vmem:[#allocation10_spill] sm:$0xff] }
 0x1e2   :  { %9286 = vst [vmem:[#allocation100_spill] sm:$0xff] %v6853_v54  ;;  %v6858_v37 = vld [vmem:[%s8236_s0 + $0x670] sm:$0xff] }
 0x1e3   :  { %9287 = vst [vmem:[#allocation43_spill] sm:$0xff] %v6858_v37  ;;  %v1943_v25 = vadd.f32 %v1942_v36, %v9293_v3  ;;  %v6877_v44 = vld [vmem:[%s8236_s0 + $0x690] sm:$0xff]  ;;  %v1050_v52 = vmul.f32 %v9297_v32, %v9296_v16  ;;  %v9300_v36 = vunpack.c.l.bf16 %v6717_v45  ;;  %v1648_v11 = vadd.f32 %v1647_v39, %v1042_v30 }
 0x1e4   :  { %9291 = vst [vmem:[#allocation49_spill] sm:$0xff] %v6867_v49  ;;  %v6882_v5 = vld [vmem:[%s8236_s0 + $0x6f0] sm:$0xff]  ;;  %v6894_v29 = vmul.f32 0.70710677, %v6867_v49  ;;  %v1306_v45 = vmul.f32 %v9297_v32, %v602_v15 }
 0x1e5   :  { %9292 = vst [vmem:[#allocation115_spill] sm:$0xff] %v6870_v28  ;;  %v9299_v50 = vld [vmem:[#allocation63_spill] sm:$0xff]  ;;  %v1298_v3 = vmul.f32 %v9289_v17, %v9300_v36  ;;  %v1649_v30 = vadd.f32 %v1648_v11, %v1050_v52  ;;  %v6907_v17 = vmin.f32 %v2256_v53, 16.0  ;;  %v9305_v11 = vld [vmem:[#allocation62_spill] sm:$0xff] }
 0x1e6   :  { %9294 = vst [vmem:[#allocation108_spill] sm:$0xff] %v6877_v44  ;;  %v1058_v47 = vmul.f32 %v9299_v50, %v9298_v12  ;;  %v6901_v51 = vld [vmem:[%s8236_s0 + $0x750] sm:$0xff]  ;;  %v1314_v36 = vmul.f32 %v9299_v50, %v610_v60  ;;  %v2576_v49 = vmul.f32 %v6894_v29, %v6894_v29  ;;  %v9304_v60 = vunpack.c.l.bf16 %v6646_v33 }
 0x1e7   :  { %9295 = vst [vmem:[#allocation44_spill] sm:$0xff] %v6882_v5  ;;  %v1944_v39 = vadd.f32 %v1943_v25, %v1298_v3  ;;  %v6916_v16 = vld [vmem:[%s8236_s0 + $0x7b0] sm:$0xff]  ;;  %v2258_v3 = vmul.f32 2.1237322e-06, %v6907_v17  ;;  %v2269_v12 = vmul.f32 3.8918573e-05, %v6907_v17  ;;  %v1322_v33 = vmul.f32 %v9305_v11, %v618_v42 }
 0x1e8   :  { %9301 = vst [vmem:[#allocation55_spill] sm:$0xff] %v6894_v29  ;;  %v1066_v25 = vmul.f32 %v9305_v11, %v9304_v60  ;;  %v1650_v53 = vadd.f32 %v1649_v30, %v1058_v47  ;;  %v6924_v28 = vmin.f32 %v2576_v49, 16.0  ;;  %v9307_v50 = vld [vmem:[#allocation32_spill] sm:$0xff]  ;;  %v9308_v29 = vunpack.c.l.bf16 %v6663_v63  ;;  %v9309_v37 = vld [vmem:[#allocation71_spill] sm:$0xff] }
 0x1e9   :  { %9302 = vst [vmem:[#allocation69_spill] sm:$0xff] %v6901_v51  ;;  %v1945_v52 = vadd.f32 %v1944_v39, %v1306_v45  ;;  %v1074_v32 = vmul.f32 %v9307_v50, %v9306_v14  ;;  %v2259_v47 = vadd.f32 0.00028619796, %v2258_v3  ;;  %v2270_v45 = vadd.f32 0.001143296, %v2269_v12 }
 0x1ea   :  { %9303 = vst [vmem:[#allocation6_spill] sm:$0xff] %v6916_v16  ;;  %v1082_v15 = vmul.f32 %v9309_v37, %v9308_v29  ;;  %v1651_v48 = vadd.f32 %v1650_v53, %v1066_v25  ;;  %v2578_v30 = vmul.f32 2.1237322e-06, %v6924_v28  ;;  %v2589_v49 = vmul.f32 3.8918573e-05, %v6924_v28 }
 0x1eb   :  { %v1946_v60 = vadd.f32 %v1945_v52, %v1314_v36  ;;  %v1330_v1 = vmul.f32 %v9307_v50, %v626_v61  ;;  %v2260_v63 = vmul.f32 %v2259_v47, %v6907_v17  ;;  %v2271_v29 = vmul.f32 %v2270_v45, %v6907_v17  ;;  %v6957_v47 = vld [vmem:[%s8236_s0 + $0x3f0] sm:$0xff] }
 0x1ec   :  { %v1652_v6 = vadd.f32 %v1651_v48, %v1074_v32  ;;  %v2579_v59 = vadd.f32 0.00028619796, %v2578_v30  ;;  %v9310_v42 = vunpack.c.l.bf16 %v6794_v20  ;;  %v2590_v12 = vadd.f32 0.001143296, %v2589_v49 }
 0x1ed   :  { %v1947_v14 = vadd.f32 %v1946_v60, %v1322_v33  ;;  %v9311_v25 = vunpack.c.l.bf16 %v6668_v21  ;;  %v9312_v52 = vunpack.c.l.bf16 %v6674_v7  ;;  %v2261_v33 = vadd.f32 0.0036580483, %v2260_v63  ;;  %v6952_v60 = vld [vmem:[%s8236_s0 + $0x3d0] sm:$0xff] }
 0x1ee   :  { %v1338_v36 = vmul.f32 %v9309_v37, %v9310_v42  ;;  %v1653_v48 = vadd.f32 %v1652_v6, %v1082_v15  ;;  %v2272_v32 = vadd.f32 0.014752088, %v2271_v29  ;;  %v2580_v3 = vmul.f32 %v2579_v59, %v6924_v28  ;;  %v6963_v6 = vld [vmem:[%s8236_s0 + $0x6b0] sm:$0xff] }
 0x1ef   :  { %v1090_v53 = vmul.f32 %v9202_v38, %v9311_v25  ;;  %v1098_v61 = vmul.f32 %v9204_v41, %v9312_v52  ;;  %v1948_v45 = vadd.f32 %v1947_v14, %v1330_v1  ;;  %v2591_v30 = vmul.f32 %v2590_v12, %v6924_v28  ;;  %9313 = vst [vmem:[#allocation102_spill] sm:$0xff] %v6963_v6  ;;  %v6968_v63 = vld [vmem:[%s8236_s0 + $0x6d0] sm:$0xff] }
 0x1f0   :  { %v9314_v59 = vunpack.c.l.bf16 %v6684_v4  ;;  %v9315_v49 = vunpack.c.l.bf16 %v6807_v26  ;;  %v2262_v29 = vmul.f32 %v2261_v33, %v6907_v17  ;;  %v2273_v42 = vmul.f32 %v2272_v32, %v6907_v17 }
 0x1f1   :  { %v1654_v14 = vadd.f32 %v1653_v48, %v1090_v53  ;;  %v2581_v12 = vadd.f32 0.0036580483, %v2580_v3  ;;  %v1949_v25 = vadd.f32 %v1948_v45, %v1338_v36  ;;  %v2592_v52 = vadd.f32 0.014752088, %v2591_v30 }
 0x1f2   :  { %v1106_v15 = vmul.f32 %v9206_v10, %v9314_v59  ;;  %v1346_v1 = vmul.f32 %v9202_v38, %v9315_v49  ;;  %v2274_v11 = vadd.f32 0.112945676, %v2273_v42  ;;  %v9316_v48 = vunpack.c.l.bf16 %v6689_v40  ;;  %v6994_v49 = vld [vmem:[%s8236_s0 + $0x710] sm:$0xff]  ;;  %v3850_v38 = vld [vmem:[%s8239_s3 + $0x1d8] sm:$0xff] }
 0x1f3   :  { %v1655_v50 = vadd.f32 %v1654_v14, %v1098_v61  ;;  %v2593_v53 = vmul.f32 %v2592_v52, %v6924_v28  ;;  %v9317_v36 = vunpack.c.l.bf16 %v6812_v58  ;;  %v2263_v45 = vadd.f32 0.05243302, %v2262_v29  ;;  %3492 = vmatpush.bf16.msrb.mxu3 %v3850_v38  ;;  %v9354_v58 = vld [vmem:[#allocation125_spill] sm:$0xff] }
 0x1f4   :  { %v1950_v20 = vadd.f32 %v1949_v25, %v1346_v1  ;;  %v1114_v33 = vmul.f32 %v9208_v43, %v9316_v48  ;;  %v2275_v61 = vmul.f32 %v2274_v11, %v6907_v17  ;;  %v2582_v30 = vmul.f32 %v2581_v12, %v6924_v28 }
 0x1f5   :  { %v1354_v32 = vmul.f32 %v9204_v41, %v9317_v36  ;;  %v1656_v3 = vadd.f32 %v1655_v50, %v1106_v15  ;;  %v9318_v1 = vunpack.c.l.bf16 %v6827_v22  ;;  %v2594_v42 = vadd.f32 0.112945676, %v2593_v53  ;;  %v9352_v22 = vld [vmem:[#allocation101_spill] sm:$0xff] }
 0x1f6   :  { %v9319_v25 = vunpack.c.l.bf16 %v6694_v27  ;;  %v9320_v50 = vunpack.c.l.bf16 %v6723_v0  ;;  %v2276_v29 = vadd.f32 0.4994258, %v2275_v61  ;;  %v9321_v12 = vunpack.c.l.bf16 %v6700_v19 }
 0x1f7   :  { %v1362_v14 = vmul.f32 %v9206_v10, %v9318_v1  ;;  %v1657_v15 = vadd.f32 %v1656_v3, %v1114_v33  ;;  %v9322_v36 = vunpack.c.l.bf16 %v6707_v46  ;;  %v1951_v53 = vadd.f32 %v1950_v20, %v1354_v32 }
 0x1f8   :  { %v1122_v52 = vmul.f32 %v9213_v9, %v9319_v25  ;;  %v1130_v11 = vmul.f32 %v9217_v31, %v9320_v50  ;;  %v1146_v48 = vmul.f32 %v9215_v13, %v9321_v12  ;;  %v2595_v1 = vmul.f32 %v2594_v42, %v6924_v28  ;;  %v7017_v25 = vld [vmem:[%s8236_s0 + $0x730] sm:$0xff] }
 0x1f9   :  { %v7011_v37 = vmul.f32 %v9120_v34, %v9322_v36  ;;  %v9323_v3 = vunpack.c.l.bf16 %v6712_v24  ;;  %v2264_v12 = vmul.f32 %v2263_v45, %v6907_v17  ;;  %v2277_v36 = vmul.f32 %v2276_v29, %v6907_v17 }
 0x1fa   :  { %v1658_v50 = vadd.f32 %v1657_v15, %v1122_v52  ;;  %v2583_v20 = vadd.f32 0.05243302, %v2582_v30  ;;  %v1952_v32 = vadd.f32 %v1951_v53, %v1362_v14  ;;  %v2596_v42 = vadd.f32 0.4994258, %v2595_v1 }
 0x1fb   :  { %v7023_v61 = vmul.f32 %v9123_v62, %v9323_v3  ;;  %v9324_v39 = vunpack.c.l.bf16 %v6731_v2  ;;  %v9325_v59 = vunpack.c.l.bf16 %v6832_v55  ;;  %v7033_v41 = vadd.f32 1.0, %v2277_v36 }
 0x1fc   :  { %v1659_v10 = vadd.f32 %v1658_v50, %v1130_v11  ;;  %v9326_v45 = vunpack.c.l.bf16 %v6736_v18  ;;  %v9327_v30 = vunpack.c.l.bf16 %v6839_v56  ;;  %v7053_v11 = vld [vmem:[%s8236_s0 + $0x790] sm:$0xff]  ;;  %v9328_v29 = vunpack.c.l.bf16 %v6877_v44 }
 0x1fd   :  { %v1138_v26 = vmul.f32 %v9223_v8, %v9324_v39  ;;  %v1370_v33 = vmul.f32 %v9208_v43, %v9325_v59  ;;  %v2597_v39 = vmul.f32 %v2596_v42, %v6924_v28  ;;  %v7048_v59 = vld [vmem:[%s8236_s0 + $0x770] sm:$0xff]  ;;  %v2265_v50 = vadd.f32 0.18741608, %v2264_v12 }
 0x1fe   :  { %v7039_v15 = vmul.f32 %v9232_v57, %v9326_v45  ;;  %v1378_v14 = vmul.f32 %v9213_v9, %v9327_v30  ;;  %v1402_v53 = vmul.f32 %v9215_v13, %v9328_v29  ;;  %3873 = vrcp.f32 %v7033_v41 }
 0x1ff   :  { %v1660_v1 = vadd.f32 %v1659_v10, %v1138_v26  ;;  %v1953_v3 = vadd.f32 %v1952_v32, %v1370_v33  ;;  %v2584_v36 = vmul.f32 %v2583_v20, %v6924_v28  ;;  %v9329_v42 = vunpack.c.l.bf16 %v6882_v5  ;;  %v9333_v32 = vld [vmem:[#allocation99_spill] sm:$0xff] }
 0x200   :  { %v7065_v30 = vadd.f32 1.0, %v2597_v39  ;;  %v9330_v52 = vunpack.c.l.bf16 %v6750_v23  ;;  %v9331_v29 = vunpack.c.l.bf16 %v6853_v54  ;;  %v9332_v26 = vunpack.c.l.bf16 %v6901_v51  ;;  %v9338_v54 = vld [vmem:[#allocation43_spill] sm:$0xff] }
 0x201   :  { %v7063_v45 = vmul.f32 %v9120_v34, %v9329_v42  ;;  %v9334_v39 = vunpack.c.l.bf16 %v9333_v32  ;;  %v9335_v42 = vld [vmem:[#allocation120_spill] sm:$0xff]  ;;  %v1661_v20 = vadd.f32 %v1660_v1, %v1146_v48  ;;  %v1954_v12 = vadd.f32 %v1953_v3, %v1378_v14 }
 0x202   :  { %v1154_v9 = vmul.f32 %v9227_v35, %v9330_v52  ;;  %v1386_v10 = vmul.f32 %v9217_v31, %v9331_v29  ;;  %v7076_v33 = vmul.f32 %v9123_v62, %v9332_v26  ;;  %3875 = vrcp.f32 %v7065_v30  ;;  %v3826_v52 = vld [vmem:[%s8239_s3 + $0x118] sm:$0xff]  ;;  %v3825_v48 = vld [vmem:[%s8239_s3 + $0x110] sm:$0xff] }
 0x203   :  { %v1162_v34 = vmul.f32 %v9335_v42, %v9334_v39  ;;  %v3834_v29 = vld [vmem:[%s8239_s3 + $0x158] sm:$0xff]  ;;  %v2266_v43 = vmul.f32 %v2265_v50, %v6907_v17  ;;  %v2585_v31 = vadd.f32 0.18741608, %v2584_v36  ;;  %v9339_v51 = vunpack.c.l.bf16 %v9338_v54  ;;  %3453 = vmatpush.bf16.msrb.mxu0 %v3826_v52  ;;  %v3833_v17 = vld [vmem:[%s8239_s3 + $0x150] sm:$0xff] }
 0x204   :  { %v3842_v26 = vld [vmem:[%s8239_s3 + $0x198] sm:$0xff]  ;;  %3466 = vmatpush.bf16.msrb.mxu1 %v3834_v29  ;;  %v9341_v14 = vunpack.c.l.bf16 %v6916_v16  ;;  %v1662_v3 = vadd.f32 %v1661_v20, %v1154_v9  ;;  %v1955_v50 = vadd.f32 %v1954_v12, %v1386_v10  ;;  %v7115_v56 = vpop.eup %3873  ;;  %v3841_v52 = vld [vmem:[%s8239_s3 + $0x190] sm:$0xff]  ;;  %v9349_v36 = vunpack.c.l.bf16 %v6963_v6 }
 0x205   :  { %v1394_v5 = vmul.f32 %v9223_v8, %v9339_v51  ;;  %3479 = vmatpush.bf16.msrb.mxu2 %v3842_v26  ;;  %v3849_v29 = vld [vmem:[%s8239_s3 + $0x1d0] sm:$0xff]  ;;  %v9343_v39 = vld [vmem:[#allocation29_spill] sm:$0xff]  ;;  %v2280_v54 = vmul.f32 %v7115_v56, %v7033_v41  ;;  %v9351_v51 = vunpack.c.l.bf16 %v6968_v63  ;;  %v2586_v55 = vmul.f32 %v2585_v31, %v6924_v28 }
 0x206   :  { %v7112_v1 = vmul.f32 %v9232_v57, %v9341_v14  ;;  %v9344_v8 = vunpack.c.l.bf16 %v9343_v39  ;;  %v9345_v14 = vld [vmem:[#allocation67_spill] sm:$0xff]  ;;  %v9346_v9 = vld [vmem:[#allocation92_spill] sm:$0xff]  ;;  %v9348_v12 = vld [vmem:[#allocation57_spill] sm:$0xff]  ;;  %v1410_v38 = vmul.f32 %v9227_v35, %v9349_v36  ;;  %v1663_v62 = vadd.f32 %v1662_v3, %v1162_v34  ;;  %3493 = vmatpush.bf16.msrb.mxu3 %v3849_v29 }
 0x207   :  { %v9347_v10 = vunpack.c.l.bf16 %v9346_v9  ;;  %v1418_v44 = vmul.f32 %v9335_v42, %v9351_v51  ;;  %v1956_v13 = vadd.f32 %v1955_v50, %v1394_v5  ;;  %v9355_v9 = vld [vmem:[#allocation118_spill] sm:$0xff]  ;;  %v2281_v39 = vsub.f32 1.0, %v2280_v54  ;;  %3454 = vmatpush.bf16.msrb.mxu0 %v3825_v48 }
 0x208   :  { %v1178_v57 = vmul.f32 %v9345_v14, %v9344_v8  ;;  %v2267_v8 = vadd.f32 1.1283791, %v2266_v43  ;;  %v9356_v36 = vunpack.c.l.bf16 %v9355_v9  ;;  %v9357_v35 = vld [vmem:[#allocation22_spill] sm:$0xff]  ;;  %v7147_v26 = vpop.eup %3875  ;;  %3467 = vmatpush.bf16.msrb.mxu1 %v3833_v17  ;;  %v9358_v31 = vunpack.c.l.bf16 %v6994_v49 }
 0x209   :  { %v1186_v20 = vmul.f32 %v9348_v12, %v9347_v10  ;;  %v9353_v10 = vunpack.c.l.bf16 %v9352_v22  ;;  %v3824_v34 = vld [vmem:[%s8239_s3 + $0x108] sm:$0xff]  ;;  %v1664_v5 = vadd.f32 %v1663_v62, %v7011_v37  ;;  %v1957_v3 = vadd.f32 %v1956_v13, %v1402_v53  ;;  %3480 = vmatpush.bf16.msrb.mxu2 %v3841_v52 }
 0x20a   :  { %v7145_v16 = vmul.f32 %v9357_v35, %v9356_v36  ;;  %v3832_v43 = vld [vmem:[%s8239_s3 + $0x148] sm:$0xff]  ;;  %v1434_v28 = vmul.f32 %v9345_v14, %v9358_v31  ;;  %v2288_v50 = vand.u32 2147483647, %v7033_v41  ;;  %v2290_v54 = vand.u32 2147483648, %v7033_v41 }
 0x20b   :  { %v1202_v6 = vmul.f32 %v9354_v58, %v9353_v10  ;;  %v2600_v48 = vmul.f32 %v7147_v26, %v7065_v30  ;;  %v3840_v17 = vld [vmem:[%s8239_s3 + $0x188] sm:$0xff]  ;;  %v9359_v62 = vunpack.c.l.bf16 %v7017_v25  ;;  %v2282_v37 = vmul.f32 %v7115_v56, %v2281_v39  ;;  %3455 = vmatpush.bf16.msrb.mxu0 %v3824_v34  ;;  %v3823_v39 = vld [vmem:[%s8239_s3 + $0x100] sm:$0xff] }
 0x20c   :  { %v3848_v51 = vld [vmem:[%s8239_s3 + $0x1c8] sm:$0xff]  ;;  %vm2285_vm10 = vweird.f32 %v7115_v56  ;;  %v1665_v53 = vadd.f32 %v1664_v5, %v1178_v57  ;;  %v1958_v10 = vadd.f32 %v1957_v3, %v1410_v38  ;;  %vm2284_vm11 = vweird.f32 %v7033_v41  ;;  %3468 = vmatpush.bf16.msrb.mxu1 %v3832_v43  ;;  %v3831_v57 = vld [vmem:[%s8239_s3 + $0x140] sm:$0xff] }
 0x20d   :  { %v1442_v13 = vmul.f32 %v9348_v12, %v9359_v62  ;;  %v9360_v52 = vld [vmem:[#allocation115_spill] sm:$0xff]  ;;  %v2587_v36 = vadd.f32 1.1283791, %v2586_v55  ;;  %v2601_v31 = vsub.f32 1.0, %v2600_v48  ;;  %v2283_v14 = vadd.f32 %v7115_v56, %v2282_v37  ;;  %vm2286_vm12 = vmor %vm2284_vm11, %vm2285_vm10  ;;  %3481 = vmatpush.bf16.msrb.mxu2 %v3840_v17  ;;  %3494 = vmatpush.bf16.msrb.mxu3 %v3848_v51  ;;  %v3839_v43 = vld [vmem:[%s8239_s3 + $0x180] sm:$0xff] }
 0x20e   :  { %v2268_v29 = vmul.f32 %v2267_v8, %v9360_v52  ;;  %v2610_v42 = vand.u32 2147483648, %v7065_v30  ;;  %v1666_v38 = vadd.f32 %v1665_v53, %v1186_v20  ;;  %v1959_v8 = vadd.f32 %v1958_v10, %v1418_v44  ;;  %v3847_v44 = vld [vmem:[%s8239_s3 + $0x1c0] sm:$0xff] }
 0x20f   :  { %v2291_v41 = vor.u32 1.1754944e-38, %v2290_v54  ;;  %v2602_v55 = vmul.f32 %v7147_v26, %v2601_v31  ;;  %vm2605_vm13 = vweird.f32 %v7147_v26  ;;  %v2608_v34 = vand.u32 2147483647, %v7065_v30  ;;  %v9362_v51 = vld [vmem:[#allocation114_spill] sm:$0xff]  ;;  %3456 = vmatpush.bf16.msrb.mxu0 %v3823_v39 }
 0x210   :  { %v2287_v20 = vsel %vm2286_vm12, %v7115_v56, %v2283_v14  ;;  %vm2289_vm14 = vcmp.eq.f32.partialorder %v2288_v50, 8.507059e+37  ;;  %v1667_v5 = vadd.f32 %v1666_v38, %v7023_v61  ;;  %v1960_v3 = vadd.f32 %v1959_v8, %v7063_v45  ;;  %3469 = vmatpush.bf16.msrb.mxu1 %v3831_v57  ;;  %v9363_v14 = vld [vmem:[#allocation55_spill] sm:$0xff] }
 0x211   :  { %v2292_v54 = vsel %vm2289_vm14, %v2291_v41, %v2287_v20  ;;  %v2603_v48 = vadd.f32 %v7147_v26, %v2602_v55  ;;  %vm2604_vm15 = vweird.f32 %v7065_v30  ;;  %v9361_v17 = vunpack.c.l.bf16 %v6952_v60  ;;  %3482 = vmatpush.bf16.msrb.mxu2 %v3839_v43  ;;  %3495 = vmatpush.bf16.msrb.mxu3 %v3847_v44  ;;  %v7210_v30 = vld [vmem:[%s8236_s0 + $0x7d0] sm:$0xff] }
 0x212   :  { %v2293_v37 = vmul.f32 %v2292_v54, %v2268_v29  ;;  %vm2606_vm0 = vmor %vm2604_vm15, %vm2605_vm13  ;;  %v2611_v53 = vor.u32 1.1754944e-38, %v2610_v42  ;;  %v1668_v56 = vadd.f32 %v1667_v5, %v1202_v6  ;;  %v1961_v61 = vadd.f32 %v1960_v3, %v1434_v28  ;;  %v7218_v6 = vld [vmem:[%s8236_s0 + $0x7f0] sm:$0xff] }
 0x213   :  { %v1226_v62 = vmul.f32 %v9362_v51, %v9361_v17  ;;  %v2588_v45 = vmul.f32 %v2587_v36, %v9363_v14  ;;  %v2607_v50 = vsel %vm2606_vm0, %v7147_v26, %v2603_v48  ;;  %vm2609_vm1 = vcmp.eq.f32.partialorder %v2608_v34, 8.507059e+37  ;;  %v9365_v36 = vld [vmem:[#allocation37_spill] sm:$0xff]  ;;  %v9366_v57 = vld [vmem:[#allocation39_spill] sm:$0xff]  ;;  %v9386_v14 = vld [vmem:[#allocation34_spill] sm:$0xff] }
 0x214   :  { %v9364_v10 = vunpack.c.l.bf16 %v7048_v59  ;;  %v3522_v52 = vclamps-f32 %v2293_v37, 1.0  ;;  %v2612_v29 = vsel %vm2609_vm1, %v2611_v53, %v2607_v50  ;;  %v1669_v26 = vadd.f32 %v1668_v56, %v7145_v16  ;;  %v9370_v56 = vld [vmem:[#allocation49_spill] sm:$0xff] }
 0x215   :  { %v1962_v28 = vadd.f32 %v1961_v61, %v1442_v13  ;;  %v2107_v31 = vmul.f32 0.5, %v9365_v36  ;;  %v2613_v39 = vmul.f32 %v2612_v29, %v2588_v45  ;;  %v778_v55 = vunpack.c.l.bf16 %v7210_v30  ;;  %v9368_v13 = vld [vmem:[#allocation94_spill] sm:$0xff] }
 0x216   :  { %v1458_v42 = vmul.f32 %v9354_v58, %v9364_v10  ;;  %v2779_v41 = vadd.f32 1.0, %v3522_v52  ;;  %v1670_v34 = vadd.f32 %v1669_v26, %v7039_v15  ;;  %v786_v20 = vunpack.c.l.bf16 %v7218_v6 }
 0x217   :  { %v1963_v43 = vadd.f32 %v1962_v28, %v7076_v33  ;;  %v3530_v44 = vclamps-f32 %v2613_v39, 1.0  ;;  %v9367_v16 = vunpack.c.l.bf16 %v6957_v47  ;;  %v9369_v48 = vunpack.c.l.bf16 %v7053_v11  ;;  %v9371_v39 = vld [vmem:[#allocation30_spill] sm:$0xff] }
 0x218   :  { %v2795_v54 = vmul.f32 %v2779_v41, %v2107_v31  ;;  %v1671_v37 = vadd.f32 %v1670_v34, %v1226_v62  ;;  %v2115_v15 = vmul.f32 0.5, %v9370_v56  ;;  %v1482_v50 = vmul.f32 %v9362_v51, %v778_v55  ;;  %v9373_v56 = vld [vmem:[#allocation18_spill] sm:$0xff]  ;;  %v9376_v31 = vld [vmem:[#allocation79_spill] sm:$0xff]  ;;  %v9382_v55 = vld [vmem:[#allocation92_spill] sm:$0xff] }
 0x219   :  { %v1234_v5 = vmul.f32 %v9368_v13, %v9367_v16  ;;  %v1466_v17 = vmul.f32 %v9357_v35, %v9369_v48  ;;  %v1964_v53 = vadd.f32 %v1963_v43, %v1458_v42  ;;  %v2787_v61 = vadd.f32 1.0, %v3530_v44  ;;  %v9377_v62 = vld [vmem:[#allocation59_spill] sm:$0xff] }
 0x21a   :  { %v2811_v45 = vpack.c.bf16 %v2795_v54, %v2795_v54  ;;  %v595_v41 = vunpack.c.h.bf16 %v9371_v39  ;;  %v1490_v16 = vmul.f32 %v9368_v13, %v786_v20  ;;  %v1977_v28 = vadd.f32 %v9377_v62, %v9376_v31  ;;  %v9384_v62 = vld [vmem:[#allocation23_spill] sm:$0xff]  ;;  %v9398_v13 = vld [vmem:[#allocation90_spill] sm:$0xff] }
 0x21b   :  { %v1672_v10 = vadd.f32 %v1671_v37, %v1234_v5  ;;  %v1965_v52 = vadd.f32 %v1964_v53, %v1466_v17  ;;  %v2803_v29 = vmul.f32 %v2787_v61, %v2115_v15  ;;  %v611_v15 = vunpack.c.h.bf16 %v9373_v56  ;;  %v9380_v56 = vld [vmem:[#allocation15_spill] sm:$0xff] }
 0x21c   :  { %v2975_v43 = vunpack.c.l.b16 %v2811_v45  ;;  %v9374_v45 = vld [vmem:[#allocation76_spill] sm:$0xff]  ;;  %v1978_v31 = vadd.f32 %v1977_v28, %v9384_v62  ;;  %v9393_v28 = vld [vmem:[#allocation46_spill] sm:$0xff] }
 0x21d   :  { %v1673_v42 = vrot.slane %v1672_v10, 4  ;;  %v1966_v36 = vadd.f32 %v1965_v52, %v7112_v1  ;;  %v2819_v34 = vpack.c.bf16 %v2803_v29, %v2803_v29  ;;  %v9372_v1 = vld [vmem:[#allocation122_spill] sm:$0xff]  ;;  %v9375_v29 = vld [vmem:[#allocation51_spill] sm:$0xff]  ;;  %v9394_v62 = vld [vmem:[#allocation84_spill] sm:$0xff]  ;;  %v1299_v33 = vmul.f32 %v9393_v28, %v595_v41 }
 0x21e   :  { %v603_v53 = vunpack.c.h.bf16 %v9372_v1  ;;  %v1681_v39 = vadd.f32 %v9375_v29, %v9374_v45  ;;  %v9383_v29 = vld [vmem:[#allocation105_spill] sm:$0xff] }
 0x21f   :  { %v1674_v5 = vadd.f32 %v1673_v42, %v1672_v10  ;;  %v1967_v54 = vadd.f32 %v1966_v36, %v1482_v50  ;;  %v2983_v17 = vunpack.c.l.b16 %v2819_v34  ;;  %v9378_v10 = vld [vmem:[#allocation123_spill] sm:$0xff]  ;;  %v635_v26 = vunpack.c.h.bf16 %v9383_v29  ;;  %v9391_v29 = vld [vmem:[#allocation54_spill] sm:$0xff] }
 0x220   :  { %v619_v42 = vunpack.c.h.bf16 %v9378_v10  ;;  %v9379_v36 = vld [vmem:[#allocation111_spill] sm:$0xff]  ;;  %v1682_v44 = vadd.f32 %v1681_v39, %v9380_v56  ;;  %v9389_v39 = vld [vmem:[#allocation116_spill] sm:$0xff]  ;;  %v9392_v38 = vunpack.c.h.bf16 %v9391_v29 }
 0x221   :  { %v1675_v61 = vrot.slane %v1674_v5, 2  ;;  %v1968_v52 = vadd.f32 %v1967_v54, %v1490_v16  ;;  %v2992_v20 = vsel %vm2988_vm8, %v2983_v17, %v2975_v43  ;;  %v627_v34 = vunpack.c.h.bf16 %v9379_v36  ;;  %v9381_v16 = vld [vmem:[#allocation29_spill] sm:$0xff]  ;;  %v9385_v50 = vld [vmem:[#allocation95_spill] sm:$0xff] }
 0x222   :  { %v3000_v48 = vpack.c.b16 %v2992_v20, %v2992_v20  ;;  %v643_v10 = vunpack.c.h.bf16 %v9385_v50  ;;  %v1683_v36 = vadd.f32 %v1682_v44, %v9386_v14  ;;  %v9387_v20 = vld [vmem:[#allocation66_spill] sm:$0xff]  ;;  %v9390_v54 = vld [vmem:[#allocation41_spill] sm:$0xff]  ;;  %v9403_v29 = vld [vmem:[#allocation63_spill] sm:$0xff] }
 0x223   :  { %v1676_v1 = vadd.f32 %v1675_v61, %v1674_v5  ;;  %v1969_v37 = vrot.slane %v1968_v52, 4  ;;  %v9388_v61 = vld [vmem:[#allocation38_spill] sm:$0xff]  ;;  %v1979_v3 = vadd.f32 %v1978_v31, %v9390_v54  ;;  %v9399_v54 = vld [vmem:[#allocation96_spill] sm:$0xff]  ;;  %v9401_v31 = vld [vmem:[#allocation13_spill] sm:$0xff] }
 0x224   :  { %3444 = vmatmul.bf16.vlgmr.msra.gmra.mxu3 %v3000_v48  ;;  %v1043_v48 = vmul.f32 %v9393_v28, %v9392_v38  ;;  %v9395_v50 = vld [vmem:[#allocation26_spill] sm:$0xff] }
 0x225   :  { %v1677_v43 = vrot.slane %v1676_v1, 1  ;;  %v1970_v17 = vadd.f32 %v1969_v37, %v1968_v52  ;;  %v1684_v37 = vadd.f32 %v1683_v36, %v9394_v62  ;;  %v9396_v14 = vunpack.c.h.bf16 %v9395_v50  ;;  %v9397_v44 = vld [vmem:[#allocation10_spill] sm:$0xff] }
 0x226   :  { %v1980_v56 = vadd.f32 %v1979_v3, %v9398_v13  ;;  %v1307_v62 = vmul.f32 %v9397_v44, %v603_v53  ;;  %v1315_v50 = vmul.f32 %v9403_v29, %v611_v15  ;;  %v9408_v15 = vld [vmem:[#allocation20_spill] sm:$0xff]  ;;  %v9412_v13 = vld [vmem:[#allocation31_spill] sm:$0xff] }
 0x227   :  { %v1678_v45 = vadd.f32 %v1677_v43, %v1676_v1  ;;  %v1971_v8 = vrot.slane %v1970_v17, 2  ;;  %v1051_v5 = vmul.f32 %v9397_v44, %v9396_v14  ;;  %v9402_v43 = vunpack.c.h.bf16 %v9401_v31  ;;  %v9406_v31 = vld [vmem:[#allocation44_spill] sm:$0xff] }
 0x228   :  { %v1685_v35 = vadd.f32 %v1684_v37, %v1043_v48  ;;  %v1981_v14 = vadd.f32 %v1980_v56, %v1299_v33  ;;  %v9409_v33 = vunpack.c.h.bf16 %v9408_v15  ;;  %v9410_v56 = vld [vmem:[#allocation62_spill] sm:$0xff] }
 0x229   :  { %v1972_v51 = vadd.f32 %v1971_v8, %v1970_v17  ;;  %v7282_v1 = vadd.f32 %v9399_v54, %v1678_v45  ;;  %v1059_v38 = vmul.f32 %v9403_v29, %v9402_v43  ;;  %v9404_v8 = vld [vmem:[#allocation119_spill] sm:$0xff]  ;;  %v9405_v45 = vld [vmem:[#allocation108_spill] sm:$0xff]  ;;  %v9407_v43 = vld [vmem:[#allocation69_spill] sm:$0xff]  ;;  %v1323_v28 = vmul.f32 %v9410_v56, %v619_v42 }
 0x22a   :  { %v1686_v3 = vadd.f32 %v1685_v35, %v1051_v5  ;;  %v1982_v37 = vadd.f32 %v1981_v14, %v1307_v62  ;;  %v1067_v29 = vmul.f32 %v9410_v56, %v9409_v33  ;;  %v9413_v35 = vunpack.c.h.bf16 %v9412_v13  ;;  %v9414_v5 = vld [vmem:[#allocation32_spill] sm:$0xff]  ;;  %v9416_v14 = vld [vmem:[#allocation71_spill] sm:$0xff]  ;;  %v9425_v48 = vld [vmem:[#allocation86_spill] sm:$0xff] }
 0x22b   :  { %9400 = vst [vmem:[#allocation81_spill] sm:$0xff] %v7282_v1  ;;  %v1973_v52 = vrot.slane %v1972_v51, 1  ;;  %v7291_v41 = vmul.f32 0.70710677, %v7282_v1  ;;  %v9411_v1 = vld [vmem:[#allocation100_spill] sm:$0xff]  ;;  %v1331_v42 = vmul.f32 %v9414_v5, %v627_v34  ;;  %v9421_v34 = vld [vmem:[#allocation70_spill] sm:$0xff] }
 0x22c   :  { %v1687_v44 = vadd.f32 %v1686_v3, %v1059_v38  ;;  %v683_v9 = vunpack.c.h.bf16 %v9411_v1  ;;  %v1075_v17 = vmul.f32 %v9414_v5, %v9413_v35  ;;  %v1983_v58 = vadd.f32 %v1982_v37, %v1315_v50  ;;  %v7318_v1 = vld [vmem:[%s8236_s0 + $0xf8] sm:$0xff]  ;;  %v9418_v38 = vld [vmem:[#allocation43_spill] sm:$0xff]  ;;  %v9419_v37 = vld [vmem:[#allocation6_spill] sm:$0xff] }
 0x22d   :  { %v1974_v36 = vadd.f32 %v1973_v52, %v1972_v51  ;;  %v2296_v53 = vmul.f32 %v7291_v41, %v7291_v41  ;;  %v9415_v52 = vunpack.c.h.bf16 %v9366_v57  ;;  %9417 = vst [vmem:[#allocation7_spill] sm:$0xff] %v7318_v1  ;;  %v1339_v50 = vmul.f32 %v9416_v14, %v635_v26 }
 0x22e   :  { %v1688_v33 = vadd.f32 %v1687_v44, %v1067_v29  ;;  %v1347_v56 = vmul.f32 %v9421_v34, %v643_v10 }
 0x22f   :  { %v7308_v62 = vadd.f32 %v9399_v54, %v1974_v36  ;;  %v7310_v51 = vmin.f32 %v2296_v53, 16.0  ;;  %v1083_v15 = vmul.f32 %v9416_v14, %v9415_v52  ;;  %v1984_v36 = vadd.f32 %v1983_v58, %v1323_v28 }
 0x230   :  { %v1689_v44 = vadd.f32 %v1688_v33, %v1075_v17  ;;  %v9420_v58 = vunpack.c.h.bf16 %v6668_v21  ;;  %v9422_v53 = vunpack.c.h.bf16 %v6674_v7  ;;  %v9423_v17 = vld [vmem:[#allocation45_spill] sm:$0xff] }
 0x231   :  { %v7324_v3 = vmul.f32 0.70710677, %v7308_v62  ;;  %v2298_v57 = vmul.f32 2.1237322e-06, %v7310_v51  ;;  %v2309_v29 = vmul.f32 3.8918573e-05, %v7310_v51  ;;  %v1985_v52 = vadd.f32 %v1984_v36, %v1331_v42 }
 0x232   :  { %v1091_v28 = vmul.f32 %v9421_v34, %v9420_v58  ;;  %v1690_v14 = vadd.f32 %v1689_v44, %v1083_v15  ;;  %v1099_v33 = vmul.f32 %v9423_v17, %v9422_v53  ;;  %v9426_v15 = vunpack.c.h.bf16 %v9387_v20 }
 0x233   :  { %v2299_v13 = vadd.f32 0.00028619796, %v2298_v57  ;;  %v2616_v26 = vmul.f32 %v7324_v3, %v7324_v3  ;;  %v2310_v5 = vadd.f32 0.001143296, %v2309_v29  ;;  %v1986_v35 = vadd.f32 %v1985_v52, %v1339_v50 }
 0x234   :  { %v9424_v57 = vunpack.c.h.bf16 %v6684_v4  ;;  %v1691_v21 = vadd.f32 %v1690_v14, %v1091_v28  ;;  %v1355_v7 = vmul.f32 %v9423_v17, %v9426_v15  ;;  %v9427_v53 = vunpack.c.h.bf16 %v9388_v61 }
 0x235   :  { %v2300_v42 = vmul.f32 %v2299_v13, %v7310_v51  ;;  %v7341_v36 = vmin.f32 %v2616_v26, 16.0  ;;  %v2311_v58 = vmul.f32 %v2310_v5, %v7310_v51  ;;  %v1987_v50 = vadd.f32 %v1986_v35, %v1347_v56  ;;  %v9429_v26 = vld [vmem:[#allocation93_spill] sm:$0xff] }
 0x236   :  { %v1107_v1 = vmul.f32 %v9425_v48, %v9424_v57  ;;  %v1363_v10 = vmul.f32 %v9425_v48, %v9427_v53  ;;  %v1692_v4 = vadd.f32 %v1691_v21, %v1099_v33  ;;  %v531_v14 = vunpack.c.h.bf16 %v6957_v47 }
 0x237   :  { %v2301_v44 = vadd.f32 0.0036580483, %v2300_v42  ;;  %v2618_v13 = vmul.f32 2.1237322e-06, %v7341_v36  ;;  %v2629_v29 = vmul.f32 3.8918573e-05, %v7341_v36  ;;  %v9428_v5 = vunpack.c.h.bf16 %v6689_v40 }
 0x238   :  { %v2312_v52 = vadd.f32 0.014752088, %v2311_v58  ;;  %v1988_v28 = vadd.f32 %v1987_v50, %v1355_v7  ;;  %v1693_v53 = vadd.f32 %v1692_v4, %v1107_v1  ;;  %v9430_v35 = vunpack.c.h.bf16 %v6694_v27  ;;  %v9431_v42 = vld [vmem:[#allocation56_spill] sm:$0xff] }
 0x239   :  { %v1115_v20 = vmul.f32 %v9429_v26, %v9428_v5  ;;  %v2302_v57 = vmul.f32 %v2301_v44, %v7310_v51  ;;  %v2619_v61 = vadd.f32 0.00028619796, %v2618_v13  ;;  %v2630_v15 = vadd.f32 0.001143296, %v2629_v29  ;;  %v9434_v44 = vld [vmem:[#allocation107_spill] sm:$0xff]  ;;  %v7375_v27 = vld [vmem:[%s8236_s0 + $0x118] sm:$0xff] }
 0x23a   :  { %v2313_v56 = vmul.f32 %v2312_v52, %v7310_v51  ;;  %v1123_v48 = vmul.f32 %v9431_v42, %v9430_v35  ;;  %v9432_v33 = vunpack.c.h.bf16 %v9389_v39  ;;  %v1989_v58 = vadd.f32 %v1988_v28, %v1363_v10  ;;  %9435 = vst [vmem:[#allocation124_spill] sm:$0xff] %v7375_v27 }
 0x23b   :  { %v2620_v40 = vmul.f32 %v2619_v61, %v7341_v36  ;;  %v2631_v7 = vmul.f32 %v2630_v15, %v7341_v36  ;;  %v9433_v50 = vunpack.c.h.bf16 %v6723_v0  ;;  %v1694_v1 = vadd.f32 %v1693_v53, %v1115_v20  ;;  %v9437_v20 = vld [vmem:[#allocation102_spill] sm:$0xff] }
 0x23c   :  { %v1371_v21 = vmul.f32 %v9429_v26, %v9432_v33  ;;  %v2314_v29 = vadd.f32 0.112945676, %v2313_v56  ;;  %v9436_v39 = vunpack.c.h.bf16 %v9404_v8  ;;  %v1387_v10 = vmul.f32 %v9434_v44, %v683_v9  ;;  %v7626_v33 = vld [vmem:[%s8236_s0 + $0x318] sm:$0xff] }
 0x23d   :  { %v1131_v13 = vmul.f32 %v9434_v44, %v9433_v50  ;;  %v2303_v5 = vadd.f32 0.05243302, %v2302_v57  ;;  %v2621_v28 = vadd.f32 0.0036580483, %v2620_v40  ;;  %v2632_v61 = vadd.f32 0.014752088, %v2631_v7 }
 0x23e   :  { %v1379_v4 = vmul.f32 %v9431_v42, %v9436_v39  ;;  %v1990_v52 = vadd.f32 %v1989_v58, %v1371_v21  ;;  %v1695_v0 = vadd.f32 %v1694_v1, %v1123_v48  ;;  %v2315_v15 = vmul.f32 %v2314_v29, %v7310_v51  ;;  %v9439_v50 = vld [vmem:[#allocation109_spill] sm:$0xff]  ;;  %v9441_v21 = vld [vmem:[#allocation72_spill] sm:$0xff] }
 0x23f   :  { %v707_v53 = vunpack.c.h.bf16 %v9437_v20  ;;  %v2633_v56 = vmul.f32 %v2632_v61, %v7341_v36  ;;  %v9438_v8 = vunpack.c.h.bf16 %v6731_v2  ;;  %v9440_v9 = vunpack.c.h.bf16 %v6700_v19  ;;  %v9444_v61 = vld [vmem:[#allocation117_spill] sm:$0xff] }
 0x240   :  { %v1991_v35 = vadd.f32 %v1990_v52, %v1379_v4  ;;  %v1696_v58 = vadd.f32 %v1695_v0, %v1131_v13  ;;  %v2316_v40 = vadd.f32 0.4994258, %v2315_v15  ;;  %v2622_v48 = vmul.f32 %v2621_v28, %v7341_v36  ;;  %v9446_v28 = vld [vmem:[#allocation11_spill] sm:$0xff] }
 0x241   :  { %v1139_v39 = vmul.f32 %v9439_v50, %v9438_v8  ;;  %v1147_v57 = vmul.f32 %v9441_v21, %v9440_v9  ;;  %v9442_v7 = vunpack.c.h.bf16 %v9418_v38  ;;  %v2304_v4 = vmul.f32 %v2303_v5, %v7310_v51  ;;  %v9448_v5 = vld [vmem:[#allocation110_spill] sm:$0xff] }
 0x242   :  { %v1992_v29 = vadd.f32 %v1991_v35, %v1387_v10  ;;  %v2634_v52 = vadd.f32 0.112945676, %v2633_v56  ;;  %v9443_v2 = vunpack.c.h.bf16 %v6750_v23  ;;  %v2317_v19 = vmul.f32 %v2316_v40, %v7310_v51  ;;  %v9450_v56 = vld [vmem:[#allocation121_spill] sm:$0xff] }
 0x243   :  { %v1395_v1 = vmul.f32 %v9439_v50, %v9442_v7  ;;  %v1697_v8 = vadd.f32 %v1696_v58, %v1139_v39  ;;  %v715_v13 = vunpack.c.h.bf16 %v6968_v63  ;;  %v9445_v0 = vunpack.c.h.bf16 %v6707_v46 }
 0x244   :  { %v1155_v20 = vmul.f32 %v9444_v61, %v9443_v2  ;;  %v2635_v9 = vmul.f32 %v2634_v52, %v7341_v36  ;;  %v9447_v10 = vunpack.c.h.bf16 %v6712_v24  ;;  %v9449_v23 = vunpack.c.h.bf16 %v6736_v18 }
 0x245   :  { %v1171_v15 = vmul.f32 %v9446_v28, %v9445_v0  ;;  %v1993_v38 = vadd.f32 %v1992_v29, %v1395_v1  ;;  %v1698_v39 = vadd.f32 %v1697_v8, %v1147_v57  ;;  %v7413_v58 = vadd.f32 1.0, %v2317_v19  ;;  %v9453_v8 = vld [vmem:[#allocation120_spill] sm:$0xff] }
 0x246   :  { %v1195_v35 = vmul.f32 %v9448_v5, %v9447_v10  ;;  %v7411_v7 = vmul.f32 %v9450_v56, %v9449_v23  ;;  %v2623_v63 = vadd.f32 0.05243302, %v2622_v48  ;;  %v9451_v46 = vunpack.c.h.bf16 %v9405_v45  ;;  %v7428_v45 = vld [vmem:[%s8236_s0 + $0x138] sm:$0xff] }
 0x247   :  { %v1411_v1 = vmul.f32 %v9444_v61, %v707_v53  ;;  %v2305_v29 = vadd.f32 0.18741608, %v2304_v4  ;;  %v2636_v52 = vadd.f32 0.4994258, %v2635_v9  ;;  %v731_v24 = vunpack.c.h.bf16 %v6994_v49  ;;  %9454 = vst [vmem:[#allocation8_spill] sm:$0xff] %v7428_v45  ;;  %v9456_v49 = vld [vmem:[#allocation67_spill] sm:$0xff] }
 0x248   :  { %v1403_v40 = vmul.f32 %v9441_v21, %v9451_v46  ;;  %v1699_v2 = vadd.f32 %v1698_v39, %v1155_v20  ;;  %3877 = vrcp.f32 %v7413_v58  ;;  %v739_v18 = vunpack.c.h.bf16 %v7017_v25 }
 0x249   :  { %v9452_v57 = vunpack.c.h.bf16 %v9333_v32  ;;  %v2637_v53 = vmul.f32 %v2636_v52, %v7341_v36  ;;  %v9455_v4 = vunpack.c.h.bf16 %v9381_v16  ;;  %v9457_v0 = vunpack.c.h.bf16 %v9406_v31  ;;  %v7445_v16 = vld [vmem:[%s8236_s0 + $0x158] sm:$0xff] }
 0x24a   :  { %v1994_v48 = vadd.f32 %v1993_v38, %v1403_v40  ;;  %v9458_v32 = vunpack.c.h.bf16 %v9407_v43  ;;  %v2624_v38 = vmul.f32 %v2623_v63, %v7341_v36  ;;  %v1419_v10 = vmul.f32 %v9453_v8, %v715_v13  ;;  %9459 = vst [vmem:[#allocation82_spill] sm:$0xff] %v7445_v16 }
 0x24b   :  { %v1163_v19 = vmul.f32 %v9453_v8, %v9452_v57  ;;  %v1179_v20 = vmul.f32 %v9456_v49, %v9455_v4  ;;  %v1427_v25 = vmul.f32 %v9446_v28, %v9457_v0  ;;  %v2306_v46 = vmul.f32 %v2305_v29, %v7310_v51 }
 0x24c   :  { %v1451_v9 = vmul.f32 %v9448_v5, %v9458_v32  ;;  %v1995_v39 = vadd.f32 %v1994_v48, %v1411_v1  ;;  %v7448_v31 = vadd.f32 1.0, %v2637_v53  ;;  %v755_v40 = vunpack.c.h.bf16 %v7048_v59  ;;  %v9463_v32 = vld [vmem:[#allocation125_spill] sm:$0xff] }
 0x24d   :  { %v1700_v23 = vadd.f32 %v1699_v2, %v1163_v19  ;;  %v763_v52 = vunpack.c.h.bf16 %v7053_v11  ;;  %v1435_v63 = vmul.f32 %v9456_v49, %v731_v24  ;;  %v9460_v1 = vunpack.c.h.bf16 %v9382_v55 }
 0x24e   :  { %v1996_v2 = vadd.f32 %v1995_v39, %v1419_v10  ;;  %3879 = vrcp.f32 %v7448_v31  ;;  %v9461_v51 = vunpack.c.h.bf16 %v9419_v37  ;;  %v3878_v19 = vpop.eup %3877  ;;  %v2625_v48 = vadd.f32 0.18741608, %v2624_v38  ;;  %v9464_v37 = vld [vmem:[#allocation118_spill] sm:$0xff] }
 0x24f   :  { %v1701_v13 = vadd.f32 %v1700_v23, %v1171_v15  ;;  %v1187_v57 = vmul.f32 %v9348_v12, %v9460_v1  ;;  %v779_v11 = vunpack.c.h.bf16 %v7210_v30  ;;  %v2307_v15 = vadd.f32 1.1283791, %v2306_v46  ;;  %v9466_v39 = vld [vmem:[#allocation22_spill] sm:$0xff] }
 0x250   :  { %v1475_v29 = vmul.f32 %v9450_v56, %v9461_v51  ;;  %v1997_v24 = vadd.f32 %v1996_v2, %v1427_v25  ;;  %v2320_v4 = vmul.f32 %v3878_v19, %v7413_v58  ;;  %v787_v0 = vunpack.c.h.bf16 %v7218_v6  ;;  %v9468_v6 = vld [vmem:[#allocation114_spill] sm:$0xff] }
 0x251   :  { %v1702_v53 = vadd.f32 %v1701_v13, %v1179_v20  ;;  %v9462_v55 = vunpack.c.h.bf16 %v9352_v22  ;;  %v9465_v23 = vunpack.c.h.bf16 %v9464_v37  ;;  %v1443_v51 = vmul.f32 %v9348_v12, %v739_v18 }
 0x252   :  { %v1998_v59 = vadd.f32 %v1997_v24, %v1435_v63  ;;  %v2321_v30 = vsub.f32 1.0, %v2320_v4  ;;  %v2328_v20 = vand.u32 2147483647, %v7413_v58  ;;  %v2330_v25 = vand.u32 2147483648, %v7413_v58 }
 0x253   :  { %v1203_v10 = vmul.f32 %v9463_v32, %v9462_v55  ;;  %v1211_v1 = vmul.f32 %v9466_v39, %v9465_v23  ;;  %v1703_v38 = vadd.f32 %v1702_v53, %v1187_v57  ;;  %v9467_v46 = vunpack.c.h.bf16 %v6952_v60 }
 0x254   :  { %v2626_v22 = vmul.f32 %v2625_v48, %v7341_v36  ;;  %v1459_v2 = vmul.f32 %v9463_v32, %v755_v40  ;;  %v1999_v37 = vadd.f32 %v1998_v59, %v1443_v51  ;;  %v3880_v23 = vpop.eup %3879  ;;  %v2308_v18 = vmul.f32 %v2307_v15, %v7291_v41 }
 0x255   :  { %v1227_v13 = vmul.f32 %v9468_v6, %v9467_v46  ;;  %v1704_v55 = vadd.f32 %v1703_v38, %v1195_v35  ;;  %v2322_v57 = vmul.f32 %v3878_v19, %v2321_v30  ;;  %vm2325_vm2 = vweird.f32 %v3878_v19 }
 0x256   :  { %v1467_v63 = vmul.f32 %v9466_v39, %v763_v52  ;;  %vm2324_vm3 = vweird.f32 %v7413_v58  ;;  %v2640_v53 = vmul.f32 %v3880_v23, %v7448_v31  ;;  %v2000_v24 = vadd.f32 %v1999_v37, %v1451_v9  ;;  %v7487_v52 = vld [vmem:[%s8236_s0 + $0x178] sm:$0xff] }
 0x257   :  { %v1705_v60 = vadd.f32 %v1704_v55, %v1203_v10  ;;  %v2323_v4 = vadd.f32 %v3878_v19, %v2322_v57  ;;  %vm2329_vm4 = vcmp.eq.f32.partialorder %v2328_v20, 8.507059e+37  ;;  %v2331_v36 = vor.u32 1.1754944e-38, %v2330_v25  ;;  %vm2326_vm5 = vmor %vm2324_vm3, %vm2325_vm2  ;;  %9469 = vst [vmem:[#allocation103_spill] sm:$0xff] %v7487_v52  ;;  %v7492_v58 = vld [vmem:[%s8236_s0 + $0x198] sm:$0xff]  ;;  %v9471_v20 = vld [vmem:[#allocation94_spill] sm:$0xff] }
 0x258   :  { %v1483_v40 = vmul.f32 %v9468_v6, %v779_v11  ;;  %v2627_v35 = vadd.f32 1.1283791, %v2626_v22  ;;  %v2641_v59 = vsub.f32 1.0, %v2640_v53  ;;  %v2001_v41 = vadd.f32 %v2000_v24, %v1459_v2  ;;  %9470 = vst [vmem:[#allocation9_spill] sm:$0xff] %v7492_v58  ;;  %v7506_v37 = vld [vmem:[%s8236_s0 + $0x1b8] sm:$0xff] }
 0x259   :  { %v1706_v48 = vadd.f32 %v1705_v60, %v1211_v1  ;;  %v2327_v9 = vsel %vm2326_vm5, %v3878_v19, %v2323_v4  ;;  %vm2645_vm6 = vweird.f32 %v3880_v23  ;;  %v2648_v15 = vand.u32 2147483647, %v7448_v31  ;;  %v7514_v57 = vld [vmem:[%s8236_s0 + $0x1d8] sm:$0xff] }
 0x25a   :  { %v2650_v11 = vand.u32 2147483648, %v7448_v31  ;;  %v2332_v10 = vsel %vm2329_vm4, %v2331_v36, %v2327_v9  ;;  %v2642_v51 = vmul.f32 %v3880_v23, %v2641_v59  ;;  %v2002_v38 = vadd.f32 %v2001_v41, %v1467_v63  ;;  %v7519_v63 = vld [vmem:[%s8236_s0 + $0x1f8] sm:$0xff] }
 0x25b   :  { %v1707_v1 = vadd.f32 %v1706_v48, %v7411_v7  ;;  %v2333_v30 = vmul.f32 %v2332_v10, %v2308_v18  ;;  %v1235_v25 = vmul.f32 %v9471_v20, %v531_v14  ;;  %vm2644_vm7 = vweird.f32 %v7448_v31  ;;  %v9472_v53 = vld [vmem:[#allocation81_spill] sm:$0xff] }
 0x25c   :  { %v2643_v19 = vadd.f32 %v3880_v23, %v2642_v51  ;;  %v2003_v55 = vadd.f32 %v2002_v38, %v1475_v29  ;;  %v2628_v18 = vmul.f32 %v2627_v35, %v7324_v3  ;;  %vm2646_vm9 = vmor %vm2644_vm7, %vm2645_vm6  ;;  %v2651_v47 = vor.u32 1.1754944e-38, %v2650_v11  ;;  %v7524_v3 = vld [vmem:[%s8236_s0 + $0x218] sm:$0xff] }
 0x25d   :  { %v1708_v2 = vadd.f32 %v1707_v1, %v1227_v13  ;;  %v3523_v7 = vclamps-f32 %v2333_v30, 1.0  ;;  %v1491_v14 = vmul.f32 %v9471_v20, %v787_v0  ;;  %vm2649_vm10 = vcmp.eq.f32.partialorder %v2648_v15, 8.507059e+37  ;;  %v7529_v0 = vld [vmem:[%s8236_s0 + $0x238] sm:$0xff] }
 0x25e   :  { %v2647_v31 = vsel %vm2646_vm9, %v3880_v23, %v2643_v19  ;;  %v2004_v13 = vadd.f32 %v2003_v55, %v1483_v40  ;;  %v2108_v23 = vmul.f32 0.5, %v9472_v53  ;;  %v7535_v4 = vld [vmem:[%s8236_s0 + $0x298] sm:$0xff] }
 0x25f   :  { %v1709_v29 = vadd.f32 %v1708_v2, %v1235_v25  ;;  %v2652_v60 = vsel %vm2649_vm10, %v2651_v47, %v2647_v31  ;;  %v2780_v24 = vadd.f32 1.0, %v3523_v7  ;;  %v7541_v48 = vld [vmem:[%s8236_s0 + $0x2f8] sm:$0xff]  ;;  %v2116_v47 = vmul.f32 0.5, %v7308_v62 }
 0x260   :  { %v2653_v40 = vmul.f32 %v2652_v60, %v2628_v18  ;;  %v2005_v59 = vadd.f32 %v2004_v13, %v1491_v14  ;;  %v7546_v41 = vld [vmem:[%s8236_s0 + $0x358] sm:$0xff] }
 0x261   :  { %v1710_v35 = vrot.slane %v1709_v29, 4  ;;  %v7551_v9 = vld [vmem:[%s8236_s0 + $0x4f8] sm:$0xff]  ;;  %v2796_v11 = vmul.f32 %v2780_v24, %v2108_v23 }
 0x262   :  { %9473 = vst [vmem:[#allocation126_spill] sm:$0xff] %v7551_v9  ;;  %v7557_v10 = vld [vmem:[%s8236_s0 + $0x518] sm:$0xff]  ;;  %v3531_v30 = vclamps-f32 %v2653_v40, 1.0  ;;  %v2006_v19 = vrot.slane %v2005_v59, 4  ;;  %v596_v13 = vunpack.c.l.bf16 %v7551_v9  ;;  %v9491_v9 = vld [vmem:[#allocation42_spill] sm:$0xff] }
 0x263   :  { %9474 = vst [vmem:[#allocation104_spill] sm:$0xff] %v7557_v10  ;;  %v1711_v25 = vadd.f32 %v1710_v35, %v1709_v29  ;;  %v7565_v2 = vld [vmem:[%s8236_s0 + $0x258] sm:$0xff]  ;;  %v2812_v23 = vpack.c.bf16 %v2796_v11, %v2796_v11  ;;  %v604_v11 = vunpack.c.l.bf16 %v7557_v10 }
 0x264   :  { %v7570_v55 = vld [vmem:[%s8236_s0 + $0x278] sm:$0xff]  ;;  %v2788_v53 = vadd.f32 1.0, %v3531_v30  ;;  %v2007_v24 = vadd.f32 %v2006_v19, %v2005_v59 }
 0x265   :  { %v7575_v7 = vld [vmem:[%s8236_s0 + $0x3b8] sm:$0xff]  ;;  %v1712_v60 = vrot.slane %v1711_v25, 2  ;;  %v2976_v22 = vunpack.c.l.b16 %v2812_v23 }
 0x266   :  { %v7582_v14 = vld [vmem:[%s8236_s0 + $0x538] sm:$0xff]  ;;  %v2804_v30 = vmul.f32 %v2788_v53, %v2116_v47  ;;  %v2008_v19 = vrot.slane %v2007_v24, 2 }
 0x267   :  { %9475 = vst [vmem:[#allocation106_spill] sm:$0xff] %v7582_v14  ;;  %v7590_v40 = vld [vmem:[%s8236_s0 + $0x558] sm:$0xff]  ;;  %v1713_v59 = vadd.f32 %v1712_v60, %v1711_v25  ;;  %v612_v35 = vunpack.c.l.bf16 %v7582_v14 }
 0x268   :  { %9476 = vst [vmem:[#allocation73_spill] sm:$0xff] %v7590_v40  ;;  %v7595_v62 = vld [vmem:[%s8236_s0 + $0x578] sm:$0xff]  ;;  %v2820_v36 = vpack.c.bf16 %v2804_v30, %v2804_v30  ;;  %v2009_v43 = vadd.f32 %v2008_v19, %v2007_v24 }
 0x269   :  { %9477 = vst [vmem:[#allocation12_spill] sm:$0xff] %v7595_v62  ;;  %v7604_v18 = vld [vmem:[%s8236_s0 + $0x2b8] sm:$0xff]  ;;  %v1714_v46 = vrot.slane %v1713_v59, 1 }
 0x26a   :  { %v7609_v38 = vld [vmem:[%s8236_s0 + $0x2d8] sm:$0xff]  ;;  %v2010_v14 = vrot.slane %v2009_v43, 1 }
 0x26b   :  { %v7615_v31 = vld [vmem:[%s8236_s0 + $0x598] sm:$0xff]  ;;  %v1715_v47 = vadd.f32 %v1714_v46, %v1713_v59  ;;  %v9489_v46 = vld [vmem:[#allocation35_spill] sm:$0xff] }
 0x26c   :  { %9478 = vst [vmem:[#allocation112_spill] sm:$0xff] %v7615_v31  ;;  %v9479_v53 = vld [vmem:[#allocation77_spill] sm:$0xff]  ;;  %v9480_v60 = vld [vmem:[#allocation52_spill] sm:$0xff] }
 0x26d   :  { %v1718_v29 = vadd.f32 %v9480_v60, %v9479_v53  ;;  %v9481_v1 = vld [vmem:[#allocation28_spill] sm:$0xff]  ;;  %v2984_v60 = vunpack.c.l.b16 %v2820_v36  ;;  %v9501_v36 = vld [vmem:[#allocation10_spill] sm:$0xff] }
 0x26e   :  { %v9482_v51 = vld [vmem:[#allocation60_spill] sm:$0xff] }
 0x26f   :  { %v2014_v15 = vadd.f32 %v9482_v51, %v9481_v1  ;;  %v7631_v25 = vld [vmem:[%s8236_s0 + $0x338] sm:$0xff]  ;;  %v2993_v59 = vsel %vm2988_vm8, %v2984_v60, %v2976_v22  ;;  %v9494_v22 = vld [vmem:[#allocation7_spill] sm:$0xff]  ;;  %v9500_v1 = vunpack.c.l.bf16 %v7375_v27 }
 0x270   :  { %9483 = vst [vmem:[#allocation68_spill] sm:$0xff] %v7631_v25  ;;  %v7636_v53 = vld [vmem:[%s8236_s0 + $0x5b8] sm:$0xff]  ;;  %v3001_v6 = vpack.c.b16 %v2993_v59, %v2993_v59  ;;  %v9506_v27 = vld [vmem:[#allocation91_spill] sm:$0xff] }
 0x271   :  { %9484 = vst [vmem:[#allocation19_spill] sm:$0xff] %v7636_v53  ;;  %v9485_v23 = vld [vmem:[#allocation16_spill] sm:$0xff]  ;;  %v9497_v60 = vld [vmem:[#allocation85_spill] sm:$0xff]  ;;  %v1052_v32 = vmul.f32 %v9501_v36, %v9500_v1 }
 0x272   :  { %v1719_v24 = vadd.f32 %v1718_v29, %v9485_v23  ;;  %v9486_v30 = vld [vmem:[#allocation24_spill] sm:$0xff]  ;;  %v2011_v23 = vadd.f32 %v2010_v14, %v2009_v43  ;;  %v9495_v43 = vunpack.c.l.bf16 %v9494_v22  ;;  %v9496_v14 = vld [vmem:[#allocation46_spill] sm:$0xff]  ;;  %3457 = vmatmul.bf16.vlgmr.msrb.gmra.mxu0 %v3001_v6 }
 0x273   :  { %v2015_v19 = vadd.f32 %v2014_v15, %v9486_v30  ;;  %v7645_v10 = vld [vmem:[%s8236_s0 + $0x5d8] sm:$0xff]  ;;  %v7659_v30 = vadd.f32 %v9399_v54, %v1715_v47  ;;  %v1300_v59 = vmul.f32 %v9496_v14, %v596_v13  ;;  %v1308_v13 = vmul.f32 %v9501_v36, %v604_v11 }
 0x274   :  { %9487 = vst [vmem:[#allocation87_spill] sm:$0xff] %v7645_v10  ;;  %v7651_v51 = vld [vmem:[%s8236_s0 + $0x5f8] sm:$0xff]  ;;  %v1720_v15 = vadd.f32 %v1719_v24, %v9489_v46  ;;  %v1044_v47 = vmul.f32 %v9496_v14, %v9495_v43  ;;  %v9505_v43 = vld [vmem:[#allocation63_spill] sm:$0xff] }
 0x275   :  { %9488 = vst [vmem:[#allocation113_spill] sm:$0xff] %v7651_v51  ;;  %v2016_v20 = vadd.f32 %v2015_v19, %v9491_v9  ;;  %v7665_v39 = vld [vmem:[%s8236_s0 + $0x618] sm:$0xff]  ;;  %v7678_v9 = vadd.f32 %v9399_v54, %v2011_v23  ;;  %v7681_v19 = vmul.f32 0.70710677, %v7659_v30  ;;  %v9504_v23 = vunpack.c.l.bf16 %v7428_v45 }
 0x276   :  { %9490 = vst [vmem:[#allocation97_spill] sm:$0xff] %v7659_v30  ;;  %v7670_v29 = vld [vmem:[%s8236_s0 + $0x638] sm:$0xff]  ;;  %v1721_v46 = vadd.f32 %v1720_v15, %v9497_v60 }
 0x277   :  { %9492 = vst [vmem:[#allocation98_spill] sm:$0xff] %v7665_v39  ;;  %v7690_v24 = vld [vmem:[%s8236_s0 + $0x378] sm:$0xff]  ;;  %v1060_v60 = vmul.f32 %v9505_v43, %v9504_v23  ;;  %v2017_v1 = vadd.f32 %v2016_v20, %v9506_v27  ;;  %v7703_v6 = vmul.f32 0.70710677, %v7678_v9  ;;  %v2336_v22 = vmul.f32 %v7681_v19, %v7681_v19 }
 0x278   :  { %9493 = vst [vmem:[#allocation74_spill] sm:$0xff] %v7670_v29  ;;  %v7695_v15 = vld [vmem:[%s8236_s0 + $0x398] sm:$0xff]  ;;  %v1722_v54 = vadd.f32 %v1721_v46, %v1044_v47  ;;  %v1316_v47 = vmul.f32 %v9505_v43, %v612_v35  ;;  %v9510_v35 = vunpack.c.l.bf16 %v7445_v16  ;;  %v9516_v16 = vunpack.c.l.bf16 %v7590_v40 }
 0x279   :  { %9498 = vst [vmem:[#allocation48_spill] sm:$0xff] %v7678_v9  ;;  %v7710_v30 = vld [vmem:[%s8236_s0 + $0x658] sm:$0xff]  ;;  %v2018_v20 = vadd.f32 %v2017_v1, %v1300_v59  ;;  %v7716_v46 = vmin.f32 %v2336_v22, 16.0  ;;  %v2656_v14 = vmul.f32 %v7703_v6, %v7703_v6 }
 0x27a   :  { %9499 = vst [vmem:[#allocation75_spill] sm:$0xff] %v7681_v19  ;;  %v1723_v27 = vadd.f32 %v1722_v54, %v1052_v32  ;;  %v7725_v45 = vld [vmem:[%s8236_s0 + $0x678] sm:$0xff]  ;;  %v9511_v54 = vld [vmem:[#allocation62_spill] sm:$0xff]  ;;  %v9512_v19 = vunpack.c.l.bf16 %v7487_v52 }
 0x27b   :  { %9502 = vst [vmem:[#allocation50_spill] sm:$0xff] %v7690_v24  ;;  %v1068_v32 = vmul.f32 %v9511_v54, %v9510_v35  ;;  %v2019_v59 = vadd.f32 %v2018_v20, %v1308_v13  ;;  %v2338_v1 = vmul.f32 2.1237322e-06, %v7716_v46  ;;  %v2349_v23 = vmul.f32 3.8918573e-05, %v7716_v46  ;;  %v9513_v43 = vld [vmem:[#allocation32_spill] sm:$0xff] }
 0x27c   :  { %9503 = vst [vmem:[#allocation27_spill] sm:$0xff] %v7695_v15  ;;  %v1724_v22 = vadd.f32 %v1723_v27, %v1060_v60  ;;  %v7733_v9 = vmin.f32 %v2656_v14, 16.0  ;;  %v1076_v36 = vmul.f32 %v9513_v43, %v9512_v19  ;;  %v9515_v15 = vld [vmem:[#allocation71_spill] sm:$0xff]  ;;  %v1324_v35 = vmul.f32 %v9511_v54, %v9516_v16 }
 0x27d   :  { %9507 = vst [vmem:[#allocation58_spill] sm:$0xff] %v7703_v6  ;;  %v9514_v6 = vunpack.c.l.bf16 %v7492_v58  ;;  %v2020_v13 = vadd.f32 %v2019_v59, %v1316_v47  ;;  %v2339_v27 = vadd.f32 0.00028619796, %v2338_v1  ;;  %v2350_v20 = vadd.f32 0.001143296, %v2349_v23 }
 0x27e   :  { %9508 = vst [vmem:[#allocation14_spill] sm:$0xff] %v7710_v30  ;;  %v1725_v60 = vadd.f32 %v1724_v22, %v1068_v32  ;;  %v2658_v24 = vmul.f32 2.1237322e-06, %v7733_v9  ;;  %v2669_v52 = vmul.f32 3.8918573e-05, %v7733_v9  ;;  %v9517_v19 = vunpack.c.l.bf16 %v7595_v62 }
 0x27f   :  { %9509 = vst [vmem:[#allocation21_spill] sm:$0xff] %v7725_v45  ;;  %v1084_v11 = vmul.f32 %v9515_v15, %v9514_v6  ;;  %v2021_v6 = vadd.f32 %v2020_v13, %v1324_v35  ;;  %v2340_v40 = vmul.f32 %v2339_v27, %v7716_v46  ;;  %v2351_v16 = vmul.f32 %v2350_v20, %v7716_v46 }
 0x280   :  { %v1332_v58 = vmul.f32 %v9513_v43, %v9517_v19  ;;  %v1726_v12 = vadd.f32 %v1725_v60, %v1076_v36  ;;  %v2659_v32 = vadd.f32 0.00028619796, %v2658_v24  ;;  %v9518_v47 = vunpack.c.l.bf16 %v7615_v31  ;;  %v7765_v24 = vld [vmem:[%s8236_s0 + $0x698] sm:$0xff] }
 0x281   :  { %v2670_v22 = vadd.f32 0.001143296, %v2669_v52  ;;  %v9519_v59 = vunpack.c.l.bf16 %v7506_v37  ;;  %v9520_v14 = vunpack.c.l.bf16 %v7514_v57  ;;  %v2341_v35 = vadd.f32 0.0036580483, %v2340_v40  ;;  %9521 = vst [vmem:[#allocation33_spill] sm:$0xff] %v7765_v24  ;;  %v7770_v52 = vld [vmem:[%s8236_s0 + $0x6f8] sm:$0xff] }
 0x282   :  { %v1340_v23 = vmul.f32 %v9515_v15, %v9518_v47  ;;  %v1727_v36 = vadd.f32 %v1726_v12, %v1084_v11  ;;  %v2352_v60 = vadd.f32 0.014752088, %v2351_v16  ;;  %v2660_v13 = vmul.f32 %v2659_v32, %v7733_v9  ;;  %9522 = vst [vmem:[#allocation40_spill] sm:$0xff] %v7770_v52  ;;  %v9524_v12 = vld [vmem:[#allocation86_spill] sm:$0xff] }
 0x283   :  { %v1092_v1 = vmul.f32 %v9421_v34, %v9519_v59  ;;  %v1100_v19 = vmul.f32 %v9423_v17, %v9520_v14  ;;  %v2022_v27 = vadd.f32 %v2021_v6, %v1332_v58  ;;  %v2671_v20 = vmul.f32 %v2670_v22, %v7733_v9  ;;  %v7784_v58 = vld [vmem:[%s8236_s0 + $0x758] sm:$0xff] }
 0x284   :  { %v9523_v14 = vunpack.c.l.bf16 %v7519_v63  ;;  %v9525_v11 = vunpack.c.l.bf16 %v7636_v53  ;;  %v2342_v47 = vmul.f32 %v2341_v35, %v7716_v46  ;;  %v2353_v59 = vmul.f32 %v2352_v60, %v7716_v46  ;;  %9526 = vst [vmem:[#allocation83_spill] sm:$0xff] %v7784_v58 }
 0x285   :  { %v1728_v32 = vadd.f32 %v1727_v36, %v1092_v1  ;;  %v2661_v15 = vadd.f32 0.0036580483, %v2660_v13  ;;  %v2023_v6 = vadd.f32 %v2022_v27, %v1340_v23  ;;  %v2672_v22 = vadd.f32 0.014752088, %v2671_v20  ;;  %v7798_v23 = vld [vmem:[%s8236_s0 + $0x7b8] sm:$0xff] }
 0x286   :  { %v1108_v40 = vmul.f32 %v9524_v12, %v9523_v14  ;;  %v1348_v16 = vmul.f32 %v9421_v34, %v9525_v11  ;;  %v700_v43 = vunpack.c.l.bf16 %v7765_v24  ;;  %v2354_v53 = vadd.f32 0.112945676, %v2353_v59  ;;  %v7825_v14 = vld [vmem:[%s8236_s0 + $0x6b8] sm:$0xff] }
 0x287   :  { %v1729_v54 = vadd.f32 %v1728_v32, %v1100_v19  ;;  %v9527_v1 = vunpack.c.l.bf16 %v7645_v10  ;;  %v9528_v35 = vunpack.c.l.bf16 %v7651_v51  ;;  %v2673_v11 = vmul.f32 %v2672_v22, %v7733_v9  ;;  %9532 = vst [vmem:[#allocation89_spill] sm:$0xff] %v7825_v14 }
 0x288   :  { %v2024_v13 = vadd.f32 %v2023_v6, %v1348_v16  ;;  %v9529_v19 = vunpack.c.l.bf16 %v7524_v3  ;;  %v2343_v59 = vadd.f32 0.05243302, %v2342_v47  ;;  %v7809_v16 = vld [vmem:[%s8236_s0 + $0x3d8] sm:$0xff] }
 0x289   :  { %v1356_v36 = vmul.f32 %v9423_v17, %v9527_v1  ;;  %v1364_v60 = vmul.f32 %v9524_v12, %v9528_v35  ;;  %v1730_v32 = vadd.f32 %v1729_v54, %v1108_v40  ;;  %v2355_v1 = vmul.f32 %v2354_v53, %v7716_v46  ;;  %v7814_v6 = vld [vmem:[%s8236_s0 + $0x3f8] sm:$0xff] }
 0x28a   :  { %v1116_v20 = vmul.f32 %v9429_v26, %v9529_v19  ;;  %v2662_v35 = vmul.f32 %v2661_v15, %v7733_v9  ;;  %v2674_v27 = vadd.f32 0.112945676, %v2673_v11  ;;  %v9530_v19 = vunpack.c.l.bf16 %v7529_v0 }
 0x28b   :  { %v2025_v22 = vadd.f32 %v2024_v13, %v1356_v36  ;;  %v9531_v53 = vunpack.c.l.bf16 %v7565_v2  ;;  %v2356_v47 = vadd.f32 0.4994258, %v2355_v1  ;;  %v9533_v36 = vunpack.c.l.bf16 %v7665_v39 }
 0x28c   :  { %v1124_v54 = vmul.f32 %v9431_v42, %v9530_v19  ;;  %v1731_v40 = vadd.f32 %v1730_v32, %v1116_v20  ;;  %v2675_v19 = vmul.f32 %v2674_v27, %v7733_v9  ;;  %v2344_v17 = vmul.f32 %v2343_v59, %v7716_v46 }
 0x28d   :  { %v1132_v15 = vmul.f32 %v9434_v44, %v9531_v53  ;;  %v1372_v13 = vmul.f32 %v9429_v26, %v9533_v36  ;;  %v2026_v11 = vadd.f32 %v2025_v22, %v1364_v60  ;;  %v7835_v53 = vld [vmem:[%s8236_s0 + $0x6d8] sm:$0xff]  ;;  %v2357_v12 = vmul.f32 %v2356_v47, %v7716_v46 }
 0x28e   :  { %9534 = vst [vmem:[#allocation99_spill] sm:$0xff] %v7835_v53  ;;  %v1732_v1 = vadd.f32 %v1731_v40, %v1124_v54  ;;  %v2663_v34 = vadd.f32 0.05243302, %v2662_v35  ;;  %v2676_v36 = vadd.f32 0.4994258, %v2675_v19  ;;  %v708_v60 = vunpack.c.l.bf16 %v7825_v14  ;;  %v7850_v54 = vld [vmem:[%s8236_s0 + $0x718] sm:$0xff] }
 0x28f   :  { %v2027_v24 = vadd.f32 %v2026_v11, %v1372_v13  ;;  %v9535_v27 = vunpack.c.l.bf16 %v7570_v55  ;;  %v7845_v39 = vadd.f32 1.0, %v2357_v12  ;;  %9536 = vst [vmem:[#allocation101_spill] sm:$0xff] %v7850_v54  ;;  %v716_v59 = vunpack.c.l.bf16 %v7835_v53  ;;  %v7863_v12 = vld [vmem:[%s8236_s0 + $0x738] sm:$0xff] }
 0x290   :  { %v1733_v26 = vadd.f32 %v1732_v1, %v1132_v15  ;;  %v9537_v35 = vunpack.c.l.bf16 %v7670_v29  ;;  %v9538_v47 = vunpack.c.l.bf16 %v7710_v30  ;;  %v2677_v11 = vmul.f32 %v2676_v36, %v7733_v9  ;;  %9539 = vst [vmem:[#allocation115_spill] sm:$0xff] %v7863_v12  ;;  %v7878_v53 = vld [vmem:[%s8236_s0 + $0x778] sm:$0xff] }
 0x291   :  { %v1140_v22 = vmul.f32 %v9439_v50, %v9535_v27  ;;  %v9540_v15 = vunpack.c.l.bf16 %v7535_v4  ;;  %v9541_v1 = vunpack.c.l.bf16 %v7541_v48  ;;  %v2345_v32 = vadd.f32 0.18741608, %v2344_v17  ;;  %9542 = vst [vmem:[#allocation55_spill] sm:$0xff] %v7878_v53 }
 0x292   :  { %v1380_v40 = vmul.f32 %v9431_v42, %v9537_v35  ;;  %v1388_v13 = vmul.f32 %v9434_v44, %v9538_v47  ;;  %3881 = vrcp.f32 %v7845_v39  ;;  %v2664_v47 = vmul.f32 %v2663_v34, %v7733_v9 }
 0x293   :  { %v1148_v19 = vmul.f32 %v9441_v21, %v9540_v15  ;;  %v1172_v27 = vmul.f32 %v9446_v28, %v9541_v1  ;;  %v1734_v35 = vadd.f32 %v1733_v26, %v1140_v22  ;;  %v7873_v20 = vadd.f32 1.0, %v2677_v11  ;;  %v7883_v15 = vld [vmem:[%s8236_s0 + $0x798] sm:$0xff] }
 0x294   :  { %v2028_v36 = vadd.f32 %v2027_v24, %v1380_v40  ;;  %v732_v26 = vunpack.c.l.bf16 %v7850_v54  ;;  %v9543_v17 = vunpack.c.l.bf16 %v7604_v18  ;;  %v9544_v34 = vunpack.c.l.bf16 %v7546_v41 }
 0x295   :  { %v740_v40 = vunpack.c.l.bf16 %v7863_v12  ;;  %v9545_v11 = vunpack.c.l.bf16 %v7575_v7  ;;  %v1404_v14 = vmul.f32 %v9441_v21, %v700_v43  ;;  %3883 = vrcp.f32 %v7873_v20 }
 0x296   :  { %v1156_v22 = vmul.f32 %v9444_v61, %v9543_v17  ;;  %v1196_v24 = vmul.f32 %v9448_v5, %v9544_v34  ;;  %v2029_v44 = vadd.f32 %v2028_v36, %v1388_v13  ;;  %v7903_v17 = vld [vmem:[%s8236_s0 + $0x7d8] sm:$0xff]  ;;  %v9546_v54 = vunpack.c.l.bf16 %v7725_v45 }
 0x297   :  { %v7896_v1 = vmul.f32 %v9450_v56, %v9545_v11  ;;  %v9547_v12 = vunpack.c.l.bf16 %v7770_v52  ;;  %v1735_v11 = vadd.f32 %v1734_v35, %v1148_v19  ;;  %v2346_v30 = vmul.f32 %v2345_v32, %v7716_v46  ;;  %v9551_v19 = vld [vmem:[#allocation57_spill] sm:$0xff]  ;;  %v9553_v52 = vld [vmem:[#allocation50_spill] sm:$0xff] }
 0x298   :  { %v1396_v34 = vmul.f32 %v9439_v50, %v9546_v54  ;;  %v2665_v43 = vadd.f32 0.18741608, %v2664_v47  ;;  %v756_v13 = vunpack.c.l.bf16 %v7878_v53  ;;  %v9548_v21 = vunpack.c.l.bf16 %v7609_v38  ;;  %v3882_v50 = vpop.eup %3881 }
 0x299   :  { %v1428_v42 = vmul.f32 %v9446_v28, %v9547_v12  ;;  %v1412_v45 = vmul.f32 %v9444_v61, %v708_v60  ;;  %v1736_v51 = vadd.f32 %v1735_v11, %v1156_v22  ;;  %v9549_v12 = vunpack.c.l.bf16 %v7626_v33  ;;  %v9556_v61 = vld [vmem:[#allocation27_spill] sm:$0xff] }
 0x29a   :  { %v1164_v29 = vmul.f32 %v9453_v8, %v9548_v21  ;;  %v2030_v54 = vadd.f32 %v2029_v44, %v1396_v34  ;;  %v9550_v32 = vunpack.c.l.bf16 %v7631_v25  ;;  %v9552_v47 = vunpack.c.l.bf16 %v7784_v58 }
 0x29b   :  { %v1180_v46 = vmul.f32 %v9456_v49, %v9549_v12  ;;  %v2360_v21 = vmul.f32 %v3882_v50, %v7845_v39  ;;  %v1420_v60 = vmul.f32 %v9453_v8, %v716_v59  ;;  %v2347_v34 = vadd.f32 1.1283791, %v2346_v30  ;;  %v9555_v12 = vld [vmem:[#allocation125_spill] sm:$0xff]  ;;  %v3884_v58 = vpop.eup %3883 }
 0x29c   :  { %v1188_v35 = vmul.f32 %v9551_v19, %v9550_v32  ;;  %v1452_v36 = vmul.f32 %v9448_v5, %v9552_v47  ;;  %v1737_v44 = vadd.f32 %v1736_v51, %v1164_v29  ;;  %v2031_v22 = vadd.f32 %v2030_v54, %v1404_v14  ;;  %v9558_v32 = vld [vmem:[#allocation22_spill] sm:$0xff] }
 0x29d   :  { %v2666_v11 = vmul.f32 %v2665_v43, %v7733_v9  ;;  %v9554_v53 = vunpack.c.l.bf16 %v9553_v52  ;;  %v9557_v10 = vunpack.c.l.bf16 %v9556_v61  ;;  %v2361_v62 = vsub.f32 1.0, %v2360_v21  ;;  %v9559_v43 = vld [vmem:[#allocation75_spill] sm:$0xff] }
 0x29e   :  { %v1436_v47 = vmul.f32 %v9456_v49, %v732_v26  ;;  %v1738_v5 = vadd.f32 %v1737_v44, %v1172_v27  ;;  %v2032_v25 = vadd.f32 %v2031_v22, %v1412_v45  ;;  %v2368_v51 = vand.u32 2147483647, %v7845_v39 }
 0x29f   :  { %v1204_v28 = vmul.f32 %v9555_v12, %v9554_v53  ;;  %v1212_v31 = vmul.f32 %v9558_v32, %v9557_v10  ;;  %v2370_v29 = vand.u32 2147483648, %v7845_v39  ;;  %v2680_v30 = vmul.f32 %v3884_v58, %v7873_v20 }
 0x2a0   :  { %v1444_v9 = vmul.f32 %v9551_v19, %v740_v40  ;;  %v2362_v14 = vmul.f32 %v3882_v50, %v2361_v62  ;;  %vm2365_vm11 = vweird.f32 %v3882_v50  ;;  %v1739_v53 = vadd.f32 %v1738_v5, %v1180_v46 }
 0x2a1   :  { %v2033_v59 = vadd.f32 %v2032_v25, %v1420_v60  ;;  %v2348_v10 = vmul.f32 %v2347_v34, %v9559_v43  ;;  %vm2364_vm12 = vweird.f32 %v7845_v39  ;;  %v2667_v54 = vadd.f32 1.1283791, %v2666_v11 }
 0x2a2   :  { %v2681_v26 = vsub.f32 1.0, %v2680_v30  ;;  %v2363_v27 = vadd.f32 %v3882_v50, %v2362_v14  ;;  %v2690_v45 = vand.u32 2147483648, %v7873_v20  ;;  %v1740_v21 = vadd.f32 %v1739_v53, %v1188_v35  ;;  %vm2366_vm13 = vmor %vm2364_vm12, %vm2365_vm11 }
 0x2a3   :  { %v2034_v44 = vadd.f32 %v2033_v59, %v1428_v42  ;;  %v2371_v22 = vor.u32 1.1754944e-38, %v2370_v29  ;;  %vm2685_vm14 = vweird.f32 %v3884_v58  ;;  %v2688_v62 = vand.u32 2147483647, %v7873_v20  ;;  %v9560_v29 = vld [vmem:[#allocation58_spill] sm:$0xff]  ;;  %v9564_v59 = vld [vmem:[#allocation65_spill] sm:$0xff] }
 0x2a4   :  { %v2682_v49 = vmul.f32 %v3884_v58, %v2681_v26  ;;  %v2367_v40 = vsel %vm2366_vm13, %v3882_v50, %v2363_v27  ;;  %vm2369_vm15 = vcmp.eq.f32.partialorder %v2368_v51, 8.507059e+37  ;;  %v1741_v5 = vadd.f32 %v1740_v21, %v1196_v24  ;;  %v9562_v51 = vld [vmem:[#allocation114_spill] sm:$0xff]  ;;  %v9568_v26 = vld [vmem:[#allocation7_spill] sm:$0xff] }
 0x2a5   :  { %v2035_v25 = vadd.f32 %v2034_v44, %v1436_v47  ;;  %v2372_v46 = vsel %vm2369_vm15, %v2371_v22, %v2367_v40  ;;  %vm2684_vm0 = vweird.f32 %v7873_v20  ;;  %v1460_v39 = vmul.f32 %v9555_v12, %v756_v13 }
 0x2a6   :  { %v2683_v60 = vadd.f32 %v3884_v58, %v2682_v49  ;;  %v2373_v34 = vmul.f32 %v2372_v46, %v2348_v10  ;;  %vm2686_vm1 = vmor %vm2684_vm0, %vm2685_vm14  ;;  %v2691_v35 = vor.u32 1.1754944e-38, %v2690_v45  ;;  %v1742_v42 = vadd.f32 %v1741_v5, %v1204_v28  ;;  %v7955_v49 = vld [vmem:[%s8236_s0 + $0x7f8] sm:$0xff]  ;;  %v9571_v5 = vld [vmem:[#allocation94_spill] sm:$0xff] }
 0x2a7   :  { %v2036_v11 = vadd.f32 %v2035_v25, %v1444_v9  ;;  %v2668_v30 = vmul.f32 %v2667_v54, %v9560_v29  ;;  %vm2689_vm2 = vcmp.eq.f32.partialorder %v2688_v62, 8.507059e+37  ;;  %v9561_v50 = vunpack.c.l.bf16 %v7809_v16  ;;  %9563 = vst [vmem:[#allocation37_spill] sm:$0xff] %v7955_v49  ;;  %v9566_v9 = vld [vmem:[#allocation47_spill] sm:$0xff] }
 0x2a8   :  { %v2687_v14 = vsel %vm2686_vm1, %v3884_v58, %v2683_v60  ;;  %v3524_v47 = vclamps-f32 %v2373_v34, 1.0  ;;  %v1743_v20 = vadd.f32 %v1742_v42, %v1212_v31  ;;  %v9565_v28 = vunpack.c.h.bf16 %v9564_v59  ;;  %v9567_v58 = vld [vmem:[#allocation97_spill] sm:$0xff] }
 0x2a9   :  { %v1228_v24 = vmul.f32 %v9562_v51, %v9561_v50  ;;  %v2692_v53 = vsel %vm2689_vm2, %v2691_v35, %v2687_v14  ;;  %v2037_v13 = vadd.f32 %v2036_v11, %v1452_v36  ;;  %v2109_v10 = vmul.f32 0.5, %v9567_v58  ;;  %v9575_v14 = vld [vmem:[#allocation124_spill] sm:$0xff] }
 0x2aa   :  { %v7960_v43 = vmul.f32 %v9566_v9, %v9565_v28  ;;  %v2693_v54 = vmul.f32 %v2692_v53, %v2668_v30  ;;  %v341_v27 = vunpack.c.h.bf16 %v9568_v26  ;;  %v2781_v45 = vadd.f32 1.0, %v3524_v47  ;;  %v9576_v47 = vld [vmem:[#allocation8_spill] sm:$0xff]  ;;  %v9577_v28 = vld [vmem:[#allocation82_spill] sm:$0xff] }
 0x2ab   :  { %v9569_v21 = vunpack.c.l.bf16 %v7883_v15  ;;  %v1744_v22 = vadd.f32 %v1743_v20, %v7896_v1  ;;  %v2038_v62 = vadd.f32 %v2037_v13, %v1460_v39  ;;  %v788_v36 = vunpack.c.l.bf16 %v7955_v49  ;;  %v9574_v1 = vld [vmem:[#allocation48_spill] sm:$0xff] }
 0x2ac   :  { %v3532_v31 = vclamps-f32 %v2693_v54, 1.0  ;;  %v9570_v40 = vunpack.c.l.bf16 %v7814_v6  ;;  %v9572_v46 = vunpack.c.l.bf16 %v7798_v23  ;;  %v2797_v34 = vmul.f32 %v2781_v45, %v2109_v10  ;;  %v9578_v10 = vld [vmem:[#allocation103_spill] sm:$0xff]  ;;  %v9579_v45 = vld [vmem:[#allocation9_spill] sm:$0xff]  ;;  %v9589_v54 = vld [vmem:[#allocation36_spill] sm:$0xff] }
 0x2ad   :  { %v1468_v44 = vmul.f32 %v9558_v32, %v9569_v21  ;;  %v9573_v35 = vunpack.c.l.bf16 %v7903_v17  ;;  %v1745_v11 = vadd.f32 %v1744_v22, %v1228_v24  ;;  %v2117_v39 = vmul.f32 0.5, %v9574_v1  ;;  %v9586_v24 = vld [vmem:[#allocation104_spill] sm:$0xff] }
 0x2ae   :  { %v1236_v25 = vmul.f32 %v9571_v5, %v9570_v40  ;;  %v1476_v60 = vmul.f32 %v9450_v56, %v9572_v46  ;;  %v2789_v30 = vadd.f32 1.0, %v3532_v31  ;;  %v349_v50 = vunpack.c.h.bf16 %v9575_v14 }
 0x2af   :  { %v1484_v42 = vmul.f32 %v9562_v51, %v9573_v35  ;;  %v2039_v29 = vadd.f32 %v2038_v62, %v1468_v44  ;;  %v357_v53 = vunpack.c.h.bf16 %v9576_v47  ;;  %v2813_v20 = vpack.c.bf16 %v2797_v34, %v2797_v34 }
 0x2b0   :  { %v1746_v13 = vadd.f32 %v1745_v11, %v1236_v25  ;;  %v2805_v58 = vmul.f32 %v2789_v30, %v2117_v39  ;;  %v1492_v44 = vmul.f32 %v9571_v5, %v788_v36 }
 0x2b1   :  { %v2040_v59 = vadd.f32 %v2039_v29, %v1476_v60  ;;  %v2977_v46 = vunpack.c.l.b16 %v2813_v20  ;;  %v9580_v20 = vld [vmem:[#allocation78_spill] sm:$0xff]  ;;  %v9584_v29 = vld [vmem:[#allocation61_spill] sm:$0xff] }
 0x2b2   :  { %v1747_v22 = vrot.slane %v1746_v13, 4  ;;  %v2821_v40 = vpack.c.bf16 %v2805_v58, %v2805_v58 }
 0x2b3   :  { %v2041_v62 = vadd.f32 %v2040_v59, %v1484_v42  ;;  %v9581_v59 = vld [vmem:[#allocation53_spill] sm:$0xff] }
 0x2b4   :  { %v1748_v34 = vadd.f32 %v1747_v22, %v1746_v13  ;;  %v2985_v1 = vunpack.c.l.b16 %v2821_v40  ;;  %v1755_v58 = vadd.f32 %v9581_v59, %v9580_v20  ;;  %v9582_v22 = vld [vmem:[#allocation126_spill] sm:$0xff]  ;;  %v9583_v40 = vld [vmem:[#allocation80_spill] sm:$0xff]  ;;  %v9585_v42 = vld [vmem:[#allocation17_spill] sm:$0xff]  ;;  %v605_v20 = vunpack.c.h.bf16 %v9586_v24 }
 0x2b5   :  { %v2042_v35 = vadd.f32 %v2041_v62, %v1492_v44  ;;  %v597_v62 = vunpack.c.h.bf16 %v9582_v22  ;;  %v2051_v39 = vadd.f32 %v9584_v29, %v9583_v40  ;;  %v9587_v59 = vld [vmem:[#allocation25_spill] sm:$0xff]  ;;  %v9588_v22 = vld [vmem:[#allocation106_spill] sm:$0xff]  ;;  %v9593_v24 = vld [vmem:[#allocation12_spill] sm:$0xff] }
 0x2b6   :  { %v1749_v30 = vrot.slane %v1748_v34, 2  ;;  %v2994_v13 = vsel %vm2988_vm8, %v2985_v1, %v2977_v46  ;;  %v1756_v25 = vadd.f32 %v1755_v58, %v9585_v42  ;;  %v613_v21 = vunpack.c.h.bf16 %v9588_v22  ;;  %v9591_v42 = vld [vmem:[#allocation73_spill] sm:$0xff]  ;;  %v9592_v58 = vld [vmem:[#allocation64_spill] sm:$0xff] }
 0x2b7   :  { %v2043_v14 = vrot.slane %v2042_v35, 4  ;;  %v3002_v11 = vpack.c.b16 %v2994_v13, %v2994_v13  ;;  %v2052_v46 = vadd.f32 %v2051_v39, %v9587_v59  ;;  %v629_v31 = vunpack.c.h.bf16 %v9593_v24  ;;  %v9594_v39 = vld [vmem:[#allocation112_spill] sm:$0xff]  ;;  %v9595_v59 = vld [vmem:[#allocation46_spill] sm:$0xff] }
 0x2b8   :  { %v1750_v36 = vadd.f32 %v1749_v30, %v1748_v34  ;;  %v1757_v29 = vadd.f32 %v1756_v25, %v9589_v54  ;;  %v1045_v22 = vmul.f32 %v9595_v59, %v341_v27  ;;  %v1301_v54 = vmul.f32 %v9595_v59, %v597_v62  ;;  %v9596_v25 = vld [vmem:[#allocation88_spill] sm:$0xff] }
 0x2b9   :  { %v2044_v60 = vadd.f32 %v2043_v14, %v2042_v35  ;;  %3470 = vmatmul.bf16.vlgmr.msrb.gmra.mxu1 %v3002_v11  ;;  %v9590_v35 = vld [vmem:[#allocation68_spill] sm:$0xff]  ;;  %v621_v14 = vunpack.c.h.bf16 %v9591_v42  ;;  %v2053_v13 = vadd.f32 %v2052_v46, %v9592_v58  ;;  %v637_v11 = vunpack.c.h.bf16 %v9594_v39 }
 0x2ba   :  { %v1751_v1 = vrot.slane %v1750_v36, 1  ;;  %v1758_v34 = vadd.f32 %v1757_v29, %v9596_v25  ;;  %v9597_v42 = vld [vmem:[#allocation96_spill] sm:$0xff]  ;;  %v9600_v29 = vld [vmem:[#allocation19_spill] sm:$0xff]  ;;  %v9603_v25 = vld [vmem:[#allocation98_spill] sm:$0xff] }
 0x2bb   :  { %v2045_v44 = vrot.slane %v2044_v60, 2  ;;  %v2054_v30 = vadd.f32 %v2053_v13, %v7960_v43  ;;  %v645_v43 = vunpack.c.h.bf16 %v9600_v29  ;;  %v9601_v13 = vld [vmem:[#allocation87_spill] sm:$0xff] }
 0x2bc   :  { %v1752_v40 = vadd.f32 %v1751_v1, %v1750_v36  ;;  %v9598_v36 = vld [vmem:[#allocation10_spill] sm:$0xff]  ;;  %v1759_v58 = vadd.f32 %v1758_v34, %v1045_v22  ;;  %v653_v39 = vunpack.c.h.bf16 %v9601_v13  ;;  %v9605_v34 = vld [vmem:[#allocation33_spill] sm:$0xff]  ;;  %v9606_v22 = vunpack.c.h.bf16 %v9577_v28 }
 0x2bd   :  { %v2046_v47 = vadd.f32 %v2045_v44, %v2044_v60  ;;  %v1053_v60 = vmul.f32 %v9598_v36, %v349_v50  ;;  %v9599_v44 = vld [vmem:[#allocation63_spill] sm:$0xff]  ;;  %v1309_v1 = vmul.f32 %v9598_v36, %v605_v20  ;;  %v2055_v27 = vadd.f32 %v2054_v30, %v1301_v54  ;;  %v9607_v54 = vld [vmem:[#allocation62_spill] sm:$0xff] }
 0x2be   :  { %v8022_v5 = vadd.f32 %v9597_v42, %v1752_v40  ;;  %v1061_v46 = vmul.f32 %v9599_v44, %v357_v53  ;;  %v1317_v26 = vmul.f32 %v9599_v44, %v613_v21  ;;  %v9602_v40 = vld [vmem:[#allocation113_spill] sm:$0xff]  ;;  %v669_v50 = vunpack.c.h.bf16 %v9603_v25  ;;  %v9611_v25 = vld [vmem:[#allocation71_spill] sm:$0xff] }
 0x2bf   :  { %v2047_v9 = vrot.slane %v2046_v47, 1  ;;  %v661_v59 = vunpack.c.h.bf16 %v9602_v40  ;;  %v1760_v49 = vadd.f32 %v1759_v58, %v1053_v60  ;;  %v2056_v53 = vadd.f32 %v2055_v27, %v1309_v1  ;;  %v9609_v27 = vld [vmem:[#allocation32_spill] sm:$0xff] }
 0x2c0   :  { %v8029_v62 = vmul.f32 0.70710677, %v8022_v5  ;;  %v1069_v36 = vmul.f32 %v9607_v54, %v9606_v22  ;;  %v1325_v44 = vmul.f32 %v9607_v54, %v621_v14  ;;  %v9608_v58 = vunpack.c.h.bf16 %v9578_v10  ;;  %v9613_v54 = vld [vmem:[#allocation70_spill] sm:$0xff] }
 0x2c1   :  { %v2048_v24 = vadd.f32 %v2047_v9, %v2046_v47  ;;  %v9604_v9 = vld [vmem:[#allocation74_spill] sm:$0xff]  ;;  %v1761_v29 = vadd.f32 %v1760_v49, %v1061_v46  ;;  %v2057_v13 = vadd.f32 %v2056_v53, %v1317_v26  ;;  %v9610_v40 = vunpack.c.h.bf16 %v9579_v45 }
 0x2c2   :  { %v2376_v21 = vmul.f32 %v8029_v62, %v8029_v62  ;;  %v1333_v28 = vmul.f32 %v9609_v27, %v629_v31  ;;  %v1341_v22 = vmul.f32 %v9611_v25, %v637_v11  ;;  %v9612_v45 = vunpack.c.h.bf16 %v7506_v37  ;;  %v9617_v47 = vld [vmem:[#allocation86_spill] sm:$0xff] }
 0x2c3   :  { %v8036_v20 = vadd.f32 %v9597_v42, %v2048_v24  ;;  %v1077_v24 = vmul.f32 %v9609_v27, %v9608_v58  ;;  %v1085_v30 = vmul.f32 %v9611_v25, %v9610_v40  ;;  %v1762_v14 = vadd.f32 %v1761_v29, %v1069_v36 }
 0x2c4   :  { %v8049_v1 = vmin.f32 %v2376_v21, 16.0  ;;  %v2058_v49 = vadd.f32 %v2057_v13, %v1325_v44  ;;  %v1093_v58 = vmul.f32 %v9613_v54, %v9612_v45  ;;  %v9614_v29 = vunpack.c.h.bf16 %v7514_v57  ;;  %v9615_v13 = vld [vmem:[#allocation45_spill] sm:$0xff] }
 0x2c5   :  { %v8047_v60 = vmul.f32 0.70710677, %v8036_v20  ;;  %v1763_v31 = vadd.f32 %v1762_v14, %v1077_v24  ;;  %v9616_v25 = vunpack.c.h.bf16 %v7519_v63  ;;  %v1349_v21 = vmul.f32 %v9613_v54, %v645_v43  ;;  %v9618_v43 = vld [vmem:[#allocation40_spill] sm:$0xff]  ;;  %v9619_v54 = vld [vmem:[#allocation83_spill] sm:$0xff] }
 0x2c6   :  { %v2378_v46 = vmul.f32 2.1237322e-06, %v8049_v1  ;;  %v2389_v26 = vmul.f32 3.8918573e-05, %v8049_v1  ;;  %v2059_v27 = vadd.f32 %v2058_v49, %v1333_v28  ;;  %v1101_v40 = vmul.f32 %v9615_v13, %v9614_v29 }
 0x2c7   :  { %v2696_v53 = vmul.f32 %v8047_v60, %v8047_v60  ;;  %v1109_v10 = vmul.f32 %v9617_v47, %v9616_v25  ;;  %v1764_v42 = vadd.f32 %v1763_v31, %v1085_v30  ;;  %v1357_v57 = vmul.f32 %v9615_v13, %v653_v39  ;;  %v9620_v13 = vld [vmem:[#allocation14_spill] sm:$0xff] }
 0x2c8   :  { %v2379_v11 = vadd.f32 0.00028619796, %v2378_v46  ;;  %v2390_v36 = vadd.f32 0.001143296, %v2389_v26  ;;  %v2060_v37 = vadd.f32 %v2059_v27, %v1341_v22  ;;  %v1365_v49 = vmul.f32 %v9617_v47, %v661_v59 }
 0x2c9   :  { %v8068_v44 = vmin.f32 %v2696_v53, 16.0  ;;  %v1765_v46 = vadd.f32 %v1764_v42, %v1093_v58  ;;  %v725_v30 = vunpack.c.h.bf16 %v9618_v43  ;;  %v685_v59 = vunpack.c.h.bf16 %v9620_v13 }
 0x2ca   :  { %v2380_v45 = vmul.f32 %v2379_v11, %v8049_v1  ;;  %v2391_v24 = vmul.f32 %v2390_v36, %v8049_v1  ;;  %v2061_v63 = vadd.f32 %v2060_v37, %v1349_v21  ;;  %v9621_v47 = vunpack.c.h.bf16 %v7524_v3  ;;  %v9622_v21 = vld [vmem:[#allocation93_spill] sm:$0xff] }
 0x2cb   :  { %v2698_v28 = vmul.f32 2.1237322e-06, %v8068_v44  ;;  %v2709_v14 = vmul.f32 3.8918573e-05, %v8068_v44  ;;  %v1766_v27 = vadd.f32 %v1765_v46, %v1101_v40  ;;  %v9623_v40 = vld [vmem:[#allocation21_spill] sm:$0xff] }
 0x2cc   :  { %v2381_v26 = vadd.f32 0.0036580483, %v2380_v45  ;;  %v2392_v53 = vadd.f32 0.014752088, %v2391_v24  ;;  %v2062_v11 = vadd.f32 %v2061_v63, %v1357_v57  ;;  %v1117_v58 = vmul.f32 %v9622_v21, %v9621_v47 }
 0x2cd   :  { %v2699_v29 = vadd.f32 0.00028619796, %v2698_v28  ;;  %v2710_v22 = vadd.f32 0.001143296, %v2709_v14  ;;  %v1767_v37 = vadd.f32 %v1766_v27, %v1109_v10  ;;  %v693_v14 = vunpack.c.h.bf16 %v9623_v40 }
 0x2ce   :  { %v2382_v36 = vmul.f32 %v2381_v26, %v8049_v1  ;;  %v2393_v25 = vmul.f32 %v2392_v53, %v8049_v1  ;;  %v2063_v45 = vadd.f32 %v2062_v11, %v1365_v49  ;;  %v1373_v57 = vmul.f32 %v9622_v21, %v669_v50  ;;  %v9625_v26 = vld [vmem:[#allocation56_spill] sm:$0xff] }
 0x2cf   :  { %v2700_v39 = vmul.f32 %v2699_v29, %v8068_v44  ;;  %v2711_v42 = vmul.f32 %v2710_v22, %v8068_v44  ;;  %v9624_v63 = vunpack.c.h.bf16 %v7529_v0  ;;  %v9626_v29 = vunpack.c.h.bf16 %v7565_v2  ;;  %v9627_v22 = vld [vmem:[#allocation107_spill] sm:$0xff]  ;;  %v9630_v21 = vld [vmem:[#allocation72_spill] sm:$0xff] }
 0x2d0   :  { %v2394_v24 = vadd.f32 0.112945676, %v2393_v25  ;;  %v1768_v3 = vadd.f32 %v1767_v37, %v1117_v58  ;;  %v2383_v31 = vadd.f32 0.05243302, %v2382_v36  ;;  %v773_v49 = vunpack.c.h.bf16 %v7798_v23 }
 0x2d1   :  { %v2701_v28 = vadd.f32 0.0036580483, %v2700_v39  ;;  %v2712_v46 = vadd.f32 0.014752088, %v2711_v42  ;;  %v1125_v53 = vmul.f32 %v9625_v26, %v9624_v63  ;;  %v1133_v13 = vmul.f32 %v9627_v22, %v9626_v29  ;;  %v9633_v63 = vld [vmem:[#allocation89_spill] sm:$0xff] }
 0x2d2   :  { %v2395_v10 = vmul.f32 %v2394_v24, %v8049_v1  ;;  %v2064_v27 = vadd.f32 %v2063_v45, %v1373_v57  ;;  %v9628_v50 = vunpack.c.h.bf16 %v9604_v9  ;;  %v1389_v0 = vmul.f32 %v9627_v22, %v685_v59  ;;  %v9632_v24 = vld [vmem:[#allocation109_spill] sm:$0xff] }
 0x2d3   :  { %v2713_v11 = vmul.f32 %v2712_v46, %v8068_v44  ;;  %v1769_v39 = vadd.f32 %v1768_v3, %v1125_v53  ;;  %v2702_v2 = vmul.f32 %v2701_v28, %v8068_v44  ;;  %v525_v47 = vunpack.c.h.bf16 %v7809_v16  ;;  %v9635_v53 = vld [vmem:[#allocation117_spill] sm:$0xff] }
 0x2d4   :  { %v1381_v25 = vmul.f32 %v9625_v26, %v9628_v50  ;;  %v2396_v42 = vadd.f32 0.4994258, %v2395_v10  ;;  %v9629_v36 = vunpack.c.h.bf16 %v7535_v4  ;;  %v9631_v45 = vunpack.c.h.bf16 %v7570_v55 }
 0x2d5   :  { %v2714_v37 = vadd.f32 0.112945676, %v2713_v11  ;;  %v1770_v9 = vadd.f32 %v1769_v39, %v1133_v13  ;;  %v2384_v46 = vmul.f32 %v2383_v31, %v8049_v1  ;;  %v709_v26 = vunpack.c.h.bf16 %v9633_v63  ;;  %v9637_v11 = vld [vmem:[#allocation11_spill] sm:$0xff] }
 0x2d6   :  { %v1149_v58 = vmul.f32 %v9630_v21, %v9629_v36  ;;  %v1141_v40 = vmul.f32 %v9632_v24, %v9631_v45  ;;  %v2065_v57 = vadd.f32 %v2064_v27, %v1381_v25  ;;  %v2397_v59 = vmul.f32 %v2396_v42, %v8049_v1  ;;  %v9638_v39 = vld [vmem:[#allocation99_spill] sm:$0xff] }
 0x2d7   :  { %v9634_v28 = vunpack.c.h.bf16 %v7604_v18  ;;  %v2715_v4 = vmul.f32 %v2714_v37, %v8068_v44  ;;  %v1397_v22 = vmul.f32 %v9632_v24, %v693_v14  ;;  %v2703_v13 = vadd.f32 0.05243302, %v2702_v2 }
 0x2d8   :  { %v1771_v3 = vadd.f32 %v1770_v9, %v1141_v40  ;;  %v2066_v55 = vadd.f32 %v2065_v57, %v1389_v0  ;;  %v8124_v10 = vadd.f32 1.0, %v2397_v59  ;;  %v533_v27 = vunpack.c.h.bf16 %v7814_v6  ;;  %v9642_v9 = vld [vmem:[#allocation110_spill] sm:$0xff]  ;;  %v9643_v59 = vld [vmem:[#allocation101_spill] sm:$0xff] }
 0x2d9   :  { %v1157_v29 = vmul.f32 %v9635_v53, %v9634_v28  ;;  %v9636_v31 = vunpack.c.h.bf16 %v7541_v48  ;;  %v2716_v25 = vadd.f32 0.4994258, %v2715_v4  ;;  %v717_v18 = vunpack.c.h.bf16 %v9638_v39 }
 0x2da   :  { %v1772_v42 = vadd.f32 %v1771_v3, %v1149_v58  ;;  %v2067_v36 = vadd.f32 %v2066_v55, %v1397_v22  ;;  %v2385_v45 = vadd.f32 0.18741608, %v2384_v46  ;;  %3885 = vrcp.f32 %v8124_v10 }
 0x2db   :  { %v1173_v50 = vmul.f32 %v9637_v11, %v9636_v31  ;;  %v9639_v14 = vunpack.c.h.bf16 %v9605_v34  ;;  %v1413_v2 = vmul.f32 %v9635_v53, %v709_v26  ;;  %v2717_v37 = vmul.f32 %v2716_v25, %v8068_v44  ;;  %v9648_v31 = vld [vmem:[#allocation115_spill] sm:$0xff] }
 0x2dc   :  { %v9640_v48 = vunpack.c.h.bf16 %v7609_v38  ;;  %v9641_v40 = vunpack.c.h.bf16 %v7546_v41  ;;  %v1773_v57 = vadd.f32 %v1772_v42, %v1157_v29  ;;  %v2704_v46 = vmul.f32 %v2703_v13, %v8068_v44  ;;  %v9649_v25 = vld [vmem:[#allocation55_spill] sm:$0xff] }
 0x2dd   :  { %v1405_v0 = vmul.f32 %v9630_v21, %v9639_v14  ;;  %v733_v63 = vunpack.c.h.bf16 %v9643_v59  ;;  %v9644_v34 = vunpack.c.h.bf16 %v7575_v7  ;;  %v8150_v28 = vadd.f32 1.0, %v2717_v37  ;;  %v9647_v7 = vld [vmem:[#allocation67_spill] sm:$0xff] }
 0x2de   :  { %v1165_v24 = vmul.f32 %v9453_v8, %v9640_v48  ;;  %v1197_v58 = vmul.f32 %v9642_v9, %v9641_v40  ;;  %v1429_v38 = vmul.f32 %v9637_v11, %v725_v30  ;;  %v9645_v41 = vunpack.c.h.bf16 %v9619_v54 }
 0x2df   :  { %v8148_v21 = vmul.f32 %v9450_v56, %v9644_v34  ;;  %v2068_v26 = vadd.f32 %v2067_v36, %v1405_v0  ;;  %v2386_v4 = vmul.f32 %v2385_v45, %v8049_v1  ;;  %v9646_v22 = vunpack.c.h.bf16 %v7626_v33 }
 0x2e0   :  { %v1453_v53 = vmul.f32 %v9642_v9, %v9645_v41  ;;  %v1774_v29 = vadd.f32 %v1773_v57, %v1165_v24  ;;  %v1421_v55 = vmul.f32 %v9453_v8, %v717_v18  ;;  %3887 = vrcp.f32 %v8150_v28  ;;  %v3886_v11 = vpop.eup %3885 }
 0x2e1   :  { %v1181_v3 = vmul.f32 %v9647_v7, %v9646_v22  ;;  %v2069_v13 = vadd.f32 %v2068_v26, %v1413_v2  ;;  %v741_v43 = vunpack.c.h.bf16 %v9648_v31  ;;  %v757_v30 = vunpack.c.h.bf16 %v9649_v25  ;;  %v9653_v31 = vld [vmem:[#allocation37_spill] sm:$0xff] }
 0x2e2   :  { %v765_v54 = vunpack.c.h.bf16 %v7883_v15  ;;  %v2705_v39 = vadd.f32 0.18741608, %v2704_v46  ;;  %v1437_v42 = vmul.f32 %v9647_v7, %v733_v63  ;;  %v1775_v1 = vadd.f32 %v1774_v29, %v1173_v50 }
 0x2e3   :  { %v2070_v36 = vadd.f32 %v2069_v13, %v1421_v55  ;;  %v2400_v33 = vmul.f32 %v3886_v11, %v8124_v10  ;;  %v781_v45 = vunpack.c.h.bf16 %v7903_v17  ;;  %v9650_v8 = vunpack.c.h.bf16 %v9590_v35 }
 0x2e4   :  { %v9651_v14 = vunpack.c.h.bf16 %v9553_v52  ;;  %v2387_v2 = vadd.f32 1.1283791, %v2386_v4  ;;  %v9652_v15 = vunpack.c.h.bf16 %v9556_v61  ;;  %v1776_v48 = vadd.f32 %v1775_v1, %v1181_v3  ;;  %v9654_v1 = vld [vmem:[#allocation94_spill] sm:$0xff] }
 0x2e5   :  { %v1189_v18 = vmul.f32 %v9551_v19, %v9650_v8  ;;  %v2071_v50 = vadd.f32 %v2070_v36, %v1429_v38  ;;  %v2401_v24 = vsub.f32 1.0, %v2400_v33  ;;  %v2408_v40 = vand.u32 2147483647, %v8124_v10 }
 0x2e6   :  { %v1205_v0 = vmul.f32 %v9555_v12, %v9651_v14  ;;  %v1213_v37 = vmul.f32 %v9558_v32, %v9652_v15  ;;  %v2410_v17 = vand.u32 2147483648, %v8124_v10  ;;  %v1445_v35 = vmul.f32 %v9551_v19, %v741_v43  ;;  %v3888_v61 = vpop.eup %3887 }
 0x2e7   :  { %v2706_v9 = vmul.f32 %v2705_v39, %v8068_v44  ;;  %v1229_v52 = vmul.f32 %v9562_v51, %v525_v47  ;;  %v1777_v57 = vadd.f32 %v1776_v48, %v1189_v18  ;;  %v2072_v46 = vadd.f32 %v2071_v50, %v1437_v42 }
 0x2e8   :  { %v2402_v59 = vmul.f32 %v3886_v11, %v2401_v24  ;;  %vm2405_vm3 = vweird.f32 %v3886_v11  ;;  %v1461_v63 = vmul.f32 %v9555_v12, %v757_v30  ;;  %v1469_v34 = vmul.f32 %v9558_v32, %v765_v54 }
 0x2e9   :  { %v2388_v26 = vmul.f32 %v2387_v2, %v8029_v62  ;;  %v2720_v38 = vmul.f32 %v3888_v61, %v8150_v28  ;;  %v1778_v19 = vadd.f32 %v1777_v57, %v1197_v58  ;;  %v2073_v41 = vadd.f32 %v2072_v46, %v1445_v35 }
 0x2ea   :  { %v2403_v44 = vadd.f32 %v3886_v11, %v2402_v59  ;;  %vm2404_vm4 = vweird.f32 %v8124_v10  ;;  %vm2409_vm5 = vcmp.eq.f32.partialorder %v2408_v40, 8.507059e+37  ;;  %v2411_v16 = vor.u32 1.1754944e-38, %v2410_v17 }
 0x2eb   :  { %vm2406_vm6 = vmor %vm2404_vm4, %vm2405_vm3  ;;  %v2707_v47 = vadd.f32 1.1283791, %v2706_v9  ;;  %v2721_v29 = vsub.f32 1.0, %v2720_v38  ;;  %v1779_v4 = vadd.f32 %v1778_v19, %v1205_v0  ;;  %v2074_v22 = vadd.f32 %v2073_v41, %v1453_v53 }
 0x2ec   :  { %v2407_v7 = vsel %vm2406_vm6, %v3886_v11, %v2403_v44  ;;  %vm2725_vm7 = vweird.f32 %v3888_v61  ;;  %v2728_v12 = vand.u32 2147483647, %v8150_v28  ;;  %v2730_v32 = vand.u32 2147483648, %v8150_v28 }
 0x2ed   :  { %v2412_v62 = vsel %vm2409_vm5, %v2411_v16, %v2407_v7  ;;  %v2722_v3 = vmul.f32 %v3888_v61, %v2721_v29  ;;  %v1780_v58 = vadd.f32 %v1779_v4, %v1213_v37  ;;  %v2075_v55 = vadd.f32 %v2074_v22, %v1461_v63 }
 0x2ee   :  { %v2413_v13 = vmul.f32 %v2412_v62, %v2388_v26  ;;  %v789_v10 = vunpack.c.h.bf16 %v9653_v31  ;;  %v1477_v43 = vmul.f32 %v9450_v56, %v773_v49  ;;  %v1485_v25 = vmul.f32 %v9562_v51, %v781_v45  ;;  %v9655_v26 = vld [vmem:[#allocation96_spill] sm:$0xff] }
 0x2ef   :  { %v2723_v53 = vadd.f32 %v3888_v61, %v2722_v3  ;;  %vm2724_vm9 = vweird.f32 %v8150_v28  ;;  %v1781_v30 = vadd.f32 %v1780_v58, %v8148_v21  ;;  %v2076_v54 = vadd.f32 %v2075_v55, %v1469_v34 }
 0x2f0   :  { %v3525_v11 = vclamps-f32 %v2413_v13, 1.0  ;;  %v2708_v39 = vmul.f32 %v2707_v47, %v8047_v60  ;;  %vm2726_vm10 = vmor %vm2724_vm9, %vm2725_vm7  ;;  %v2731_v42 = vor.u32 1.1754944e-38, %v2730_v32  ;;  %v1237_v23 = vmul.f32 %v9654_v1, %v533_v27 }
 0x2f1   :  { %v2727_v36 = vsel %vm2726_vm10, %v3888_v61, %v2723_v53  ;;  %vm2729_vm11 = vcmp.eq.f32.partialorder %v2728_v12, 8.507059e+37  ;;  %v1782_v56 = vadd.f32 %v1781_v30, %v1229_v52  ;;  %v2077_v51 = vadd.f32 %v2076_v54, %v1477_v43 }
 0x2f2   :  { %v2110_v49 = vmul.f32 0.5, %v8022_v5  ;;  %v2732_v28 = vsel %vm2729_vm11, %v2731_v42, %v2727_v36  ;;  %v2782_v33 = vadd.f32 1.0, %v3525_v11  ;;  %v1493_v45 = vmul.f32 %v9654_v1, %v789_v10 }
 0x2f3   :  { %v2733_v21 = vmul.f32 %v2732_v28, %v2708_v39  ;;  %v1783_v8 = vadd.f32 %v1782_v56, %v1237_v23  ;;  %v2078_v60 = vadd.f32 %v2077_v51, %v1485_v25  ;;  %v2118_v6 = vmul.f32 0.5, %v8036_v20 }
 0x2f4   :  { %v2798_v18 = vmul.f32 %v2782_v33, %v2110_v49  ;;  %vm3501_vm4 = vcmask 123904  }
 0x2f5   :  { %v3533_v14 = vclamps-f32 %v2733_v21, 1.0  ;;  %v1784_v0 = vrot.slane %v1783_v8, 4  ;;  %v2079_v2 = vadd.f32 %v2078_v60, %v1493_v45 }
 0x2f6   :  { %v2814_v15 = vpack.c.bf16 %v2798_v18, %v2798_v18 }
 0x2f7   :  { %v2790_v27 = vadd.f32 1.0, %v3533_v14  ;;  %v1785_v37 = vadd.f32 %v1784_v0, %v1783_v8  ;;  %v2080_v48 = vrot.slane %v2079_v2, 4 }
 0x2f8   :  { %v2978_v17 = vunpack.c.l.b16 %v2814_v15  ;;  %v3419_v15 = vpop.f32.mrf.mxu1 }
 0x2f9   :  { %v2806_v50 = vmul.f32 %v2790_v27, %v2118_v6  ;;  %v1786_v24 = vrot.slane %v1785_v37, 2  ;;  %v2081_v5 = vadd.f32 %v2080_v48, %v2079_v2  ;;  %v3860_v6 = vld [vmem:[%s8240_s4] ss:$0 sm:$0xff]  ;;  %v3406_v27 = vpop.f32.mrf.mxu0  ;;  %v3445_v48 = vpop.f32.mrf.mxu3  ;;  %s3923_s4 = smov [#allocation3]  }
 0x2fa   :  { %s3508_s15 = sshll.u32 %s3923_s4, 4  ;;  %s3509_s15 = int_to_ptr.vmem [resolvable:$true] %s3508_s15 }
 0x2fb   :  { %v2822_v40 = vpack.c.bf16 %v2806_v50, %v2806_v50  ;;  %v1787_v35 = vadd.f32 %v1786_v24, %v1785_v37  ;;  %v2082_v9 = vrot.slane %v2081_v5, 2  ;;  %v3432_v37 = vpop.f32.mrf.mxu2  ;;  %v3407_v24 = vadd.f32 %v3860_v6, %v3406_v27 }
 0x2fd   :  { %v2986_v52 = vunpack.c.l.b16 %v2822_v40  ;;  %v1788_v57 = vrot.slane %v1787_v35, 1  ;;  %v2083_v46 = vadd.f32 %v2082_v9, %v2081_v5 }
 0x2ff   :  { %v2995_v61 = vsel %vm2988_vm8, %v2986_v52, %v2978_v17  ;;  %v1789_v59 = vadd.f32 %v1788_v57, %v1787_v35  ;;  %v2084_v63 = vrot.slane %v2083_v46, 1  ;;  %v3420_v35 = vadd.f32 %v3419_v15, %v3407_v24 }
 0x300   :  { %v3003_v34 = vpack.c.b16 %v2995_v61, %v2995_v61 }
 0x301   :  { %v2085_v20 = vadd.f32 %v2084_v63, %v2083_v46  ;;  %v8210_v38 = vadd.f32 %v9655_v26, %v1789_v59  ;;  %v3433_v46 = vadd.f32 %v3432_v37, %v3420_v35 }
 0x302   :  { %3483 = vmatmul.bf16.vlgmr.msrb.gmra.mxu2 %v3003_v34 }
 0x303   :  { %v8213_v19 = vadd.f32 %v9655_v26, %v2085_v20  ;;  %v8216_v41 = vmul.f32 0.70710677, %v8210_v38  ;;  %v3446_v26 = vadd.f32 %v3445_v48, %v3433_v46 }
 0x305   :  { %v8219_v44 = vmul.f32 0.70710677, %v8213_v19  ;;  %v2416_v16 = vmul.f32 %v8216_v41, %v8216_v41 }
 0x307   :  { %v2417_v47 = vmin.f32 %v2416_v16, 16.0  ;;  %v2736_v29 = vmul.f32 %v8219_v44, %v8219_v44  ;;  %v3408_v16 = vpop.f32.mrf.mxu0 }
 0x309   :  { %v2418_v4 = vmul.f32 2.1237322e-06, %v2417_v47  ;;  %v2429_v22 = vmul.f32 3.8918573e-05, %v2417_v47  ;;  %v2737_v7 = vmin.f32 %v2736_v29, 16.0  ;;  %v3421_v29 = vpop.f32.mrf.mxu1 }
 0x30b   :  { %v2419_v12 = vadd.f32 0.00028619796, %v2418_v4  ;;  %v2430_v32 = vadd.f32 0.001143296, %v2429_v22  ;;  %v2738_v62 = vmul.f32 2.1237322e-06, %v2737_v7  ;;  %v3434_v22 = vpop.f32.mrf.mxu2 }
 0x30c   :  { %v2749_v3 = vmul.f32 3.8918573e-05, %v2737_v7 }
 0x30d   :  { %v2420_v58 = vmul.f32 %v2419_v12, %v2417_v47  ;;  %v2431_v55 = vmul.f32 %v2430_v32, %v2417_v47  ;;  %v2739_v13 = vadd.f32 0.00028619796, %v2738_v62  ;;  %v3447_v12 = vpop.f32.mrf.mxu3 }
 0x30e   :  { %v2750_v31 = vadd.f32 0.001143296, %v2749_v3 }
 0x30f   :  { %v2421_v10 = vadd.f32 0.0036580483, %v2420_v58  ;;  %v2432_v43 = vadd.f32 0.014752088, %v2431_v55  ;;  %v2740_v25 = vmul.f32 %v2739_v13, %v2737_v7 }
 0x310   :  { %v2751_v53 = vmul.f32 %v2750_v31, %v2737_v7 }
 0x311   :  { %v2433_v30 = vmul.f32 %v2432_v43, %v2417_v47  ;;  %v2741_v54 = vadd.f32 0.0036580483, %v2740_v25  ;;  %v2422_v39 = vmul.f32 %v2421_v10, %v2417_v47 }
 0x312   :  { %v2752_v11 = vadd.f32 0.014752088, %v2751_v53 }
 0x313   :  { %v2434_v42 = vadd.f32 0.112945676, %v2433_v30  ;;  %v2742_v36 = vmul.f32 %v2741_v54, %v2737_v7  ;;  %v2423_v51 = vadd.f32 0.05243302, %v2422_v39  ;;  %v3458_v39 = vpop.f32.mrf.mxu0 }
 0x314   :  { %v2753_v1 = vmul.f32 %v2752_v11, %v2737_v7 }
 0x315   :  { %v2435_v23 = vmul.f32 %v2434_v42, %v2417_v47  ;;  %v2743_v21 = vadd.f32 0.05243302, %v2742_v36  ;;  %v2424_v8 = vmul.f32 %v2423_v51, %v2417_v47  ;;  %v2119_v51 = vmul.f32 0.5, %v8213_v19 }
 0x316   :  { %v2754_v56 = vadd.f32 0.112945676, %v2753_v1  ;;  %v3459_v1 = vadd.f32 %v3458_v39, %v3446_v26 }
 0x317   :  { %v2436_v49 = vadd.f32 0.4994258, %v2435_v23  ;;  %v2744_v14 = vmul.f32 %v2743_v21, %v2737_v7  ;;  %v2425_v2 = vadd.f32 0.18741608, %v2424_v8  ;;  %v2111_v23 = vmul.f32 0.5, %v8210_v38 }
 0x318   :  { %v2755_v28 = vmul.f32 %v2754_v56, %v2737_v7 }
 0x319   :  { %v2437_v33 = vmul.f32 %v2436_v49, %v2417_v47  ;;  %v2745_v50 = vadd.f32 0.18741608, %v2744_v14  ;;  %v2426_v40 = vmul.f32 %v2425_v2, %v2417_v47 }
 0x31a   :  { %v2756_v45 = vadd.f32 0.4994258, %v2755_v28 }
 0x31b   :  { %v2438_v60 = vadd.f32 1.0, %v2437_v33  ;;  %v2746_v57 = vmul.f32 %v2745_v50, %v2737_v7  ;;  %v2427_v61 = vadd.f32 1.1283791, %v2426_v40  ;;  %v3460_v21 = vpop.f32.mrf.mxu0 }
 0x31c   :  { %v2757_v18 = vmul.f32 %v2756_v45, %v2737_v7 }
 0x31d   :  { %3889 = vrcp.f32 %v2438_v60  ;;  %v2450_v59 = vand.u32 2147483648, %v2438_v60  ;;  %v2448_v20 = vand.u32 2147483647, %v2438_v60  ;;  %vm2444_vm13 = vweird.f32 %v2438_v60 }
 0x31e   :  { %v2758_v0 = vadd.f32 1.0, %v2757_v18  ;;  %v2747_v47 = vadd.f32 1.1283791, %v2746_v57  ;;  %v2428_v55 = vmul.f32 %v2427_v61, %v8216_v41 }
 0x31f   :  { %v2451_v3 = vor.u32 1.1754944e-38, %v2450_v59  ;;  %vm2449_vm0 = vcmp.eq.f32.partialorder %v2448_v20, 8.507059e+37 }
 0x320   :  { %3891 = vrcp.f32 %v2758_v0  ;;  %v2770_v62 = vand.u32 2147483648, %v2758_v0  ;;  %v2768_v58 = vand.u32 2147483647, %v2758_v0  ;;  %vm2764_vm1 = vweird.f32 %v2758_v0 }
 0x321   :  { %v2748_v53 = vmul.f32 %v2747_v47, %v8219_v44 }
 0x322   :  { %v2771_v25 = vor.u32 1.1754944e-38, %v2770_v62  ;;  %vm2769_vm3 = vcmp.eq.f32.partialorder %v2768_v58, 8.507059e+37 }
 0x323   :  { %v3890_v5 = vpop.eup %3889 }
 0x324   :  { %v2440_v17 = vmul.f32 %v3890_v5, %v2438_v60  ;;  %vm2445_vm12 = vweird.f32 %v3890_v5 }
 0x325   :  { %vm2446_vm14 = vmor %vm2444_vm13, %vm2445_vm12 }
 0x326   :  { %v3892_v9 = vpop.eup %3891  ;;  %v2441_v52 = vsub.f32 1.0, %v2440_v17 }
 0x327   :  { %v2760_v63 = vmul.f32 %v3892_v9, %v2758_v0  ;;  %vm2765_vm15 = vweird.f32 %v3892_v9 }
 0x328   :  { %v2442_v34 = vmul.f32 %v3890_v5, %v2441_v52  ;;  %vm2766_vm2 = vmor %vm2764_vm1, %vm2765_vm15 }
 0x329   :  { %v2761_v4 = vsub.f32 1.0, %v2760_v63 }
 0x32a   :  { %v2443_v32 = vadd.f32 %v3890_v5, %v2442_v34 }
 0x32b   :  { %v2762_v7 = vmul.f32 %v3892_v9, %v2761_v4 }
 0x32c   :  { %v2447_v13 = vsel %vm2446_vm14, %v3890_v5, %v2443_v32 }
 0x32d   :  { %v2452_v31 = vsel %vm2449_vm0, %v2451_v3, %v2447_v13  ;;  %v2763_v10 = vadd.f32 %v3892_v9, %v2762_v7 }
 0x32e   :  { %v2453_v43 = vmul.f32 %v2452_v31, %v2428_v55 }
 0x32f   :  { %v2767_v30 = vsel %vm2766_vm2, %v3892_v9, %v2763_v10 }
 0x330   :  { %v3526_v54 = vclamps-f32 %v2453_v43, 1.0  ;;  %v2772_v11 = vsel %vm2769_vm3, %v2771_v25, %v2767_v30 }
 0x331   :  { %v2773_v42 = vmul.f32 %v2772_v11, %v2748_v53 }
 0x332   :  { %v2783_v41 = vadd.f32 1.0, %v3526_v54 }
 0x333   :  { %v3534_v36 = vclamps-f32 %v2773_v42, 1.0 }
 0x334   :  { %v2799_v56 = vmul.f32 %v2783_v41, %v2111_v23 }
 0x335   :  { %v2791_v49 = vadd.f32 1.0, %v3534_v36 }
 0x336   :  { %v2815_v28 = vpack.c.bf16 %v2799_v56, %v2799_v56  ;;  %v3471_v8 = vpop.f32.mrf.mxu1 }
 0x337   :  { %v2807_v33 = vmul.f32 %v2791_v49, %v2119_v51  ;;  %v3472_v18 = vadd.f32 %v3471_v8, %v3459_v1 }
 0x338   :  { %v2979_v44 = vunpack.c.l.b16 %v2815_v28 }
 0x339   :  { %v2823_v45 = vpack.c.bf16 %v2807_v33, %v2807_v33 }
 0x33b   :  { %v2987_v60 = vunpack.c.l.b16 %v2823_v45 }
 0x33d   :  { %v2996_v14 = vsel %vm2988_vm8, %v2987_v60, %v2979_v44 }
 0x33e   :  { %v3004_v0 = vpack.c.b16 %v2996_v14, %v2996_v14  ;;  %v3473_v2 = vpop.f32.mrf.mxu1 }
 0x340   :  { %3496 = vmatmul.bf16.vlgmr.msrb.gmra.mxu3 %v3004_v0 }
 0x385   :  { %v3484_v38 = vpop.f32.mrf.mxu2 }
 0x386   :  { %v3485_v27 = vadd.f32 %v3484_v38, %v3472_v18 }
 0x38d   :  { %v3486_v6 = vpop.f32.mrf.mxu2 }
 0x3c3   :  { %v3497_v19 = vpop.f32.mrf.mxu3 }
 0x3c4   :  { %v3498_v15 = vadd.f32 %v3497_v19, %v3485_v27 }
 0x3c6   :  { %3502 = vst.msk [vmem:[#allocation3] sm:$0x3] %vm3501_vm4, %v3498_v15 }
 0x3c7   :  { %3513 = dma.vmem_to_hbm [thread:$0]  %s3509_s15, 32, %s3511_s2, [#allocation4]  }
 0x3cb   :  { %v3499_v37 = vpop.f32.mrf.mxu3 }
 0x3cc   :  { %3920 = dma.done.wait [#allocation4], 32  }
 0x3cd   :  { %3921 = vsyncadd [#allocation4], 4294967264 }
 0x3ce   :  { %3518 = vsyncpa [#allocation4], 1 }

</bundles_post_ra>
